<compile_context>
chip_gen: v6e
topology: v6e:2x2x1
jax: 0.10.0
libtpu: 0.0.40
codegen_flags: <defaults>
</compile_context>

<pallas_src>
import numpy as np
import jax
import jax.numpy as jnp
from jax.experimental import pallas as pl
from jax.experimental.pallas import tpu as pltpu


# ---------------------------------------------------------------------------
# Parameter construction (deterministic, mirrors torchaudio internals)
# ---------------------------------------------------------------------------
def _hz_to_mel_htk(f):
    return 2595.0 * np.log10(1.0 + f / 700.0)


def _mel_to_hz_htk(m):
    return 700.0 * (10.0 ** (m / 2595.0) - 1.0)


def melscale_fbanks(n_freqs, f_min, f_max, n_mels, sample_rate):
    """torchaudio.functional.melscale_fbanks with norm=None, mel_scale='htk'."""
    all_freqs = np.linspace(0.0, sample_rate / 2.0, n_freqs)           # (n_freqs,)
    m_min = _hz_to_mel_htk(f_min)
    m_max = _hz_to_mel_htk(f_max)
    m_pts = np.linspace(m_min, m_max, n_mels + 2)
    f_pts = _mel_to_hz_htk(m_pts)                                       # (n_mels+2,)

    f_diff = f_pts[1:] - f_pts[:-1]                                     # (n_mels+1,)
    slopes = f_pts[None, :] - all_freqs[:, None]                        # (n_freqs, n_mels+2)
    down_slopes = -slopes[:, :-2] / f_diff[:-1]                         # (n_freqs, n_mels)
    up_slopes = slopes[:, 2:] / f_diff[1:]                              # (n_freqs, n_mels)
    fb = np.maximum(0.0, np.minimum(down_slopes, up_slopes))
    return fb.astype(np.float32)                                        # (n_freqs, n_mels)


def dft_matrices(n_fft):
    """Real/imag DFT basis for the onesided spectrum."""
    n_freqs = n_fft // 2 + 1
    k = np.arange(n_fft, dtype=np.float64)[:, None]
    f = np.arange(n_freqs, dtype=np.float64)[None, :]
    angle = 2.0 * np.pi * k * f / n_fft
    return np.cos(angle).astype(np.float32), np.sin(angle).astype(np.float32)


def hann_window(win_length):
    """torch.hann_window (periodic=True)."""
    k = np.arange(win_length, dtype=np.float64)
    return (0.5 - 0.5 * np.cos(2.0 * np.pi * k / win_length)).astype(np.float32)


def _round_up(x, m):
    return ((x + m - 1) // m) * m


def _device_defaults():
    """(max_tile_m, vmem_limit_bytes) tuned per TPU generation."""
    try:
        kind = jax.devices()[0].device_kind.lower()
    except Exception:
        kind = ""
    if "v6" in kind:
        return 2048, 96 * 1024 * 1024     # 128 MiB physical VMEM: amortize per-step overhead
    if "v5" in kind:
        return 512, 48 * 1024 * 1024      # v5e is MXU-bound at TM=512; raise 16 MiB scoped default
    # v7x (64 MiB VMEM per TensorCore) and anything unknown: stay conservative.
    return 1024, 48 * 1024 * 1024


# ---------------------------------------------------------------------------
# Pallas kernel: fused |DFT|^2 + mel-filterbank projection (per frame tile)
# ---------------------------------------------------------------------------
def mel_kernel(frames_ref, w_ref, fb_ref, out_ref):
    # frames_ref: (TM, n_fft)       bf16  (raw samples; window folded into W)
    # w_ref:      (n_fft, 2*F_used) bf16  [cos*win | sin*win]
    # fb_ref:     (F_used, n_mels)  bf16
    # out_ref:    (TM, n_mels)      f32
    f_used = fb_ref.shape[0]
    x = frames_ref[...]
    # One MXU pass over the frame tile for both real and imaginary parts.
    y = jnp.dot(x, w_ref[...], preferred_element_type=jnp.float32)      # (TM, 2*F_used)
    re = y[:, :f_used]                                                   # lane-aligned split
    im = y[:, f_used:]
    power = (re * re + im * im).astype(jnp.bfloat16)                     # |STFT|^2 -> bf16
    out_ref[...] = jnp.dot(power, fb_ref[...],
                           preferred_element_type=jnp.float32)           # (TM, n_mels)


class MelSpectrogramPallas:
    def __init__(self, sample_rate=16000, n_mels=128, n_fft=1024, hop_length=250,
                 max_tile_m=None, vmem_limit_bytes=None):
        self.sample_rate = sample_rate
        self.n_mels = n_mels
        self.n_fft = n_fft
        self.hop_length = hop_length
        self.win_length = n_fft
        self.n_freqs = n_fft // 2 + 1

        default_tm, default_vmem = _device_defaults()
        self.max_tile_m = max_tile_m if max_tile_m is not None else default_tm
        self.vmem_limit_bytes = (vmem_limit_bytes if vmem_limit_bytes is not None
                                 else default_vmem)

        fb_full = melscale_fbanks(self.n_freqs, 0.0, sample_rate / 2.0,
                                  n_mels, sample_rate)                   # (n_freqs, n_mels)
        # Drop trailing all-(near-)zero filterbank rows (the Nyquist row is zero
        # for the default f_min=0 / f_max=sr/2 / norm=None HTK setup), then pad
        # the frequency axis to a lane-aligned multiple of 128: 513 -> 512 here.
        # If a non-default config makes the last rows nonzero, we fall back to
        # keeping them (padded up to the next multiple of 128) -- still correct.
        row_max = np.abs(fb_full).max(axis=1)
        tol = 1e-6 * max(float(fb_full.max()), 1.0)
        f_keep = self.n_freqs
        while f_keep > 1 and row_max[f_keep - 1] <= tol:
            f_keep -= 1
        self.f_used = max(_round_up(f_keep, 128), 128)

        cos_m, sin_m = dft_matrices(n_fft)                               # (n_fft, n_freqs)
        win = hann_window(self.win_length)                               # (n_fft,)
        w = np.zeros((n_fft, 2 * self.f_used), dtype=np.float32)
        # Hann window folded into the DFT basis rows -> frames stay raw samples.
        w[:, :f_keep] = cos_m[:, :f_keep] * win[:, None]
        w[:, self.f_used:self.f_used + f_keep] = sin_m[:, :f_keep] * win[:, None]

        fb_pad = np.zeros((self.f_used, n_mels), dtype=np.float32)
        fb_pad[:f_keep] = fb_full[:f_keep]

        self.w_f32 = jnp.asarray(w)                                      # (n_fft, 2*F_used)
        self.w_bf16 = self.w_f32.astype(jnp.bfloat16)
        self.fb_f32 = jnp.asarray(fb_pad)                                # (F_used, n_mels)
        self.fb_bf16 = self.fb_f32.astype(jnp.bfloat16)

    # -- frame extraction: single bf16 gather at the final padded shape -------
    def _gather_frames_bf16(self, waveform, m_pad, T, M):
        B, n = waveform.shape
        pad = self.n_fft // 2
        # center=True, pad_mode='reflect' (torch reflect-pad semantics)
        padded = jnp.pad(waveform, ((0, 0), (pad, pad)), mode="reflect")
        padded = padded.astype(jnp.bfloat16)
        row_len = n + 2 * pad
        padded_flat = padded.reshape(-1)                                  # (B*row_len,) bf16

        m = jnp.arange(m_pad)
        valid = m < M
        b_idx = jnp.where(valid, m // T, B - 1)                           # clamp padding rows
        t_idx = jnp.where(valid, m % T, T - 1)
        flat_start = b_idx * row_len + t_idx * self.hop_length            # (m_pad,)

        # vmapped dynamic_slice -> one gather with n_fft-long slices; the frame
        # slab is written exactly once, in bf16, at its final padded shape.
        frames = jax.vmap(
            lambda s: jax.lax.dynamic_slice(padded_flat, (s,), (self.n_fft,))
        )(flat_start)                                                      # (m_pad, n_fft) bf16
        return frames

    def __call__(self, waveform):
        """waveform: (B, n_samples) float32 -> (B, n_mels, T) float32."""
        waveform = waveform.astype(jnp.float32)
        B, n = waveform.shape
        T = 1 + n // self.hop_length
        M = B * T

        # Frame-tile size: big tiles for pipelining, shrink for tiny inputs.
        if M >= self.max_tile_m:
            tm = self.max_tile_m
        else:
            tm = max(16, _round_up(M, 16))
        m_pad = _round_up(M, tm)

        # TODO(synk): fuse reflect-pad + hop-strided framing into the kernel via
        # manual DMA from the HBM waveform (hop=250 is lane-unaligned, so the
        # in-kernel row build needs careful XLU-side handling).
        frames = self._gather_frames_bf16(waveform, m_pad, T, M)          # (m_pad, n_fft) bf16

        out = pl.pallas_call(
            mel_kernel,
            out_shape=jax.ShapeDtypeStruct((m_pad, self.n_mels), jnp.float32),
            grid=(m_pad // tm,),
            in_specs=[
                pl.BlockSpec((tm, self.n_fft), lambda i: (i, 0)),          # frame tiles
                pl.BlockSpec((self.n_fft, 2 * self.f_used), lambda i: (0, 0)),  # resident W
                pl.BlockSpec((self.f_used, self.n_mels), lambda i: (0, 0)),     # resident fb
            ],
            out_specs=pl.BlockSpec((tm, self.n_mels), lambda i: (i, 0)),
            compiler_params=pltpu.CompilerParams(
                dimension_semantics=("parallel",),        # shard frame tiles across v7x TCs
                vmem_limit_bytes=self.vmem_limit_bytes,
            ),
        )(frames, self.w_bf16, self.fb_bf16)

        mel = out[:M].reshape(B, T, self.n_mels)                           # (B, T, n_mels)
        return jnp.transpose(mel, (0, 2, 1))                               # (B, n_mels, T)


# ---------------------------------------------------------------------------
# Pure-JAX references (same math, no Pallas) for sanity checks
# ---------------------------------------------------------------------------
def reference_mel(pipe, waveform, quantize_bf16=False):
    waveform = waveform.astype(jnp.float32)
    B, n = waveform.shape
    pad = pipe.n_fft // 2
    padded = jnp.pad(waveform, ((0, 0), (pad, pad)), mode="reflect")
    T = 1 + n // pipe.hop_length
    starts = jnp.arange(T) * pipe.hop_length
    idx = starts[:, None] + jnp.arange(pipe.n_fft)[None, :]
    frames = padded[:, idx]                                               # (B, T, n_fft) raw

    if quantize_bf16:
        # Match the kernel's bf16 quantization of samples / weights exactly.
        frames = frames.astype(jnp.bfloat16).astype(jnp.float32)
        w = pipe.w_bf16.astype(jnp.float32)
        fb = pipe.fb_bf16.astype(jnp.float32)
    else:
        w = pipe.w_f32
        fb = pipe.fb_f32

    hp = jax.lax.Precision.HIGHEST
    y = jnp.einsum("btk,kf->btf", frames, w, precision=hp)                # (B, T, 2*F_used)
    re = y[..., :pipe.f_used]
    im = y[..., pipe.f_used:]
    power = re * re + im * im
    if quantize_bf16:
        power = power.astype(jnp.bfloat16).astype(jnp.float32)
    mel = jnp.einsum("btf,fm->btm", power, fb, precision=hp)              # (B, T, n_mels)
    return jnp.transpose(mel, (0, 2, 1))


if __name__ == "__main__":
    key = jax.random.PRNGKey(0)
    B, n_samples = 2, 2000                       # 2000 samples -> 9 frames @ hop=250
    waveform = jax.random.normal(key, (B, n_samples), dtype=jnp.float32)

    pipe = MelSpectrogramPallas(sample_rate=16000, n_mels=128,
                                n_fft=1024, hop_length=250)

    mel = jax.block_until_ready(pipe(waveform))
    assert mel.shape == (B, 128, 1 + n_samples // 250), mel.shape

    # Tight check vs a reference that follows the kernel's exact bf16 path.
    ref_q = jax.block_until_ready(reference_mel(pipe, waveform, quantize_bf16=True))
    np.testing.assert_allclose(np.asarray(mel), np.asarray(ref_q),
                               rtol=1e-2, atol=1e-1)

    # Loose check vs the full-f32 (torchaudio-equivalent) reference: bounds the
    # bf16 quantization error of the DFT + mel matmuls.
    ref = jax.block_until_ready(reference_mel(pipe, waveform, quantize_bf16=False))
    np.testing.assert_allclose(np.asarray(mel), np.asarray(ref),
                               rtol=1e-1, atol=3.0)

    print("KERNEL_OK")
</pallas_src>

<mosaic_0001>
module attributes {stable_mosaic.version = 11 : i64} {
  func.func @mel_kernel(%arg0: i32, %arg1: memref<32x1024xbf16, #tpu.memory_space<vmem>>, %arg2: memref<1024x1024xbf16, #tpu.memory_space<vmem>>, %arg3: memref<512x128xbf16, #tpu.memory_space<vmem>>, %arg4: memref<32x128xf32, #tpu.memory_space<vmem>>) attributes {dimension_semantics = [#tpu.dimension_semantics<parallel>], iteration_bounds = array<i64: 1>, scalar_prefetch = 0 : i64, scratch_operands = 0 : i64, tpu.core_type = #tpu.core_type<tc>, window_params = [{transform_indices = @transform_0, window_bounds = array<i64: 32, 1024>}, {pipeline_mode = #tpu.pipeline_mode<synchronous>, transform_indices = @transform_1, window_bounds = array<i64: 1024, 1024>}, {pipeline_mode = #tpu.pipeline_mode<synchronous>, transform_indices = @transform_2, window_bounds = array<i64: 512, 128>}, {transform_indices = @transform_3, window_bounds = array<i64: 32, 128>}]} {
    %c0 = arith.constant 0 : index
    %c0_0 = arith.constant 0 : index
    %0 = vector.load %arg1[%c0, %c0_0] : memref<32x1024xbf16, #tpu.memory_space<vmem>>, vector<32x1024xbf16>
    %c0_1 = arith.constant 0 : index
    %c0_2 = arith.constant 0 : index
    %1 = vector.load %arg2[%c0_1, %c0_2] : memref<1024x1024xbf16, #tpu.memory_space<vmem>>, vector<1024x1024xbf16>
    %cst = arith.constant dense<0.000000e+00> : vector<32x1024xf32>
    %2 = tpu.matmul %0, %1, %cst {dimension_numbers = #tpu.dot_dimension_numbers<[1], [0], [0], [1], [0, 0, 1, 1], [], []>} : vector<32x1024xbf16>, vector<1024x1024xbf16>, vector<32x1024xf32> -> vector<32x1024xf32>
    %3 = vector.extract_strided_slice %2 {offsets = [0, 0], sizes = [32, 512], strides = [1, 1]} : vector<32x1024xf32> to vector<32x512xf32>
    %4 = vector.extract_strided_slice %2 {offsets = [0, 512], sizes = [32, 512], strides = [1, 1]} : vector<32x1024xf32> to vector<32x512xf32>
    %5 = arith.mulf %3, %3 : vector<32x512xf32>
    %6 = arith.mulf %4, %4 : vector<32x512xf32>
    %7 = arith.addf %5, %6 : vector<32x512xf32>
    %8 = arith.truncf %7 : vector<32x512xf32> to vector<32x512xbf16>
    %c0_3 = arith.constant 0 : index
    %c0_4 = arith.constant 0 : index
    %9 = vector.load %arg3[%c0_3, %c0_4] : memref<512x128xbf16, #tpu.memory_space<vmem>>, vector<512x128xbf16>
    %cst_5 = arith.constant dense<0.000000e+00> : vector<32x128xf32>
    %10 = tpu.matmul %8, %9, %cst_5 {dimension_numbers = #tpu.dot_dimension_numbers<[1], [0], [0], [1], [0, 0, 1, 1], [], []>} : vector<32x512xbf16>, vector<512x128xbf16>, vector<32x128xf32> -> vector<32x128xf32>
    %c0_6 = arith.constant 0 : index
    %c0_7 = arith.constant 0 : index
    %11 = vector.load %arg4[%c0_6, %c0_7] : memref<32x128xf32, #tpu.memory_space<vmem>>, vector<32x128xf32>
    tpu.vector_store %arg4[%c0_6, %c0_7], %10 {strides = array<i32>} : memref<32x128xf32, #tpu.memory_space<vmem>>, vector<32x128xf32>,
    return
  }
  func.func @transform_0(%arg0: i32) -> (i32, i32) {
    %c0_i32 = arith.constant 0 : i32
    %c0_i32_0 = arith.constant 0 : i32
    return %arg0, %c0_i32 : i32, i32
  }
  func.func @transform_1(%arg0: i32) -> (i32, i32) {
    %c0_i32 = arith.constant 0 : i32
    %c0_i32_0 = arith.constant 0 : i32
    %c0_i32_1 = arith.constant 0 : i32
    return %c0_i32, %c0_i32_0 : i32, i32
  }
  func.func @transform_2(%arg0: i32) -> (i32, i32) {
    %c0_i32 = arith.constant 0 : i32
    %c0_i32_0 = arith.constant 0 : i32
    %c0_i32_1 = arith.constant 0 : i32
    return %c0_i32, %c0_i32_0 : i32, i32
  }
  func.func @transform_3(%arg0: i32) -> (i32, i32) {
    %c0_i32 = arith.constant 0 : i32
    %c0_i32_0 = arith.constant 0 : i32
    return %arg0, %c0_i32 : i32, i32
  }
}

</mosaic_0001>

<bundles_post_ra>
// kernel: tpu_custom_call.1
= control target key start
LH: loop header
LB: loop body
LE: loop exit
PB: predicated region body
PF: predicated region fallthrough
CT: control target
= control target key end

     0   :  { %8 = vsyncpa [#allocation3], 0  ;;  %s5531_s0 = inlined_call_operand.hbm [shape: bf16[32,1024], index: 0, kind: input, shape index: {}]   ;;  %s5532_s1 = inlined_call_operand.hbm [shape: bf16[1024,1024], index: 1, kind: input, shape index: {}]   ;;  %s5533_s2 = inlined_call_operand.hbm [shape: bf16[512,128], index: 2, kind: input, shape index: {}]   ;;  %s5534_s3 = inlined_call_operand.hbm [shape: f32[32,128], index: 3, kind: output, shape index: {}]  }
   0x1   :  { %9 = vsyncpa [#allocation6], 0 }
   0x2   :  { %10 = vsyncpa [#allocation4], 0  ;;  %s5249_s12 = smov [#allocation5]   ;;  %s5250_s14 = smov [#allocation2]  }
   0x3   :  { %s28_s13 = sshll.u32 %s5249_s12, 4  ;;  %s16_s15 = sshll.u32 %s5250_s14, 4  ;;  %s29_s13 = int_to_ptr.vmem [resolvable:$true] %s28_s13  ;;  %s17_s15 = int_to_ptr.vmem [resolvable:$true] %s16_s15 }
   0x4   :  { %s5171_s16 = scalar_lea.vmem %s29_s13, 65536  ;;  %p5176_p1 = scmp.lt.s32.totalorder %s29_s13, %s29_s13 }
   0x5   :  { %p5172_p0 = scmp.ne.s32.totalorder %s29_s13, %s5171_s16  ;;  %p5177_p2 = scmp.lt.s32.totalorder %s5171_s16, %s5171_s16 }
   0x7   :  { %p5178_p3 = por %p5177_p2, %p5176_p1 }
   0x9   :  { %p5179_p4 = pnand %p5178_p3, %p5172_p0 }
   0xb   :  { %5182 = shalt.err (!%p5179_p4)
}
   0xc   :  { %s5251_s17 = smov 512   ;;  %s5252_s18 = smov 32  }
   0xd   :  { %34 = dma.hbm_to_vmem [thread:$0]  %s5532_s1, 65536, %s29_s13, [#allocation6], %s5251_s17, %s5251_s17, %s5252_s18  }
   0xe   :  { %s5191_s21 = scalar_lea.vmem %s17_s15, 2048  ;;  %p5196_p6 = scmp.lt.s32.totalorder %s17_s15, %s17_s15 }
   0xf   :  { %p5192_p5 = scmp.ne.s32.totalorder %s17_s15, %s5191_s21  ;;  %p5197_p7 = scmp.lt.s32.totalorder %s5191_s21, %s5191_s21 }
  0x11   :  { %p5198_p8 = por %p5197_p7, %p5196_p6 }
  0x13   :  { %p5199_p9 = pnand %p5198_p8, %p5192_p5 }
  0x15   :  { %5202 = shalt.err (!%p5199_p9)
}
  0x16   :  { %22 = dma.hbm_to_vmem [thread:$0]  %s5531_s0, 2048, %s17_s15, [#allocation3], %s5251_s17, %s5251_s17, %s5252_s18  }
  0x17   :  { %s5253_s24 = smov [#allocation7]  }
  0x18   :  { %s40_s25 = sshll.u32 %s5253_s24, 4  ;;  %s41_s25 = int_to_ptr.vmem [resolvable:$true] %s40_s25 }
  0x19   :  { %s5211_s26 = scalar_lea.vmem %s41_s25, 4096  ;;  %p5216_p11 = scmp.lt.s32.totalorder %s41_s25, %s41_s25 }
  0x1a   :  { %p5212_p10 = scmp.ne.s32.totalorder %s41_s25, %s5211_s26  ;;  %p5217_p12 = scmp.lt.s32.totalorder %s5211_s26, %s5211_s26 }
  0x1c   :  { %p5218_p13 = por %p5217_p12, %p5216_p11 }
  0x1e   :  { %p5219_p0 = pnand %p5218_p13, %p5212_p10 }
  0x20   :  { %5222 = shalt.err (!%p5219_p0)
}
  0x21   :  { %s5254_s1 = smov 64   ;;  %s5255_s27 = smov 4  }
  0x22   :  { %46 = dma.hbm_to_vmem [thread:$0]  %s5533_s2, 4096, %s41_s25, [#allocation6], %s5254_s1, %s5254_s1, %s5255_s27  }
  0x23   :  { %5243 = dma.done.wait [#allocation3], 2048  }
  0x24   :  { %5244 = vsyncadd [#allocation3], 4294965248 }
  0x25   :  { %5245 = dma.done.wait [#allocation6], 69632  }
  0x26   :  { %5246 = vsyncadd [#allocation6], 4294897664  ;;  %v129_v0 = vld [vmem:[#allocation5 + $0x1c0] sm:$0xff]  ;;  %v5296_v59 = vld [vmem:[#allocation2 + $0x8] sm:$0xff]  ;;  %s5256_s0 = smov [#allocation8]  }
  0x27   :  { %v133_v1 = vld [vmem:[#allocation5 + $0x1e0] sm:$0xff]  ;;  %v5298_v60 = vld [vmem:[#allocation2 + $0x28] sm:$0xff]  ;;  %s4492_s2 = sshll.u32 %s5256_s0, 4  ;;  %s4493_s2 = int_to_ptr.vmem [resolvable:$true] %s4492_s2 }
  0x28   :  { %v257_v2 = vld [vmem:[#allocation5 + $0x5c0] sm:$0xff]  ;;  %v4578_v3 = vcombine.high %v129_v0, %v133_v1  ;;  %v4577_v5 = vcombine.low %v129_v0, %v133_v1  ;;  %v5302_v63 = vcombine.high %v5296_v59, %v5298_v60  ;;  %s5223_s30 = scalar_lea.vmem %s4493_s2, 512  ;;  %p5228_p2 = scmp.lt.s32.totalorder %s4493_s2, %s4493_s2 }
  0x29   :  { %v261_v4 = vld [vmem:[#allocation5 + $0x5e0] sm:$0xff]  ;;  %p5224_p1 = scmp.ne.s32.totalorder %s4493_s2, %s5223_s30  ;;  %p5229_p3 = scmp.lt.s32.totalorder %s5223_s30, %s5223_s30 }
  0x2a   :  { %v121_v6 = vld [vmem:[#allocation5 + $0x180] sm:$0xff]  ;;  %v4706_v8 = vcombine.high %v257_v2, %v261_v4  ;;  %v4705_v9 = vcombine.low %v257_v2, %v261_v4  ;;  %3225 = vmatprep.subr.bf16.mxu0 %v4578_v3  ;;  %3310 = vmatprep.mubr.bf16.mxu1 %v5302_v63 }
  0x2b   :  { %v125_v7 = vld [vmem:[#allocation5 + $0x1a0] sm:$0xff]  ;;  %3226 = vmatpush1.bf16.msra.mxu0 %v4577_v5  ;;  %p5230_p4 = por %p5229_p3, %p5228_p2 }
  0x2c   :  { %v4570_v10 = vcombine.high %v121_v6, %v125_v7  ;;  %v249_v11 = vld [vmem:[#allocation5 + $0x580] sm:$0xff]  ;;  %3278 = vmatprep.subr.bf16.mxu1 %v4706_v8  ;;  %v4569_v18 = vcombine.low %v121_v6, %v125_v7 }
  0x2d   :  { %v253_v12 = vld [vmem:[#allocation5 + $0x5a0] sm:$0xff]  ;;  %3279 = vmatpush1.bf16.msra.mxu1 %v4705_v9  ;;  %p5231_p5 = pnand %p5230_p4, %p5224_p1 }
  0x2e   :  { %v113_v13 = vld [vmem:[#allocation5 + $0x140] sm:$0xff]  ;;  %v4698_v14 = vcombine.high %v249_v11, %v253_v12  ;;  %3227 = vmatprep.subr.bf16.mxu0 %v4570_v10  ;;  %v4697_v19 = vcombine.low %v249_v11, %v253_v12 }
  0x2f   :  { %v117_v15 = vld [vmem:[#allocation5 + $0x160] sm:$0xff]  ;;  %3228 = vmatpush1.bf16.msra.mxu0 %v4569_v18 }
  0x30   :  { %v241_v16 = vld [vmem:[#allocation5 + $0x540] sm:$0xff]  ;;  %v4562_v20 = vcombine.high %v113_v13, %v117_v15  ;;  %3280 = vmatprep.subr.bf16.mxu1 %v4698_v14  ;;  %v4561_v26 = vcombine.low %v113_v13, %v117_v15 }
  0x31   :  { %v245_v17 = vld [vmem:[#allocation5 + $0x560] sm:$0xff]  ;;  %3281 = vmatpush1.bf16.msra.mxu1 %v4697_v19 }
  0x32   :  { %v4690_v21 = vcombine.high %v241_v16, %v245_v17  ;;  %v105_v22 = vld [vmem:[#allocation5 + $0x100] sm:$0xff]  ;;  %3229 = vmatprep.subr.bf16.mxu0 %v4562_v20  ;;  %v4689_v27 = vcombine.low %v241_v16, %v245_v17 }
  0x33   :  { %v109_v23 = vld [vmem:[#allocation5 + $0x120] sm:$0xff]  ;;  %3230 = vmatpush1.bf16.msra.mxu0 %v4561_v26 }
  0x34   :  { %v233_v24 = vld [vmem:[#allocation5 + $0x500] sm:$0xff]  ;;  %v4554_v28 = vcombine.high %v105_v22, %v109_v23  ;;  %3282 = vmatprep.subr.bf16.mxu1 %v4690_v21  ;;  %v4553_v34 = vcombine.low %v105_v22, %v109_v23 }
  0x35   :  { %v237_v25 = vld [vmem:[#allocation5 + $0x520] sm:$0xff]  ;;  %3283 = vmatpush1.bf16.msra.mxu1 %v4689_v27 }
  0x36   :  { %v4682_v29 = vcombine.high %v233_v24, %v237_v25  ;;  %v97_v30 = vld [vmem:[#allocation5 + $0xc0] sm:$0xff]  ;;  %3231 = vmatprep.subr.bf16.mxu0 %v4554_v28  ;;  %v4681_v35 = vcombine.low %v233_v24, %v237_v25 }
  0x37   :  { %v101_v31 = vld [vmem:[#allocation5 + $0xe0] sm:$0xff]  ;;  %3232 = vmatpush1.bf16.msra.mxu0 %v4553_v34 }
  0x38   :  { %v225_v32 = vld [vmem:[#allocation5 + $0x4c0] sm:$0xff]  ;;  %v4546_v36 = vcombine.high %v97_v30, %v101_v31  ;;  %3284 = vmatprep.subr.bf16.mxu1 %v4682_v29  ;;  %v4545_v42 = vcombine.low %v97_v30, %v101_v31 }
  0x39   :  { %v229_v33 = vld [vmem:[#allocation5 + $0x4e0] sm:$0xff]  ;;  %3285 = vmatpush1.bf16.msra.mxu1 %v4681_v35 }
  0x3a   :  { %v4674_v37 = vcombine.high %v225_v32, %v229_v33  ;;  %v89_v38 = vld [vmem:[#allocation5 + $0x80] sm:$0xff]  ;;  %3233 = vmatprep.subr.bf16.mxu0 %v4546_v36  ;;  %v4673_v43 = vcombine.low %v225_v32, %v229_v33 }
  0x3b   :  { %v93_v39 = vld [vmem:[#allocation5 + $0xa0] sm:$0xff]  ;;  %3234 = vmatpush1.bf16.msra.mxu0 %v4545_v42 }
  0x3c   :  { %v217_v40 = vld [vmem:[#allocation5 + $0x480] sm:$0xff]  ;;  %v4538_v44 = vcombine.high %v89_v38, %v93_v39  ;;  %3286 = vmatprep.subr.bf16.mxu1 %v4674_v37  ;;  %v4537_v50 = vcombine.low %v89_v38, %v93_v39 }
  0x3d   :  { %v221_v41 = vld [vmem:[#allocation5 + $0x4a0] sm:$0xff]  ;;  %3287 = vmatpush1.bf16.msra.mxu1 %v4673_v43 }
  0x3e   :  { %v4666_v45 = vcombine.high %v217_v40, %v221_v41  ;;  %v81_v46 = vld [vmem:[#allocation5 + $0x40] sm:$0xff]  ;;  %3235 = vmatprep.subr.bf16.mxu0 %v4538_v44  ;;  %v4665_v51 = vcombine.low %v217_v40, %v221_v41 }
  0x3f   :  { %v85_v47 = vld [vmem:[#allocation5 + $0x60] sm:$0xff]  ;;  %3236 = vmatpush1.bf16.msra.mxu0 %v4537_v50 }
  0x40   :  { %v209_v48 = vld [vmem:[#allocation5 + $0x440] sm:$0xff]  ;;  %v4530_v52 = vcombine.high %v81_v46, %v85_v47  ;;  %3288 = vmatprep.subr.bf16.mxu1 %v4666_v45  ;;  %v4529_v0 = vcombine.low %v81_v46, %v85_v47 }
  0x41   :  { %v213_v49 = vld [vmem:[#allocation5 + $0x460] sm:$0xff]  ;;  %3289 = vmatpush1.bf16.msra.mxu1 %v4665_v51 }
  0x42   :  { %v73_v53 = vld [vmem:[#allocation5] sm:$0xff]  ;;  %v4658_v56 = vcombine.high %v209_v48, %v213_v49  ;;  %3237 = vmatprep.subr.bf16.mxu0 %v4530_v52  ;;  %v4657_v1 = vcombine.low %v209_v48, %v213_v49 }
  0x43   :  { %v5288_v54 = vld [vmem:[#allocation2] sm:$0xff]  ;;  %3238 = vmatpush1.bf16.msra.mxu0 %v4529_v0 }
  0x44   :  { %v5290_v55 = vld [vmem:[#allocation2 + $0x20] sm:$0xff]  ;;  %3290 = vmatprep.subr.bf16.mxu1 %v4658_v56 }
  0x45   :  { %v77_v57 = vld [vmem:[#allocation5 + $0x20] sm:$0xff]  ;;  %v5294_v58 = vcombine.high %v5288_v54, %v5290_v55  ;;  %3291 = vmatpush1.bf16.msra.mxu1 %v4657_v1 }
  0x46   :  { %v201_v61 = vld [vmem:[#allocation5 + $0x400] sm:$0xff]  ;;  %v4522_v2 = vcombine.high %v73_v53, %v77_v57  ;;  %v4521_v8 = vcombine.low %v73_v53, %v77_v57 }
  0x47   :  { %v205_v62 = vld [vmem:[#allocation5 + $0x420] sm:$0xff]  ;;  %3257 = vmatprep.mubr.bf16.mxu0 %v5294_v58 }
  0x48   :  { %v4650_v3 = vcombine.high %v201_v61, %v205_v62  ;;  %v193_v4 = vld [vmem:[#allocation5 + $0x3c0] sm:$0xff]  ;;  %3239 = vmatprep.subr.bf16.mxu0 %v4522_v2  ;;  %v4649_v9 = vcombine.low %v201_v61, %v205_v62 }
  0x49   :  { %v197_v5 = vld [vmem:[#allocation5 + $0x3e0] sm:$0xff]  ;;  %3240 = vmatpush1.bf16.msra.mxu0 %v4521_v8 }
  0x4a   :  { %v321_v6 = vld [vmem:[#allocation5 + $0x7c0] sm:$0xff]  ;;  %v4642_v10 = vcombine.high %v193_v4, %v197_v5  ;;  %3292 = vmatprep.subr.bf16.mxu1 %v4650_v3  ;;  %v4641_v16 = vcombine.low %v193_v4, %v197_v5 }
  0x4b   :  { %v325_v7 = vld [vmem:[#allocation5 + $0x7e0] sm:$0xff]  ;;  %3293 = vmatpush1.bf16.msra.mxu1 %v4649_v9 }
  0x4c   :  { %v4770_v11 = vcombine.high %v321_v6, %v325_v7  ;;  %v185_v12 = vld [vmem:[#allocation5 + $0x380] sm:$0xff]  ;;  %3241 = vmatprep.subr.bf16.mxu0 %v4642_v10  ;;  %v4769_v17 = vcombine.low %v321_v6, %v325_v7 }
  0x4d   :  { %v189_v13 = vld [vmem:[#allocation5 + $0x3a0] sm:$0xff]  ;;  %3242 = vmatpush2.bf16.msra.mxu0 %v4641_v16 }
  0x4e   :  { %v313_v14 = vld [vmem:[#allocation5 + $0x780] sm:$0xff]  ;;  %v4634_v18 = vcombine.high %v185_v12, %v189_v13  ;;  %3294 = vmatprep.subr.bf16.mxu1 %v4770_v11  ;;  %v4633_v24 = vcombine.low %v185_v12, %v189_v13 }
  0x4f   :  { %v317_v15 = vld [vmem:[#allocation5 + $0x7a0] sm:$0xff]  ;;  %3295 = vmatpush2.bf16.msra.mxu1 %v4769_v17 }
  0x50   :  { %v4762_v19 = vcombine.high %v313_v14, %v317_v15  ;;  %v177_v20 = vld [vmem:[#allocation5 + $0x340] sm:$0xff]  ;;  %3243 = vmatprep.subr.bf16.mxu0 %v4634_v18  ;;  %v4761_v25 = vcombine.low %v313_v14, %v317_v15 }
  0x51   :  { %v181_v21 = vld [vmem:[#allocation5 + $0x360] sm:$0xff]  ;;  %3244 = vmatpush2.bf16.msra.mxu0 %v4633_v24 }
  0x52   :  { %v305_v22 = vld [vmem:[#allocation5 + $0x740] sm:$0xff]  ;;  %v4626_v26 = vcombine.high %v177_v20, %v181_v21  ;;  %3296 = vmatprep.subr.bf16.mxu1 %v4762_v19  ;;  %v4625_v32 = vcombine.low %v177_v20, %v181_v21  ;;  %v5308_v21 = vcombine.low %v5288_v54, %v5290_v55 }
  0x53   :  { %v309_v23 = vld [vmem:[#allocation5 + $0x760] sm:$0xff]  ;;  %3297 = vmatpush2.bf16.msra.mxu1 %v4761_v25  ;;  %v5312_v25 = vcombine.low %v5296_v59, %v5298_v60 }
  0x54   :  { %v4754_v27 = vcombine.high %v305_v22, %v309_v23  ;;  %v169_v28 = vld [vmem:[#allocation5 + $0x300] sm:$0xff]  ;;  %3245 = vmatprep.subr.bf16.mxu0 %v4626_v26  ;;  %v4753_v33 = vcombine.low %v305_v22, %v309_v23 }
  0x55   :  { %v173_v29 = vld [vmem:[#allocation5 + $0x320] sm:$0xff]  ;;  %3246 = vmatpush2.bf16.msra.mxu0 %v4625_v32 }
  0x56   :  { %v297_v30 = vld [vmem:[#allocation5 + $0x700] sm:$0xff]  ;;  %v4618_v34 = vcombine.high %v169_v28, %v173_v29  ;;  %3298 = vmatprep.subr.bf16.mxu1 %v4754_v27  ;;  %v4617_v40 = vcombine.low %v169_v28, %v173_v29  ;;  %v66_v27 = vld [vmem:[#allocation2 + $0x48] sm:$0xff] }
  0x57   :  { %v301_v31 = vld [vmem:[#allocation5 + $0x720] sm:$0xff]  ;;  %3299 = vmatpush2.bf16.msra.mxu1 %v4753_v33  ;;  %v70_v28 = vld [vmem:[#allocation2 + $0x68] sm:$0xff] }
  0x58   :  { %v4746_v35 = vcombine.high %v297_v30, %v301_v31  ;;  %v161_v36 = vld [vmem:[#allocation5 + $0x2c0] sm:$0xff]  ;;  %3247 = vmatprep.subr.bf16.mxu0 %v4618_v34  ;;  %v4745_v41 = vcombine.low %v297_v30, %v301_v31 }
  0x59   :  { %v165_v37 = vld [vmem:[#allocation5 + $0x2e0] sm:$0xff]  ;;  %3248 = vmatpush2.bf16.msra.mxu0 %v4617_v40 }
  0x5a   :  { %v289_v38 = vld [vmem:[#allocation5 + $0x6c0] sm:$0xff]  ;;  %v4610_v42 = vcombine.high %v161_v36, %v165_v37  ;;  %3300 = vmatprep.subr.bf16.mxu1 %v4746_v35  ;;  %v4609_v48 = vcombine.low %v161_v36, %v165_v37  ;;  %v5317_v35 = vcombine.high %v66_v27, %v70_v28 }
  0x5b   :  { %v293_v39 = vld [vmem:[#allocation5 + $0x6e0] sm:$0xff]  ;;  %3301 = vmatpush2.bf16.msra.mxu1 %v4745_v41 }
  0x5c   :  { %v4738_v43 = vcombine.high %v289_v38, %v293_v39  ;;  %v153_v44 = vld [vmem:[#allocation5 + $0x280] sm:$0xff]  ;;  %3249 = vmatprep.subr.bf16.mxu0 %v4610_v42  ;;  %v4737_v49 = vcombine.low %v289_v38, %v293_v39  ;;  %v5321_v42 = vld [vmem:[#allocation2 + $0x10] sm:$0xff] }
  0x5d   :  { %v157_v45 = vld [vmem:[#allocation5 + $0x2a0] sm:$0xff]  ;;  %3250 = vmatpush2.bf16.msra.mxu0 %v4609_v48  ;;  %v5332_v48 = vcombine.low %v66_v27, %v70_v28 }
  0x5e   :  { %v281_v46 = vld [vmem:[#allocation5 + $0x680] sm:$0xff]  ;;  %v4602_v50 = vcombine.high %v153_v44, %v157_v45  ;;  %3302 = vmatprep.subr.bf16.mxu1 %v4738_v43  ;;  %v4601_v61 = vcombine.low %v153_v44, %v157_v45  ;;  %v5326_v44 = vld [vmem:[#allocation2 + $0x30] sm:$0xff]  ;;  %v5328_v45 = vld [vmem:[#allocation2 + $0x18] sm:$0xff] }
  0x5f   :  { %v285_v47 = vld [vmem:[#allocation5 + $0x6a0] sm:$0xff]  ;;  %3303 = vmatpush2.bf16.msra.mxu1 %v4737_v49 }
  0x60   :  { %v4730_v51 = vcombine.high %v281_v46, %v285_v47  ;;  %v145_v52 = vld [vmem:[#allocation5 + $0x240] sm:$0xff]  ;;  %3251 = vmatprep.subr.bf16.mxu0 %v4602_v50  ;;  %v4729_v62 = vcombine.low %v281_v46, %v285_v47  ;;  %v5330_v46 = vld [vmem:[#allocation2 + $0x38] sm:$0xff] }
  0x61   :  { %v149_v53 = vld [vmem:[#allocation5 + $0x260] sm:$0xff]  ;;  %3252 = vmatpush2.bf16.msra.mxu0 %v4601_v61  ;;  %v5336_v61 = vcombine.high %v5321_v42, %v5326_v44 }
  0x62   :  { %v273_v56 = vld [vmem:[#allocation5 + $0x640] sm:$0xff]  ;;  %v4594_v0 = vcombine.high %v145_v52, %v149_v53  ;;  %3304 = vmatprep.subr.bf16.mxu1 %v4730_v51  ;;  %v4593_v6 = vcombine.low %v145_v52, %v149_v53 }
  0x63   :  { %v277_v57 = vld [vmem:[#allocation5 + $0x660] sm:$0xff]  ;;  %3305 = vmatpush2.bf16.msra.mxu1 %v4729_v62  ;;  %v5341_v62 = vcombine.high %v5328_v45, %v5330_v46 }
  0x64   :  { %v4722_v1 = vcombine.high %v273_v56, %v277_v57  ;;  %v137_v2 = vld [vmem:[#allocation5 + $0x200] sm:$0xff]  ;;  %3253 = vmatprep.subr.bf16.mxu0 %v4594_v0  ;;  %v4721_v7 = vcombine.low %v273_v56, %v277_v57 }
  0x65   :  { %v141_v3 = vld [vmem:[#allocation5 + $0x220] sm:$0xff]  ;;  %3254 = vmatpush2.bf16.msra.mxu0 %v4593_v6 }
  0x66   :  { %v265_v4 = vld [vmem:[#allocation5 + $0x600] sm:$0xff]  ;;  %v4586_v8 = vcombine.high %v137_v2, %v141_v3  ;;  %3306 = vmatprep.subr.bf16.mxu1 %v4722_v1  ;;  %v4585_v14 = vcombine.low %v137_v2, %v141_v3 }
  0x67   :  { %v269_v5 = vld [vmem:[#allocation5 + $0x620] sm:$0xff]  ;;  %3307 = vmatpush2.bf16.msra.mxu1 %v4721_v7 }
  0x68   :  { %v4714_v9 = vcombine.high %v265_v4, %v269_v5  ;;  %v385_v10 = vld [vmem:[#allocation5 + $0x9c0] sm:$0xff]  ;;  %3255 = vmatprep.subr.bf16.mxu0 %v4586_v8  ;;  %v4713_v15 = vcombine.low %v265_v4, %v269_v5 }
  0x69   :  { %v389_v11 = vld [vmem:[#allocation5 + $0x9e0] sm:$0xff]  ;;  %3256 = vmatpush2.bf16.msra.mxu0 %v4585_v14 }
  0x6a   :  { %v513_v12 = vld [vmem:[#allocation5 + $0xdc0] sm:$0xff]  ;;  %v4834_v16 = vcombine.high %v385_v10, %v389_v11  ;;  %3308 = vmatprep.subr.bf16.mxu1 %v4714_v9  ;;  %v4833_v26 = vcombine.low %v385_v10, %v389_v11 }
  0x6b   :  { %v517_v13 = vld [vmem:[#allocation5 + $0xde0] sm:$0xff]  ;;  %3309 = vmatpush2.bf16.msra.mxu1 %v4713_v15 }
  0x6c   :  { %v4962_v17 = vcombine.high %v513_v12, %v517_v13  ;;  %v377_v18 = vld [vmem:[#allocation5 + $0x980] sm:$0xff]  ;;  %3331 = vmatprep.subr.bf16.mxu0 %v4834_v16  ;;  %v4961_v29 = vcombine.low %v513_v12, %v517_v13  ;;  %3258 = vmatmul.mubr.bf16.vlgmr.msra.gmra.mxu0 %v5308_v21 }
  0x6d   :  { %v381_v19 = vld [vmem:[#allocation5 + $0x9a0] sm:$0xff]  ;;  %3332 = vmatpush1.bf16.msra.mxu0 %v4833_v26 }
  0x6e   :  { %v505_v20 = vld [vmem:[#allocation5 + $0xd80] sm:$0xff]  ;;  %v4826_v30 = vcombine.high %v377_v18, %v381_v19  ;;  %3384 = vmatprep.subr.bf16.mxu1 %v4962_v17  ;;  %3311 = vmatmul.mubr.bf16.vlgmr.msra.gmra.mxu1 %v5312_v25  ;;  %v4825_v59 = vcombine.low %v377_v18, %v381_v19 }
  0x6f   :  { %v509_v22 = vld [vmem:[#allocation5 + $0xda0] sm:$0xff]  ;;  %3385 = vmatpush1.bf16.msra.mxu1 %v4961_v29  ;;  %3320 = vmatprep.mubr.bf16.mxu1 %v5317_v35 }
  0x70   :  { %v65_v23 = vld [vmem:[#allocation2 + $0x40] sm:$0xff]  ;;  %v4954_v31 = vcombine.high %v505_v20, %v509_v22  ;;  %3333 = vmatprep.subr.bf16.mxu0 %v4826_v30  ;;  %v4953_v60 = vcombine.low %v505_v20, %v509_v22 }
  0x71   :  { %v69_v24 = vld [vmem:[#allocation2 + $0x60] sm:$0xff]  ;;  %3334 = vmatpush1.bf16.msra.mxu0 %v4825_v59 }
  0x72   :  { %v369_v32 = vld [vmem:[#allocation5 + $0x940] sm:$0xff]  ;;  %v5314_v55 = vcombine.high %v65_v23, %v69_v24  ;;  %3386 = vmatprep.subr.bf16.mxu1 %v4954_v31  ;;  %v5324_v43 = vcombine.low %v65_v23, %v69_v24 }
  0x73   :  { %v373_v54 = vld [vmem:[#allocation5 + $0x960] sm:$0xff]  ;;  %3387 = vmatpush1.bf16.msra.mxu1 %v4953_v60 }
  0x74   :  { %v497_v33 = vld [vmem:[#allocation5 + $0xd40] sm:$0xff]  ;;  %v4818_v36 = vcombine.high %v369_v32, %v373_v54  ;;  %3267 = vmatprep.mubr.bf16.mxu0 %v5314_v55  ;;  %v4817_v47 = vcombine.low %v369_v32, %v373_v54 }
  0x75   :  { %v501_v34 = vld [vmem:[#allocation5 + $0xd60] sm:$0xff]  ;;  %3268 = vmatmul.mubr.bf16.gmra.mxu0 %v5324_v43 }
  0x76   :  { %v361_v37 = vld [vmem:[#allocation5 + $0x900] sm:$0xff]  ;;  %v4946_v39 = vcombine.high %v497_v33, %v501_v34  ;;  %3335 = vmatprep.subr.bf16.mxu0 %v4818_v36  ;;  %v4945_v49 = vcombine.low %v497_v33, %v501_v34  ;;  %3321 = vmatmul.mubr.bf16.gmra.mxu1 %v5332_v48 }
  0x77   :  { %v365_v38 = vld [vmem:[#allocation5 + $0x920] sm:$0xff]  ;;  %3336 = vmatpush1.bf16.msra.mxu0 %v4817_v47  ;;  %3363 = vmatprep.mubr.bf16.mxu0 %v5336_v61 }
  0x78   :  { %v489_v40 = vld [vmem:[#allocation5 + $0xd00] sm:$0xff]  ;;  %v4810_v50 = vcombine.high %v361_v37, %v365_v38  ;;  %3388 = vmatprep.subr.bf16.mxu1 %v4946_v39  ;;  %v4809_v0 = vcombine.low %v361_v37, %v365_v38  ;;  %3416 = vmatprep.mubr.bf16.mxu1 %v5341_v62 }
  0x79   :  { %v493_v41 = vld [vmem:[#allocation5 + $0xd20] sm:$0xff]  ;;  %3389 = vmatpush1.bf16.msra.mxu1 %v4945_v49 }
  0x7a   :  { %v353_v51 = vld [vmem:[#allocation5 + $0x8c0] sm:$0xff]  ;;  %v4938_v56 = vcombine.high %v489_v40, %v493_v41  ;;  %3337 = vmatprep.subr.bf16.mxu0 %v4810_v50  ;;  %v4937_v1 = vcombine.low %v489_v40, %v493_v41 }
  0x7b   :  { %v357_v52 = vld [vmem:[#allocation5 + $0x8e0] sm:$0xff]  ;;  %3338 = vmatpush1.bf16.msra.mxu0 %v4809_v0 }
  0x7c   :  { %v481_v53 = vld [vmem:[#allocation5 + $0xcc0] sm:$0xff]  ;;  %v4802_v2 = vcombine.high %v353_v51, %v357_v52  ;;  %3390 = vmatprep.subr.bf16.mxu1 %v4938_v56  ;;  %v4801_v8 = vcombine.low %v353_v51, %v357_v52 }
  0x7d   :  { %v485_v57 = vld [vmem:[#allocation5 + $0xce0] sm:$0xff]  ;;  %3391 = vmatpush1.bf16.msra.mxu1 %v4937_v1 }
  0x7e   :  { %v345_v3 = vld [vmem:[#allocation5 + $0x880] sm:$0xff]  ;;  %v4930_v6 = vcombine.high %v481_v53, %v485_v57  ;;  %3339 = vmatprep.subr.bf16.mxu0 %v4802_v2  ;;  %v4929_v9 = vcombine.low %v481_v53, %v485_v57 }
  0x7f   :  { %v349_v4 = vld [vmem:[#allocation5 + $0x8a0] sm:$0xff]  ;;  %3340 = vmatpush1.bf16.msra.mxu0 %v4801_v8 }
  0x80   :  { %v473_v5 = vld [vmem:[#allocation5 + $0xc80] sm:$0xff]  ;;  %v4794_v10 = vcombine.high %v345_v3, %v349_v4  ;;  %3392 = vmatprep.subr.bf16.mxu1 %v4930_v6  ;;  %v4793_v16 = vcombine.low %v345_v3, %v349_v4 }
  0x81   :  { %v477_v7 = vld [vmem:[#allocation5 + $0xca0] sm:$0xff]  ;;  %3393 = vmatpush1.bf16.msra.mxu1 %v4929_v9 }
  0x82   :  { %v337_v11 = vld [vmem:[#allocation5 + $0x840] sm:$0xff]  ;;  %v4922_v14 = vcombine.high %v473_v5, %v477_v7  ;;  %3341 = vmatprep.subr.bf16.mxu0 %v4794_v10  ;;  %v4921_v17 = vcombine.low %v473_v5, %v477_v7 }
  0x83   :  { %v341_v12 = vld [vmem:[#allocation5 + $0x860] sm:$0xff]  ;;  %3342 = vmatpush1.bf16.msra.mxu0 %v4793_v16 }
  0x84   :  { %v465_v13 = vld [vmem:[#allocation5 + $0xc40] sm:$0xff]  ;;  %v4786_v18 = vcombine.high %v337_v11, %v341_v12  ;;  %3394 = vmatprep.subr.bf16.mxu1 %v4922_v14  ;;  %v4785_v26 = vcombine.low %v337_v11, %v341_v12 }
  0x85   :  { %v469_v15 = vld [vmem:[#allocation5 + $0xc60] sm:$0xff]  ;;  %3395 = vmatpush1.bf16.msra.mxu1 %v4921_v17 }
  0x86   :  { %v329_v19 = vld [vmem:[#allocation5 + $0x800] sm:$0xff]  ;;  %v4914_v23 = vcombine.high %v465_v13, %v469_v15  ;;  %3343 = vmatprep.subr.bf16.mxu0 %v4786_v18  ;;  %v4913_v27 = vcombine.low %v465_v13, %v469_v15 }
  0x87   :  { %v333_v20 = vld [vmem:[#allocation5 + $0x820] sm:$0xff]  ;;  %3344 = vmatpush1.bf16.msra.mxu0 %v4785_v26 }
  0x88   :  { %v457_v22 = vld [vmem:[#allocation5 + $0xc00] sm:$0xff]  ;;  %v4778_v28 = vcombine.high %v329_v19, %v333_v20  ;;  %3396 = vmatprep.subr.bf16.mxu1 %v4914_v23  ;;  %v4777_v33 = vcombine.low %v329_v19, %v333_v20 }
  0x89   :  { %v461_v24 = vld [vmem:[#allocation5 + $0xc20] sm:$0xff]  ;;  %3397 = vmatpush1.bf16.msra.mxu1 %v4913_v27 }
  0x8a   :  { %v449_v29 = vld [vmem:[#allocation5 + $0xbc0] sm:$0xff]  ;;  %v4906_v32 = vcombine.high %v457_v22, %v461_v24  ;;  %3345 = vmatprep.subr.bf16.mxu0 %v4778_v28  ;;  %v4905_v34 = vcombine.low %v457_v22, %v461_v24 }
  0x8b   :  { %v453_v30 = vld [vmem:[#allocation5 + $0xbe0] sm:$0xff]  ;;  %3346 = vmatpush1.bf16.msra.mxu0 %v4777_v33 }
  0x8c   :  { %v577_v31 = vld [vmem:[#allocation5 + $0xfc0] sm:$0xff]  ;;  %v4898_v59 = vcombine.high %v449_v29, %v453_v30  ;;  %3398 = vmatprep.subr.bf16.mxu1 %v4906_v32  ;;  %v4897_v40 = vcombine.low %v449_v29, %v453_v30 }
  0x8d   :  { %v581_v54 = vld [vmem:[#allocation5 + $0xfe0] sm:$0xff]  ;;  %3399 = vmatpush1.bf16.msra.mxu1 %v4905_v34 }
  0x8e   :  { %v441_v60 = vld [vmem:[#allocation5 + $0xb80] sm:$0xff]  ;;  %v5026_v38 = vcombine.high %v577_v31, %v581_v54  ;;  %3347 = vmatprep.subr.bf16.mxu0 %v4898_v59  ;;  %v5025_v41 = vcombine.low %v577_v31, %v581_v54 }
  0x8f   :  { %v445_v36 = vld [vmem:[#allocation5 + $0xba0] sm:$0xff]  ;;  %3348 = vmatpush2.bf16.msra.mxu0 %v4897_v40 }
  0x90   :  { %v569_v37 = vld [vmem:[#allocation5 + $0xf80] sm:$0xff]  ;;  %v4890_v47 = vcombine.high %v441_v60, %v445_v36  ;;  %3400 = vmatprep.subr.bf16.mxu1 %v5026_v38  ;;  %v4889_v56 = vcombine.low %v441_v60, %v445_v36 }
  0x91   :  { %v573_v39 = vld [vmem:[#allocation5 + $0xfa0] sm:$0xff]  ;;  %3401 = vmatpush2.bf16.msra.mxu1 %v5025_v41 }
  0x92   :  { %v433_v49 = vld [vmem:[#allocation5 + $0xb40] sm:$0xff]  ;;  %v5018_v52 = vcombine.high %v569_v37, %v573_v39  ;;  %3349 = vmatprep.subr.bf16.mxu0 %v4890_v47  ;;  %v5017_v57 = vcombine.low %v569_v37, %v573_v39  ;;  %v130_v47 = vld [vmem:[#allocation5 + $0x1c8] sm:$0xff] }
  0x93   :  { %v437_v50 = vld [vmem:[#allocation5 + $0xb60] sm:$0xff]  ;;  %3350 = vmatpush2.bf16.msra.mxu0 %v4889_v56 }
  0x94   :  { %v561_v51 = vld [vmem:[#allocation5 + $0xf40] sm:$0xff]  ;;  %v4882_v0 = vcombine.high %v433_v49, %v437_v50  ;;  %3402 = vmatprep.subr.bf16.mxu1 %v5018_v52  ;;  %v4881_v6 = vcombine.low %v433_v49, %v437_v50  ;;  %v134_v49 = vld [vmem:[#allocation5 + $0x1e8] sm:$0xff] }
  0x95   :  { %v565_v53 = vld [vmem:[#allocation5 + $0xf60] sm:$0xff]  ;;  %3403 = vmatpush2.bf16.msra.mxu1 %v5017_v57  ;;  %v258_v50 = vld [vmem:[#allocation5 + $0x5c8] sm:$0xff]  ;;  %v4580_v56 = vcombine.high %v130_v47, %v134_v49 }
  0x96   :  { %v425_v1 = vld [vmem:[#allocation5 + $0xb00] sm:$0xff]  ;;  %v5010_v4 = vcombine.high %v561_v51, %v565_v53  ;;  %3351 = vmatprep.subr.bf16.mxu0 %v4882_v0  ;;  %v5009_v7 = vcombine.low %v561_v51, %v565_v53  ;;  %v262_v51 = vld [vmem:[#allocation5 + $0x5e8] sm:$0xff] }
  0x97   :  { %v429_v2 = vld [vmem:[#allocation5 + $0xb20] sm:$0xff]  ;;  %3352 = vmatpush2.bf16.msra.mxu0 %v4881_v6  ;;  %v4708_v57 = vcombine.high %v258_v50, %v262_v51  ;;  %v122_v0 = vld [vmem:[#allocation5 + $0x188] sm:$0xff]  ;;  %v71_v6 = vld [vmem:[#allocation2 + $0x70] sm:$0xff] }
  0x98   :  { %v553_v3 = vld [vmem:[#allocation5 + $0xf00] sm:$0xff]  ;;  %v4874_v8 = vcombine.high %v425_v1, %v429_v2  ;;  %3404 = vmatprep.subr.bf16.mxu1 %v5010_v4  ;;  %v4873_v14 = vcombine.low %v425_v1, %v429_v2  ;;  %v126_v1 = vld [vmem:[#allocation5 + $0x1a8] sm:$0xff] }
  0x99   :  { %v557_v5 = vld [vmem:[#allocation5 + $0xf20] sm:$0xff]  ;;  %3405 = vmatpush2.bf16.msra.mxu1 %v5009_v7  ;;  %v250_v2 = vld [vmem:[#allocation5 + $0x588] sm:$0xff]  ;;  %v5352_v7 = vcombine.low %v5328_v45, %v5330_v46  ;;  %v4571_v45 = vcombine.low %v122_v0, %v126_v1 }
  0x9a   :  { %v5002_v9 = vcombine.high %v553_v3, %v557_v5  ;;  %v417_v10 = vld [vmem:[#allocation5 + $0xac0] sm:$0xff]  ;;  %3353 = vmatprep.subr.bf16.mxu0 %v4874_v8  ;;  %v5001_v15 = vcombine.low %v553_v3, %v557_v5  ;;  %v5348_v3 = vcombine.low %v5321_v42, %v5326_v44  ;;  %v254_v4 = vld [vmem:[#allocation5 + $0x5a8] sm:$0xff]  ;;  %v67_v5 = vld [vmem:[#allocation2 + $0x50] sm:$0xff]  ;;  %v4579_v8 = vcombine.low %v130_v47, %v134_v49 }
  0x9b   :  { %v421_v11 = vld [vmem:[#allocation5 + $0xae0] sm:$0xff]  ;;  %3354 = vmatpush2.bf16.msra.mxu0 %v4873_v14  ;;  %v5354_v14 = vcombine.high %v67_v5, %v71_v6  ;;  %v114_v42 = vld [vmem:[#allocation5 + $0x148] sm:$0xff]  ;;  %v4699_v46 = vcombine.low %v250_v2, %v254_v4 }
  0x9c   :  { %v545_v12 = vld [vmem:[#allocation5 + $0xec0] sm:$0xff]  ;;  %v4866_v16 = vcombine.high %v417_v10, %v421_v11  ;;  %3406 = vmatprep.subr.bf16.mxu1 %v5002_v9  ;;  %v4865_v23 = vcombine.low %v417_v10, %v421_v11  ;;  %v68_v9 = vld [vmem:[#allocation2 + $0x58] sm:$0xff]  ;;  %v4707_v11 = vcombine.low %v258_v50, %v262_v51  ;;  %v118_v44 = vld [vmem:[#allocation5 + $0x168] sm:$0xff] }
  0x9d   :  { %v549_v13 = vld [vmem:[#allocation5 + $0xee0] sm:$0xff]  ;;  %3407 = vmatpush2.bf16.msra.mxu1 %v5001_v15  ;;  %v72_v10 = vld [vmem:[#allocation2 + $0x78] sm:$0xff]  ;;  %v242_v15 = vld [vmem:[#allocation5 + $0x548] sm:$0xff] }
  0x9e   :  { %v4994_v17 = vcombine.high %v545_v12, %v549_v13  ;;  %v409_v18 = vld [vmem:[#allocation5 + $0xa80] sm:$0xff]  ;;  %3355 = vmatprep.subr.bf16.mxu0 %v4866_v16  ;;  %v4993_v24 = vcombine.low %v545_v12, %v549_v13  ;;  %v4572_v12 = vcombine.high %v122_v0, %v126_v1  ;;  %v4700_v13 = vcombine.high %v250_v2, %v254_v4  ;;  %v246_v16 = vld [vmem:[#allocation5 + $0x568] sm:$0xff] }
  0x9f   :  { %v413_v19 = vld [vmem:[#allocation5 + $0xaa0] sm:$0xff]  ;;  %3356 = vmatpush2.bf16.msra.mxu0 %v4865_v23  ;;  %v5361_v23 = vcombine.low %v67_v5, %v71_v6  ;;  %v74_v5 = vld [vmem:[#allocation5 + $0x8] sm:$0xff] }
  0xa0   :  { %v537_v20 = vld [vmem:[#allocation5 + $0xe80] sm:$0xff]  ;;  %v4858_v26 = vcombine.high %v409_v18, %v413_v19  ;;  %3408 = vmatprep.subr.bf16.mxu1 %v4994_v17  ;;  %v4857_v32 = vcombine.low %v409_v18, %v413_v19  ;;  %v5357_v17 = vcombine.high %v68_v9, %v72_v10  ;;  %v4564_v18 = vcombine.high %v114_v42, %v118_v44  ;;  %v78_v6 = vld [vmem:[#allocation5 + $0x28] sm:$0xff] }
  0xa1   :  { %v541_v22 = vld [vmem:[#allocation5 + $0xea0] sm:$0xff]  ;;  %3409 = vmatpush2.bf16.msra.mxu1 %v4993_v24  ;;  %v4692_v19 = vcombine.high %v242_v15, %v246_v16  ;;  %v234_v24 = vld [vmem:[#allocation5 + $0x508] sm:$0xff] }
  0xa2   :  { %v4986_v27 = vcombine.high %v537_v20, %v541_v22  ;;  %v401_v28 = vld [vmem:[#allocation5 + $0xa40] sm:$0xff]  ;;  %3357 = vmatprep.subr.bf16.mxu0 %v4858_v26  ;;  %v4985_v54 = vcombine.low %v537_v20, %v541_v22  ;;  %v106_v20 = vld [vmem:[#allocation5 + $0x108] sm:$0xff] }
  0xa3   :  { %v405_v29 = vld [vmem:[#allocation5 + $0xa60] sm:$0xff]  ;;  %3358 = vmatpush2.bf16.msra.mxu0 %v4857_v32  ;;  %v110_v22 = vld [vmem:[#allocation5 + $0x128] sm:$0xff] }
  0xa4   :  { %v529_v30 = vld [vmem:[#allocation5 + $0xe40] sm:$0xff]  ;;  %v4850_v33 = vcombine.high %v401_v28, %v405_v29  ;;  %3410 = vmatprep.subr.bf16.mxu1 %v4986_v27  ;;  %v4849_v38 = vcombine.low %v401_v28, %v405_v29  ;;  %v238_v26 = vld [vmem:[#allocation5 + $0x528] sm:$0xff]  ;;  %v4563_v27 = vcombine.low %v114_v42, %v118_v44  ;;  %v5364_v28 = vcombine.low %v68_v9, %v72_v10 }
  0xa5   :  { %v533_v31 = vld [vmem:[#allocation5 + $0xe60] sm:$0xff]  ;;  %3411 = vmatpush2.bf16.msra.mxu1 %v4985_v54  ;;  %v4691_v29 = vcombine.low %v242_v15, %v246_v16  ;;  %v98_v32 = vld [vmem:[#allocation5 + $0xc8] sm:$0xff] }
  0xa6   :  { %v4978_v34 = vcombine.high %v529_v30, %v533_v31  ;;  %v393_v59 = vld [vmem:[#allocation5 + $0xa00] sm:$0xff]  ;;  %3359 = vmatprep.subr.bf16.mxu0 %v4850_v33  ;;  %v4977_v39 = vcombine.low %v529_v30, %v533_v31  ;;  %v4556_v30 = vcombine.high %v106_v20, %v110_v22  ;;  %v4684_v31 = vcombine.high %v234_v24, %v238_v26  ;;  %v102_v54 = vld [vmem:[#allocation5 + $0xe8] sm:$0xff] }
  0xa7   :  { %v397_v60 = vld [vmem:[#allocation5 + $0xa20] sm:$0xff]  ;;  %3360 = vmatpush2.bf16.msra.mxu0 %v4849_v38  ;;  %v226_v33 = vld [vmem:[#allocation5 + $0x4c8] sm:$0xff]  ;;  %v4547_v47 = vcombine.low %v98_v32, %v102_v54 }
  0xa8   :  { %v521_v36 = vld [vmem:[#allocation5 + $0xe00] sm:$0xff]  ;;  %v4842_v40 = vcombine.high %v393_v59, %v397_v60  ;;  %3412 = vmatprep.subr.bf16.mxu1 %v4978_v34  ;;  %v4841_v52 = vcombine.low %v393_v59, %v397_v60  ;;  %v230_v34 = vld [vmem:[#allocation5 + $0x4e8] sm:$0xff]  ;;  %v4555_v59 = vcombine.low %v106_v20, %v110_v22  ;;  %v4683_v60 = vcombine.low %v234_v24, %v238_v26 }
  0xa9   :  { %v525_v37 = vld [vmem:[#allocation5 + $0xe20] sm:$0xff]  ;;  %3413 = vmatpush2.bf16.msra.mxu1 %v4977_v39  ;;  %v90_v38 = vld [vmem:[#allocation5 + $0x88] sm:$0xff]  ;;  %v4675_v49 = vcombine.low %v226_v33, %v230_v34 }
  0xaa   :  { %v4970_v41 = vcombine.high %v521_v36, %v525_v37  ;;  %3361 = vmatprep.subr.bf16.mxu0 %v4842_v40  ;;  %v4969_v53 = vcombine.low %v521_v36, %v525_v37  ;;  %v4548_v36 = vcombine.high %v98_v32, %v102_v54  ;;  %v4676_v37 = vcombine.high %v226_v33, %v230_v34  ;;  %v94_v39 = vld [vmem:[#allocation5 + $0xa8] sm:$0xff] }
  0xab   :  { %3362 = vmatpush2.bf16.msra.mxu0 %v4841_v52  ;;  %v218_v40 = vld [vmem:[#allocation5 + $0x488] sm:$0xff]  ;;  %v4540_v50 = vcombine.high %v90_v38, %v94_v39  ;;  %v4539_v0 = vcombine.low %v90_v38, %v94_v39 }
  0xac   :  { %3414 = vmatprep.subr.bf16.mxu1 %v4970_v41  ;;  %3437 = vmatprep.subr.bf16.mxu0 %v4580_v56  ;;  %v222_v41 = vld [vmem:[#allocation5 + $0x4a8] sm:$0xff] }
  0xad   :  { %3415 = vmatpush2.bf16.msra.mxu1 %v4969_v53  ;;  %v4668_v51 = vcombine.high %v218_v40, %v222_v41  ;;  %v82_v52 = vld [vmem:[#allocation5 + $0x48] sm:$0xff]  ;;  %v4667_v1 = vcombine.low %v218_v40, %v222_v41 }
  0xae   :  { %3490 = vmatprep.subr.bf16.mxu1 %v4708_v57  ;;  %3364 = vmatmul.mubr.bf16.vlgmr.msra.gmra.mxu0 %v5348_v3  ;;  %v86_v53 = vld [vmem:[#allocation5 + $0x68] sm:$0xff] }
  0xaf   :  { %3438 = vmatpush1.bf16.msra.mxu0 %v4579_v8  ;;  %3373 = vmatprep.mubr.bf16.mxu0 %v5354_v14  ;;  %v210_v56 = vld [vmem:[#allocation5 + $0x448] sm:$0xff]  ;;  %v4532_v2 = vcombine.high %v82_v52, %v86_v53  ;;  %v4531_v10 = vcombine.low %v82_v52, %v86_v53 }
  0xb0   :  { %3417 = vmatmul.mubr.bf16.vlgmr.msra.gmra.mxu1 %v5352_v7  ;;  %3439 = vmatprep.subr.bf16.mxu0 %v4572_v12  ;;  %v214_v57 = vld [vmem:[#allocation5 + $0x468] sm:$0xff]  ;;  %v4524_v12 = vcombine.high %v74_v5, %v78_v6 }
  0xb1   :  { %3491 = vmatpush1.bf16.msra.mxu1 %v4707_v11  ;;  %3426 = vmatprep.mubr.bf16.mxu1 %v5357_v17  ;;  %v4660_v4 = vcombine.high %v210_v56, %v214_v57  ;;  %v202_v8 = vld [vmem:[#allocation5 + $0x408] sm:$0xff]  ;;  %v4659_v11 = vcombine.low %v210_v56, %v214_v57 }
  0xb2   :  { %3492 = vmatprep.subr.bf16.mxu1 %v4700_v13  ;;  %v206_v9 = vld [vmem:[#allocation5 + $0x428] sm:$0xff] }
  0xb3   :  { %3440 = vmatpush1.bf16.msra.mxu0 %v4571_v45  ;;  %v4652_v13 = vcombine.high %v202_v8, %v206_v9  ;;  %v194_v42 = vld [vmem:[#allocation5 + $0x3c8] sm:$0xff]  ;;  %v4523_v45 = vcombine.low %v74_v5, %v78_v6 }
  0xb4   :  { %3441 = vmatprep.subr.bf16.mxu0 %v4564_v18  ;;  %v198_v44 = vld [vmem:[#allocation5 + $0x3e8] sm:$0xff] }
  0xb5   :  { %3493 = vmatpush1.bf16.msra.mxu1 %v4699_v46  ;;  %v322_v15 = vld [vmem:[#allocation5 + $0x7c8] sm:$0xff]  ;;  %v4651_v46 = vcombine.low %v202_v8, %v206_v9  ;;  %v4644_v18 = vcombine.high %v194_v42, %v198_v44 }
  0xb6   :  { %3494 = vmatprep.subr.bf16.mxu1 %v4692_v19  ;;  %3374 = vmatmul.mubr.bf16.gmra.mxu0 %v5361_v23  ;;  %v326_v16 = vld [vmem:[#allocation5 + $0x7e8] sm:$0xff] }
  0xb7   :  { %3442 = vmatpush1.bf16.msra.mxu0 %v4563_v27  ;;  %3469 = vmatprep.mubr.bf16.mxu0 %v5294_v58  ;;  %v4772_v19 = vcombine.high %v322_v15, %v326_v16  ;;  %v186_v20 = vld [vmem:[#allocation5 + $0x388] sm:$0xff]  ;;  %v4643_v27 = vcombine.low %v194_v42, %v198_v44 }
  0xb8   :  { %3427 = vmatmul.mubr.bf16.gmra.mxu1 %v5364_v28  ;;  %3443 = vmatprep.subr.bf16.mxu0 %v4556_v30  ;;  %v190_v22 = vld [vmem:[#allocation5 + $0x3a8] sm:$0xff] }
  0xb9   :  { %3495 = vmatpush1.bf16.msra.mxu1 %v4691_v29  ;;  %3522 = vmatprep.mubr.bf16.mxu1 %v5302_v63  ;;  %v314_v24 = vld [vmem:[#allocation5 + $0x788] sm:$0xff]  ;;  %v4771_v29 = vcombine.low %v322_v15, %v326_v16  ;;  %v4636_v30 = vcombine.high %v186_v20, %v190_v22 }
  0xba   :  { %3496 = vmatprep.subr.bf16.mxu1 %v4684_v31  ;;  %v318_v26 = vld [vmem:[#allocation5 + $0x7a8] sm:$0xff] }
  0xbb   :  { %3444 = vmatpush1.bf16.msra.mxu0 %v4555_v59  ;;  %v4764_v31 = vcombine.high %v314_v24, %v318_v26  ;;  %v178_v32 = vld [vmem:[#allocation5 + $0x348] sm:$0xff]  ;;  %v4635_v59 = vcombine.low %v186_v20, %v190_v22 }
  0xbc   :  { %3445 = vmatprep.subr.bf16.mxu0 %v4548_v36  ;;  %v182_v54 = vld [vmem:[#allocation5 + $0x368] sm:$0xff] }
  0xbd   :  { %3497 = vmatpush1.bf16.msra.mxu1 %v4683_v60  ;;  %v306_v33 = vld [vmem:[#allocation5 + $0x748] sm:$0xff]  ;;  %v4763_v60 = vcombine.low %v314_v24, %v318_v26  ;;  %v4628_v36 = vcombine.high %v178_v32, %v182_v54 }
  0xbe   :  { %3498 = vmatprep.subr.bf16.mxu1 %v4676_v37  ;;  %v310_v34 = vld [vmem:[#allocation5 + $0x768] sm:$0xff] }
  0xbf   :  { %3446 = vmatpush1.bf16.msra.mxu0 %v4547_v47  ;;  %v4756_v37 = vcombine.high %v306_v33, %v310_v34  ;;  %v170_v38 = vld [vmem:[#allocation5 + $0x308] sm:$0xff]  ;;  %v4627_v47 = vcombine.low %v178_v32, %v182_v54 }
  0xc0   :  { %3447 = vmatprep.subr.bf16.mxu0 %v4540_v50  ;;  %v174_v39 = vld [vmem:[#allocation5 + $0x328] sm:$0xff] }
  0xc1   :  { %3499 = vmatpush1.bf16.msra.mxu1 %v4675_v49  ;;  %v298_v40 = vld [vmem:[#allocation5 + $0x708] sm:$0xff]  ;;  %v4755_v49 = vcombine.low %v306_v33, %v310_v34  ;;  %v4620_v50 = vcombine.high %v170_v38, %v174_v39 }
  0xc2   :  { %3500 = vmatprep.subr.bf16.mxu1 %v4668_v51  ;;  %v302_v41 = vld [vmem:[#allocation5 + $0x728] sm:$0xff] }
  0xc3   :  { %3448 = vmatpush1.bf16.msra.mxu0 %v4539_v0  ;;  %v4748_v51 = vcombine.high %v298_v40, %v302_v41  ;;  %v162_v52 = vld [vmem:[#allocation5 + $0x2c8] sm:$0xff]  ;;  %v4619_v0 = vcombine.low %v170_v38, %v174_v39 }
  0xc4   :  { %3449 = vmatprep.subr.bf16.mxu0 %v4532_v2  ;;  %v166_v53 = vld [vmem:[#allocation5 + $0x2e8] sm:$0xff] }
  0xc5   :  { %3501 = vmatpush1.bf16.msra.mxu1 %v4667_v1  ;;  %v290_v56 = vld [vmem:[#allocation5 + $0x6c8] sm:$0xff]  ;;  %v4747_v1 = vcombine.low %v298_v40, %v302_v41  ;;  %v4612_v2 = vcombine.high %v162_v52, %v166_v53 }
  0xc6   :  { %3502 = vmatprep.subr.bf16.mxu1 %v4660_v4  ;;  %v294_v57 = vld [vmem:[#allocation5 + $0x6e8] sm:$0xff] }
  0xc7   :  { %3450 = vmatpush1.bf16.msra.mxu0 %v4531_v10  ;;  %v4740_v4 = vcombine.high %v290_v56, %v294_v57  ;;  %v154_v5 = vld [vmem:[#allocation5 + $0x288] sm:$0xff]  ;;  %v4611_v10 = vcombine.low %v162_v52, %v166_v53 }
  0xc8   :  { %3451 = vmatprep.subr.bf16.mxu0 %v4524_v12  ;;  %v158_v6 = vld [vmem:[#allocation5 + $0x2a8] sm:$0xff] }
  0xc9   :  { %3503 = vmatpush1.bf16.msra.mxu1 %v4659_v11  ;;  %v282_v8 = vld [vmem:[#allocation5 + $0x688] sm:$0xff]  ;;  %v4739_v11 = vcombine.low %v290_v56, %v294_v57  ;;  %v4604_v12 = vcombine.high %v154_v5, %v158_v6 }
  0xca   :  { %3504 = vmatprep.subr.bf16.mxu1 %v4652_v13  ;;  %v286_v9 = vld [vmem:[#allocation5 + $0x6a8] sm:$0xff] }
  0xcb   :  { %3452 = vmatpush1.bf16.msra.mxu0 %v4523_v45  ;;  %v4732_v13 = vcombine.high %v282_v8, %v286_v9  ;;  %v146_v42 = vld [vmem:[#allocation5 + $0x248] sm:$0xff]  ;;  %v4603_v45 = vcombine.low %v154_v5, %v158_v6 }
  0xcc   :  { %3453 = vmatprep.subr.bf16.mxu0 %v4644_v18  ;;  %v150_v44 = vld [vmem:[#allocation5 + $0x268] sm:$0xff] }
  0xcd   :  { %3505 = vmatpush1.bf16.msra.mxu1 %v4651_v46  ;;  %v274_v15 = vld [vmem:[#allocation5 + $0x648] sm:$0xff]  ;;  %v4731_v46 = vcombine.low %v282_v8, %v286_v9  ;;  %v4596_v18 = vcombine.high %v146_v42, %v150_v44 }
  0xce   :  { %3506 = vmatprep.subr.bf16.mxu1 %v4772_v19  ;;  %v278_v16 = vld [vmem:[#allocation5 + $0x668] sm:$0xff] }
  0xcf   :  { %3454 = vmatpush2.bf16.msra.mxu0 %v4643_v27  ;;  %v4724_v19 = vcombine.high %v274_v15, %v278_v16  ;;  %v138_v20 = vld [vmem:[#allocation5 + $0x208] sm:$0xff]  ;;  %v4595_v27 = vcombine.low %v146_v42, %v150_v44 }
  0xd0   :  { %3455 = vmatprep.subr.bf16.mxu0 %v4636_v30  ;;  %v142_v22 = vld [vmem:[#allocation5 + $0x228] sm:$0xff] }
  0xd1   :  { %3507 = vmatpush2.bf16.msra.mxu1 %v4771_v29  ;;  %v266_v24 = vld [vmem:[#allocation5 + $0x608] sm:$0xff]  ;;  %v4723_v29 = vcombine.low %v274_v15, %v278_v16  ;;  %v4588_v30 = vcombine.high %v138_v20, %v142_v22 }
  0xd2   :  { %3508 = vmatprep.subr.bf16.mxu1 %v4764_v31  ;;  %v270_v26 = vld [vmem:[#allocation5 + $0x628] sm:$0xff] }
  0xd3   :  { %3456 = vmatpush2.bf16.msra.mxu0 %v4635_v59  ;;  %v4716_v31 = vcombine.high %v266_v24, %v270_v26  ;;  %v386_v32 = vld [vmem:[#allocation5 + $0x9c8] sm:$0xff]  ;;  %v4587_v59 = vcombine.low %v138_v20, %v142_v22 }
  0xd4   :  { %3457 = vmatprep.subr.bf16.mxu0 %v4628_v36  ;;  %v390_v54 = vld [vmem:[#allocation5 + $0x9e8] sm:$0xff] }
  0xd5   :  { %3509 = vmatpush2.bf16.msra.mxu1 %v4763_v60  ;;  %v514_v33 = vld [vmem:[#allocation5 + $0xdc8] sm:$0xff]  ;;  %v4715_v60 = vcombine.low %v266_v24, %v270_v26  ;;  %v4836_v36 = vcombine.high %v386_v32, %v390_v54 }
  0xd6   :  { %3510 = vmatprep.subr.bf16.mxu1 %v4756_v37  ;;  %v518_v34 = vld [vmem:[#allocation5 + $0xde8] sm:$0xff] }
  0xd7   :  { %3458 = vmatpush2.bf16.msra.mxu0 %v4627_v47  ;;  %v4964_v37 = vcombine.high %v514_v33, %v518_v34  ;;  %v378_v38 = vld [vmem:[#allocation5 + $0x988] sm:$0xff]  ;;  %v4835_v47 = vcombine.low %v386_v32, %v390_v54 }
  0xd8   :  { %3459 = vmatprep.subr.bf16.mxu0 %v4620_v50  ;;  %v382_v39 = vld [vmem:[#allocation5 + $0x9a8] sm:$0xff] }
  0xd9   :  { %3511 = vmatpush2.bf16.msra.mxu1 %v4755_v49  ;;  %v506_v40 = vld [vmem:[#allocation5 + $0xd88] sm:$0xff]  ;;  %v4963_v49 = vcombine.low %v514_v33, %v518_v34  ;;  %v4828_v50 = vcombine.high %v378_v38, %v382_v39 }
  0xda   :  { %3512 = vmatprep.subr.bf16.mxu1 %v4748_v51  ;;  %v510_v41 = vld [vmem:[#allocation5 + $0xda8] sm:$0xff] }
  0xdb   :  { %3460 = vmatpush2.bf16.msra.mxu0 %v4619_v0  ;;  %v4956_v51 = vcombine.high %v506_v40, %v510_v41  ;;  %v370_v52 = vld [vmem:[#allocation5 + $0x948] sm:$0xff]  ;;  %v4827_v0 = vcombine.low %v378_v38, %v382_v39 }
  0xdc   :  { %3461 = vmatprep.subr.bf16.mxu0 %v4612_v2  ;;  %v374_v53 = vld [vmem:[#allocation5 + $0x968] sm:$0xff] }
  0xdd   :  { %3513 = vmatpush2.bf16.msra.mxu1 %v4747_v1  ;;  %v498_v56 = vld [vmem:[#allocation5 + $0xd48] sm:$0xff]  ;;  %v4955_v1 = vcombine.low %v506_v40, %v510_v41  ;;  %v4820_v2 = vcombine.high %v370_v52, %v374_v53 }
  0xde   :  { %3514 = vmatprep.subr.bf16.mxu1 %v4740_v4  ;;  %v502_v57 = vld [vmem:[#allocation5 + $0xd68] sm:$0xff] }
  0xdf   :  { %3462 = vmatpush2.bf16.msra.mxu0 %v4611_v10  ;;  %v4948_v4 = vcombine.high %v498_v56, %v502_v57  ;;  %v362_v5 = vld [vmem:[#allocation5 + $0x908] sm:$0xff]  ;;  %v4819_v10 = vcombine.low %v370_v52, %v374_v53 }
  0xe0   :  { %3463 = vmatprep.subr.bf16.mxu0 %v4604_v12  ;;  %v366_v6 = vld [vmem:[#allocation5 + $0x928] sm:$0xff] }
  0xe1   :  { %3515 = vmatpush2.bf16.msra.mxu1 %v4739_v11  ;;  %v490_v8 = vld [vmem:[#allocation5 + $0xd08] sm:$0xff]  ;;  %v4947_v11 = vcombine.low %v498_v56, %v502_v57  ;;  %v4812_v12 = vcombine.high %v362_v5, %v366_v6 }
  0xe2   :  { %3516 = vmatprep.subr.bf16.mxu1 %v4732_v13  ;;  %v494_v9 = vld [vmem:[#allocation5 + $0xd28] sm:$0xff] }
  0xe3   :  { %3464 = vmatpush2.bf16.msra.mxu0 %v4603_v45  ;;  %v4940_v13 = vcombine.high %v490_v8, %v494_v9  ;;  %v354_v42 = vld [vmem:[#allocation5 + $0x8c8] sm:$0xff]  ;;  %v4811_v45 = vcombine.low %v362_v5, %v366_v6 }
  0xe4   :  { %3465 = vmatprep.subr.bf16.mxu0 %v4596_v18  ;;  %v358_v44 = vld [vmem:[#allocation5 + $0x8e8] sm:$0xff] }
  0xe5   :  { %3517 = vmatpush2.bf16.msra.mxu1 %v4731_v46  ;;  %v482_v15 = vld [vmem:[#allocation5 + $0xcc8] sm:$0xff]  ;;  %v4939_v46 = vcombine.low %v490_v8, %v494_v9  ;;  %v4804_v18 = vcombine.high %v354_v42, %v358_v44 }
  0xe6   :  { %3518 = vmatprep.subr.bf16.mxu1 %v4724_v19  ;;  %v486_v16 = vld [vmem:[#allocation5 + $0xce8] sm:$0xff] }
  0xe7   :  { %3466 = vmatpush2.bf16.msra.mxu0 %v4595_v27  ;;  %v4932_v19 = vcombine.high %v482_v15, %v486_v16  ;;  %v346_v20 = vld [vmem:[#allocation5 + $0x888] sm:$0xff]  ;;  %v4803_v27 = vcombine.low %v354_v42, %v358_v44 }
  0xe8   :  { %3467 = vmatprep.subr.bf16.mxu0 %v4588_v30  ;;  %v350_v22 = vld [vmem:[#allocation5 + $0x8a8] sm:$0xff] }
  0xe9   :  { %3519 = vmatpush2.bf16.msra.mxu1 %v4723_v29  ;;  %v474_v24 = vld [vmem:[#allocation5 + $0xc88] sm:$0xff]  ;;  %v4931_v29 = vcombine.low %v482_v15, %v486_v16  ;;  %v4796_v30 = vcombine.high %v346_v20, %v350_v22 }
  0xea   :  { %3520 = vmatprep.subr.bf16.mxu1 %v4716_v31  ;;  %v478_v26 = vld [vmem:[#allocation5 + $0xca8] sm:$0xff] }
  0xeb   :  { %3468 = vmatpush2.bf16.msra.mxu0 %v4587_v59  ;;  %v4924_v31 = vcombine.high %v474_v24, %v478_v26  ;;  %v338_v32 = vld [vmem:[#allocation5 + $0x848] sm:$0xff]  ;;  %v4795_v59 = vcombine.low %v346_v20, %v350_v22 }
  0xec   :  { %3543 = vmatprep.subr.bf16.mxu0 %v4836_v36  ;;  %v342_v54 = vld [vmem:[#allocation5 + $0x868] sm:$0xff] }
  0xed   :  { %3521 = vmatpush2.bf16.msra.mxu1 %v4715_v60  ;;  %v466_v33 = vld [vmem:[#allocation5 + $0xc48] sm:$0xff]  ;;  %v4923_v60 = vcombine.low %v474_v24, %v478_v26  ;;  %v4788_v36 = vcombine.high %v338_v32, %v342_v54 }
  0xee   :  { %3596 = vmatprep.subr.bf16.mxu1 %v4964_v37  ;;  %3470 = vmatmul.mubr.bf16.vlgmr.msra.gmra.mxu0 %v5308_v21  ;;  %v470_v34 = vld [vmem:[#allocation5 + $0xc68] sm:$0xff] }
  0xef   :  { %3544 = vmatpush1.bf16.msra.mxu0 %v4835_v47  ;;  %3479 = vmatprep.mubr.bf16.mxu0 %v5314_v55  ;;  %v4916_v37 = vcombine.high %v466_v33, %v470_v34  ;;  %v330_v38 = vld [vmem:[#allocation5 + $0x808] sm:$0xff]  ;;  %v4787_v47 = vcombine.low %v338_v32, %v342_v54 }
  0xf0   :  { %3523 = vmatmul.mubr.bf16.vlgmr.msra.gmra.mxu1 %v5312_v25  ;;  %3545 = vmatprep.subr.bf16.mxu0 %v4828_v50  ;;  %v334_v39 = vld [vmem:[#allocation5 + $0x828] sm:$0xff] }
  0xf1   :  { %3597 = vmatpush1.bf16.msra.mxu1 %v4963_v49  ;;  %3532 = vmatprep.mubr.bf16.mxu1 %v5317_v35  ;;  %v458_v40 = vld [vmem:[#allocation5 + $0xc08] sm:$0xff]  ;;  %v4915_v49 = vcombine.low %v466_v33, %v470_v34  ;;  %v4780_v50 = vcombine.high %v330_v38, %v334_v39 }
  0xf2   :  { %3598 = vmatprep.subr.bf16.mxu1 %v4956_v51  ;;  %v462_v41 = vld [vmem:[#allocation5 + $0xc28] sm:$0xff] }
  0xf3   :  { %3546 = vmatpush1.bf16.msra.mxu0 %v4827_v0  ;;  %v4908_v51 = vcombine.high %v458_v40, %v462_v41  ;;  %v450_v52 = vld [vmem:[#allocation5 + $0xbc8] sm:$0xff]  ;;  %v4779_v0 = vcombine.low %v330_v38, %v334_v39 }
  0xf4   :  { %3547 = vmatprep.subr.bf16.mxu0 %v4820_v2  ;;  %v454_v53 = vld [vmem:[#allocation5 + $0xbe8] sm:$0xff] }
  0xf5   :  { %3599 = vmatpush1.bf16.msra.mxu1 %v4955_v1  ;;  %v578_v56 = vld [vmem:[#allocation5 + $0xfc8] sm:$0xff]  ;;  %v4907_v1 = vcombine.low %v458_v40, %v462_v41  ;;  %v4900_v2 = vcombine.high %v450_v52, %v454_v53 }
  0xf6   :  { %3600 = vmatprep.subr.bf16.mxu1 %v4948_v4  ;;  %3480 = vmatmul.mubr.bf16.gmra.mxu0 %v5324_v43  ;;  %v582_v57 = vld [vmem:[#allocation5 + $0xfe8] sm:$0xff] }
  0xf7   :  { %3548 = vmatpush1.bf16.msra.mxu0 %v4819_v10  ;;  %3575 = vmatprep.mubr.bf16.mxu0 %v5336_v61  ;;  %v5028_v4 = vcombine.high %v578_v56, %v582_v57  ;;  %v442_v5 = vld [vmem:[#allocation5 + $0xb88] sm:$0xff]  ;;  %v4899_v10 = vcombine.low %v450_v52, %v454_v53 }
  0xf8   :  { %3533 = vmatmul.mubr.bf16.gmra.mxu1 %v5332_v48  ;;  %3549 = vmatprep.subr.bf16.mxu0 %v4812_v12  ;;  %v446_v6 = vld [vmem:[#allocation5 + $0xba8] sm:$0xff] }
  0xf9   :  { %3601 = vmatpush1.bf16.msra.mxu1 %v4947_v11  ;;  %3628 = vmatprep.mubr.bf16.mxu1 %v5341_v62  ;;  %v570_v8 = vld [vmem:[#allocation5 + $0xf88] sm:$0xff]  ;;  %v5027_v11 = vcombine.low %v578_v56, %v582_v57  ;;  %v4892_v12 = vcombine.high %v442_v5, %v446_v6 }
  0xfa   :  { %3602 = vmatprep.subr.bf16.mxu1 %v4940_v13  ;;  %v574_v9 = vld [vmem:[#allocation5 + $0xfa8] sm:$0xff] }
  0xfb   :  { %3550 = vmatpush1.bf16.msra.mxu0 %v4811_v45  ;;  %v5020_v13 = vcombine.high %v570_v8, %v574_v9  ;;  %v434_v42 = vld [vmem:[#allocation5 + $0xb48] sm:$0xff]  ;;  %v4891_v45 = vcombine.low %v442_v5, %v446_v6 }
  0xfc   :  { %3551 = vmatprep.subr.bf16.mxu0 %v4804_v18  ;;  %v438_v44 = vld [vmem:[#allocation5 + $0xb68] sm:$0xff] }
  0xfd   :  { %3603 = vmatpush1.bf16.msra.mxu1 %v4939_v46  ;;  %v562_v15 = vld [vmem:[#allocation5 + $0xf48] sm:$0xff]  ;;  %v5019_v46 = vcombine.low %v570_v8, %v574_v9  ;;  %v4884_v18 = vcombine.high %v434_v42, %v438_v44 }
  0xfe   :  { %3604 = vmatprep.subr.bf16.mxu1 %v4932_v19  ;;  %v566_v16 = vld [vmem:[#allocation5 + $0xf68] sm:$0xff] }
  0xff   :  { %3552 = vmatpush1.bf16.msra.mxu0 %v4803_v27  ;;  %v5012_v19 = vcombine.high %v562_v15, %v566_v16  ;;  %v426_v20 = vld [vmem:[#allocation5 + $0xb08] sm:$0xff]  ;;  %v4883_v27 = vcombine.low %v434_v42, %v438_v44  ;;  %v131_v42 = vld [vmem:[#allocation5 + $0x1d0] sm:$0xff] }
 0x100   :  { %3553 = vmatprep.subr.bf16.mxu0 %v4796_v30  ;;  %v430_v22 = vld [vmem:[#allocation5 + $0xb28] sm:$0xff]  ;;  %v135_v44 = vld [vmem:[#allocation5 + $0x1f0] sm:$0xff] }
 0x101   :  { %3605 = vmatpush1.bf16.msra.mxu1 %v4931_v29  ;;  %v554_v24 = vld [vmem:[#allocation5 + $0xf08] sm:$0xff]  ;;  %v5011_v29 = vcombine.low %v562_v15, %v566_v16  ;;  %v4876_v30 = vcombine.high %v426_v20, %v430_v22  ;;  %v259_v15 = vld [vmem:[#allocation5 + $0x5d0] sm:$0xff] }
 0x102   :  { %3606 = vmatprep.subr.bf16.mxu1 %v4924_v31  ;;  %v558_v26 = vld [vmem:[#allocation5 + $0xf28] sm:$0xff]  ;;  %v263_v16 = vld [vmem:[#allocation5 + $0x5f0] sm:$0xff] }
 0x103   :  { %3554 = vmatpush1.bf16.msra.mxu0 %v4795_v59  ;;  %v5004_v31 = vcombine.high %v554_v24, %v558_v26  ;;  %v418_v32 = vld [vmem:[#allocation5 + $0xac8] sm:$0xff]  ;;  %v4875_v59 = vcombine.low %v426_v20, %v430_v22  ;;  %v123_v20 = vld [vmem:[#allocation5 + $0x190] sm:$0xff] }
 0x104   :  { %3555 = vmatprep.subr.bf16.mxu0 %v4788_v36  ;;  %v422_v54 = vld [vmem:[#allocation5 + $0xae8] sm:$0xff]  ;;  %v127_v22 = vld [vmem:[#allocation5 + $0x1b0] sm:$0xff] }
 0x105   :  { %3607 = vmatpush1.bf16.msra.mxu1 %v4923_v60  ;;  %v546_v33 = vld [vmem:[#allocation5 + $0xec8] sm:$0xff]  ;;  %v5003_v60 = vcombine.low %v554_v24, %v558_v26  ;;  %v4868_v36 = vcombine.high %v418_v32, %v422_v54  ;;  %v251_v24 = vld [vmem:[#allocation5 + $0x590] sm:$0xff] }
 0x106   :  { %3608 = vmatprep.subr.bf16.mxu1 %v4916_v37  ;;  %v550_v34 = vld [vmem:[#allocation5 + $0xee8] sm:$0xff]  ;;  %v255_v26 = vld [vmem:[#allocation5 + $0x5b0] sm:$0xff] }
 0x107   :  { %3556 = vmatpush1.bf16.msra.mxu0 %v4787_v47  ;;  %v4996_v37 = vcombine.high %v546_v33, %v550_v34  ;;  %v410_v38 = vld [vmem:[#allocation5 + $0xa88] sm:$0xff]  ;;  %v4867_v47 = vcombine.low %v418_v32, %v422_v54  ;;  %v115_v32 = vld [vmem:[#allocation5 + $0x150] sm:$0xff] }
 0x108   :  { %3557 = vmatprep.subr.bf16.mxu0 %v4780_v50  ;;  %v414_v39 = vld [vmem:[#allocation5 + $0xaa8] sm:$0xff]  ;;  %v119_v54 = vld [vmem:[#allocation5 + $0x170] sm:$0xff] }
 0x109   :  { %3609 = vmatpush1.bf16.msra.mxu1 %v4915_v49  ;;  %v538_v40 = vld [vmem:[#allocation5 + $0xe88] sm:$0xff]  ;;  %v4995_v49 = vcombine.low %v546_v33, %v550_v34  ;;  %v4860_v50 = vcombine.high %v410_v38, %v414_v39  ;;  %v243_v34 = vld [vmem:[#allocation5 + $0x550] sm:$0xff] }
 0x10a   :  { %3610 = vmatprep.subr.bf16.mxu1 %v4908_v51  ;;  %v542_v41 = vld [vmem:[#allocation5 + $0xea8] sm:$0xff] }
 0x10b   :  { %3558 = vmatpush1.bf16.msra.mxu0 %v4779_v0  ;;  %v4988_v51 = vcombine.high %v538_v40, %v542_v41  ;;  %v402_v52 = vld [vmem:[#allocation5 + $0xa48] sm:$0xff]  ;;  %v4859_v0 = vcombine.low %v410_v38, %v414_v39  ;;  %v4701_v39 = vcombine.low %v251_v24, %v255_v26 }
 0x10c   :  { %3559 = vmatprep.subr.bf16.mxu0 %v4900_v2  ;;  %v406_v53 = vld [vmem:[#allocation5 + $0xa68] sm:$0xff] }
 0x10d   :  { %3611 = vmatpush1.bf16.msra.mxu1 %v4907_v1  ;;  %v530_v56 = vld [vmem:[#allocation5 + $0xe48] sm:$0xff]  ;;  %v4987_v1 = vcombine.low %v538_v40, %v542_v41  ;;  %v4852_v2 = vcombine.high %v402_v52, %v406_v53  ;;  %v4566_v40 = vcombine.high %v115_v32, %v119_v54 }
 0x10e   :  { %3612 = vmatprep.subr.bf16.mxu1 %v5028_v4  ;;  %v534_v57 = vld [vmem:[#allocation5 + $0xe68] sm:$0xff] }
 0x10f   :  { %3560 = vmatpush2.bf16.msra.mxu0 %v4899_v10  ;;  %v4980_v4 = vcombine.high %v530_v56, %v534_v57  ;;  %v394_v5 = vld [vmem:[#allocation5 + $0xa08] sm:$0xff]  ;;  %v4851_v10 = vcombine.low %v402_v52, %v406_v53  ;;  %v235_v53 = vld [vmem:[#allocation5 + $0x510] sm:$0xff] }
 0x110   :  { %3561 = vmatprep.subr.bf16.mxu0 %v4892_v12  ;;  %v398_v6 = vld [vmem:[#allocation5 + $0xa28] sm:$0xff] }
 0x111   :  { %3613 = vmatpush2.bf16.msra.mxu1 %v5027_v11  ;;  %v522_v8 = vld [vmem:[#allocation5 + $0xe08] sm:$0xff]  ;;  %v4979_v11 = vcombine.low %v530_v56, %v534_v57  ;;  %v4844_v12 = vcombine.high %v394_v5, %v398_v6  ;;  %v239_v56 = vld [vmem:[#allocation5 + $0x530] sm:$0xff] }
 0x112   :  { %3614 = vmatprep.subr.bf16.mxu1 %v5020_v13  ;;  %v526_v9 = vld [vmem:[#allocation5 + $0xe28] sm:$0xff] }
 0x113   :  { %3562 = vmatpush2.bf16.msra.mxu0 %v4891_v45  ;;  %v4972_v13 = vcombine.high %v522_v8, %v526_v9  ;;  %v4843_v45 = vcombine.low %v394_v5, %v398_v6 }
 0x114   :  { %3563 = vmatprep.subr.bf16.mxu0 %v4884_v18  ;;  %v4582_v18 = vcombine.high %v131_v42, %v135_v44 }
 0x115   :  { %3615 = vmatpush2.bf16.msra.mxu1 %v5019_v46  ;;  %v4971_v46 = vcombine.low %v522_v8, %v526_v9  ;;  %v4686_v8 = vcombine.high %v235_v53, %v239_v56  ;;  %v99_v9 = vld [vmem:[#allocation5 + $0xd0] sm:$0xff] }
 0x116   :  { %3616 = vmatprep.subr.bf16.mxu1 %v5012_v19  ;;  %v4710_v19 = vcombine.high %v259_v15, %v263_v16 }
 0x117   :  { %3564 = vmatpush2.bf16.msra.mxu0 %v4883_v27  ;;  %v4581_v27 = vcombine.low %v131_v42, %v135_v44 }
 0x118   :  { %3565 = vmatprep.subr.bf16.mxu0 %v4876_v30  ;;  %v4574_v30 = vcombine.high %v123_v20, %v127_v22 }
 0x119   :  { %3617 = vmatpush2.bf16.msra.mxu1 %v5011_v29  ;;  %v4709_v29 = vcombine.low %v259_v15, %v263_v16  ;;  %v4685_v16 = vcombine.low %v235_v53, %v239_v56  ;;  %v75_v56 = vld [vmem:[#allocation5 + $0x10] sm:$0xff] }
 0x11a   :  { %3618 = vmatprep.subr.bf16.mxu1 %v5004_v31  ;;  %v4702_v31 = vcombine.high %v251_v24, %v255_v26  ;;  %v219_v26 = vld [vmem:[#allocation5 + $0x490] sm:$0xff] }
 0x11b   :  { %3566 = vmatpush2.bf16.msra.mxu0 %v4875_v59  ;;  %v247_v59 = vld [vmem:[#allocation5 + $0x570] sm:$0xff] }
 0x11c   :  { %3567 = vmatprep.subr.bf16.mxu0 %v4868_v36  ;;  %v4573_v36 = vcombine.low %v123_v20, %v127_v22  ;;  %v91_v20 = vld [vmem:[#allocation5 + $0x90] sm:$0xff] }
 0x11d   :  { %3619 = vmatpush2.bf16.msra.mxu1 %v5003_v60  ;;  %v95_v22 = vld [vmem:[#allocation5 + $0xb0] sm:$0xff] }
 0x11e   :  { %3620 = vmatprep.subr.bf16.mxu1 %v4996_v37 }
 0x11f   :  { %3568 = vmatpush2.bf16.msra.mxu0 %v4867_v47  ;;  %v4694_v47 = vcombine.high %v243_v34, %v247_v59 }
 0x120   :  { %3569 = vmatprep.subr.bf16.mxu0 %v4860_v50  ;;  %v111_v50 = vld [vmem:[#allocation5 + $0x130] sm:$0xff] }
 0x121   :  { %3621 = vmatpush2.bf16.msra.mxu1 %v4995_v49  ;;  %v107_v49 = vld [vmem:[#allocation5 + $0x110] sm:$0xff] }
 0x122   :  { %3622 = vmatprep.subr.bf16.mxu1 %v4988_v51  ;;  %v4558_v5 = vcombine.high %v107_v49, %v111_v50  ;;  %v4557_v44 = vcombine.low %v107_v49, %v111_v50  ;;  %v4541_v49 = vcombine.low %v91_v20, %v95_v22 }
 0x123   :  { %3570 = vmatpush2.bf16.msra.mxu0 %v4859_v0  ;;  %v4565_v0 = vcombine.low %v115_v32, %v119_v54 }
 0x124   :  { %3571 = vmatprep.subr.bf16.mxu0 %v4852_v2 }
 0x125   :  { %3623 = vmatpush2.bf16.msra.mxu1 %v4987_v1 }
 0x126   :  { %3624 = vmatprep.subr.bf16.mxu1 %v4980_v4  ;;  %v4693_v4 = vcombine.low %v243_v34, %v247_v59 }
 0x127   :  { %3572 = vmatpush2.bf16.msra.mxu0 %v4851_v10  ;;  %v103_v10 = vld [vmem:[#allocation5 + $0xf0] sm:$0xff] }
 0x128   :  { %3573 = vmatprep.subr.bf16.mxu0 %v4844_v12  ;;  %v227_v12 = vld [vmem:[#allocation5 + $0x4d0] sm:$0xff] }
 0x129   :  { %3625 = vmatpush2.bf16.msra.mxu1 %v4979_v11 }
 0x12a   :  { %3626 = vmatprep.subr.bf16.mxu1 %v4972_v13  ;;  %v231_v13 = vld [vmem:[#allocation5 + $0x4f0] sm:$0xff] }
 0x12b   :  { %3574 = vmatpush2.bf16.msra.mxu0 %v4843_v45  ;;  %v4550_v45 = vcombine.high %v99_v9, %v103_v10  ;;  %v4677_v54 = vcombine.low %v227_v12, %v231_v13 }
 0x12c   :  { %3649 = vmatprep.subr.bf16.mxu0 %v4582_v18  ;;  %v3259_v33 = vpop.f32.mrf.mxu0 }
 0x12d   :  { %3627 = vmatpush2.bf16.msra.mxu1 %v4971_v46 }
 0x12e   :  { %3702 = vmatprep.subr.bf16.mxu1 %v4710_v19  ;;  %3576 = vmatmul.mubr.bf16.vlgmr.msra.gmra.mxu0 %v5348_v3  ;;  %v3312_v60 = vpop.f32.mrf.mxu1  ;;  %v3261_v38 = vpop.f32.mrf.mxu0  ;;  %v4678_v19 = vcombine.high %v227_v12, %v231_v13  ;;  %v323_v12 = vld [vmem:[#allocation5 + $0x7d0] sm:$0xff] }
 0x12f   :  { %3650 = vmatpush1.bf16.msra.mxu0 %v4581_v27  ;;  %v5380_v37 = vadd.f32 %v3312_v60, %v3259_v33  ;;  %3585 = vmatprep.mubr.bf16.mxu0 %v5354_v14  ;;  %v223_v27 = vld [vmem:[#allocation5 + $0x4b0] sm:$0xff]  ;;  %v4542_v33 = vcombine.high %v91_v20, %v95_v22 }
 0x130   :  { %3629 = vmatmul.mubr.bf16.vlgmr.msra.gmra.mxu1 %v5352_v7  ;;  %3651 = vmatprep.subr.bf16.mxu0 %v4574_v30  ;;  %v3314_v41 = vpop.f32.mrf.mxu1  ;;  %v3263_v52 = vpop.f32.mrf.mxu0  ;;  %v4670_v60 = vcombine.high %v219_v26, %v223_v27  ;;  %v4669_v50 = vcombine.low %v219_v26, %v223_v27  ;;  %v327_v13 = vld [vmem:[#allocation5 + $0x7f0] sm:$0xff] }
 0x131   :  { %3703 = vmatpush1.bf16.msra.mxu1 %v4709_v29  ;;  %v5383_v51 = vadd.f32 %v3314_v41, %v3261_v38  ;;  %3638 = vmatprep.mubr.bf16.mxu1 %v5357_v17  ;;  %v87_v38 = vld [vmem:[#allocation5 + $0x70] sm:$0xff] }
 0x132   :  { %3704 = vmatprep.subr.bf16.mxu1 %v4702_v31  ;;  %v3316_v57 = vpop.f32.mrf.mxu1  ;;  %v3265_v2 = vpop.f32.mrf.mxu0  ;;  %v4549_v31 = vcombine.low %v99_v9, %v103_v10  ;;  %v215_v41 = vld [vmem:[#allocation5 + $0x470] sm:$0xff] }
 0x133   :  { %3652 = vmatpush1.bf16.msra.mxu0 %v4573_v36  ;;  %v5386_v1 = vadd.f32 %v3316_v57, %v3263_v52  ;;  %v83_v36 = vld [vmem:[#allocation5 + $0x50] sm:$0xff] }
 0x134   :  { %3653 = vmatprep.subr.bf16.mxu0 %v4566_v40  ;;  %v3318_v6 = vpop.f32.mrf.mxu1  ;;  %v211_v40 = vld [vmem:[#allocation5 + $0x450] sm:$0xff]  ;;  %v4534_v52 = vcombine.high %v83_v36, %v87_v38 }
 0x135   :  { %3705 = vmatpush1.bf16.msra.mxu1 %v4701_v39  ;;  %v5388_v11 = vadd.f32 %v3318_v6, %v3265_v2  ;;  %v3269_v42 = vpop.f32.mrf.mxu0  ;;  %v4662_v53 = vcombine.high %v211_v40, %v215_v41  ;;  %v79_v57 = vld [vmem:[#allocation5 + $0x30] sm:$0xff] }
 0x136   :  { %3706 = vmatprep.subr.bf16.mxu1 %v4694_v47  ;;  %3586 = vmatmul.mubr.bf16.gmra.mxu0 %v5361_v23  ;;  %v3322_v15 = vpop.f32.mrf.mxu1  ;;  %v207_v2 = vld [vmem:[#allocation5 + $0x430] sm:$0xff]  ;;  %v4526_v6 = vcombine.high %v75_v56, %v79_v57 }
 0x137   :  { %3654 = vmatpush1.bf16.msra.mxu0 %v4565_v0  ;;  %v5392_v46 = vadd.f32 %v3322_v15, %v3269_v42  ;;  %v3271_v18 = vpop.f32.mrf.mxu0  ;;  %3681 = vmatprep.mubr.bf16.mxu0 %v5294_v58  ;;  %v203_v0 = vld [vmem:[#allocation5 + $0x410] sm:$0xff]  ;;  %v4525_v42 = vcombine.low %v75_v56, %v79_v57 }
 0x138   :  { %3639 = vmatmul.mubr.bf16.gmra.mxu1 %v5364_v28  ;;  %3655 = vmatprep.subr.bf16.mxu0 %v4558_v5  ;;  %v3324_v24 = vpop.f32.mrf.mxu1  ;;  %v4661_v5 = vcombine.low %v211_v40, %v215_v41  ;;  %v195_v9 = vld [vmem:[#allocation5 + $0x3d0] sm:$0xff] }
 0x139   :  { %3707 = vmatpush1.bf16.msra.mxu1 %v4693_v4  ;;  %v5395_v29 = vadd.f32 %v3324_v24, %v3271_v18  ;;  %v3273_v30 = vpop.f32.mrf.mxu0  ;;  %3734 = vmatprep.mubr.bf16.mxu1 %v5302_v63  ;;  %v4533_v4 = vcombine.low %v83_v36, %v87_v38  ;;  %v199_v10 = vld [vmem:[#allocation5 + $0x3f0] sm:$0xff]  ;;  %v4773_v24 = vcombine.low %v323_v12, %v327_v13 }
 0x13a   :  { %3708 = vmatprep.subr.bf16.mxu1 %v4686_v8  ;;  %v3326_v32 = vpop.f32.mrf.mxu1  ;;  %v4654_v8 = vcombine.high %v203_v0, %v207_v2  ;;  %v4646_v15 = vcombine.high %v195_v9, %v199_v10  ;;  %v191_v18 = vld [vmem:[#allocation5 + $0x3b0] sm:$0xff]  ;;  %v4645_v22 = vcombine.low %v195_v9, %v199_v10 }
 0x13b   :  { %3656 = vmatpush1.bf16.msra.mxu0 %v4557_v44  ;;  %v5398_v34 = vadd.f32 %v3326_v32, %v3273_v30  ;;  %v3275_v59 = vpop.f32.mrf.mxu0  ;;  %v4653_v44 = vcombine.low %v203_v0, %v207_v2  ;;  %v319_v20 = vld [vmem:[#allocation5 + $0x7b0] sm:$0xff] }
 0x13c   :  { %3657 = vmatprep.subr.bf16.mxu0 %v4550_v45  ;;  %v3328_v39 = vpop.f32.mrf.mxu1  ;;  %v187_v45 = vld [vmem:[#allocation5 + $0x390] sm:$0xff] }
 0x13d   :  { %3709 = vmatpush1.bf16.msra.mxu1 %v4685_v16  ;;  %v5400_v47 = vadd.f32 %v3328_v39, %v3275_v59  ;;  %v4774_v16 = vcombine.high %v323_v12, %v327_v13  ;;  %v4638_v26 = vcombine.high %v187_v45, %v191_v18  ;;  %v179_v30 = vld [vmem:[#allocation5 + $0x350] sm:$0xff] }
 0x13e   :  { %3710 = vmatprep.subr.bf16.mxu1 %v4678_v19  ;;  %v315_v19 = vld [vmem:[#allocation5 + $0x790] sm:$0xff] }
 0x13f   :  { %3658 = vmatpush1.bf16.msra.mxu0 %v4549_v31  ;;  %v4766_v27 = vcombine.high %v315_v19, %v319_v20  ;;  %v183_v31 = vld [vmem:[#allocation5 + $0x370] sm:$0xff]  ;;  %v4765_v59 = vcombine.low %v315_v19, %v319_v20 }
 0x140   :  { %3659 = vmatprep.subr.bf16.mxu0 %v4542_v33  ;;  %v307_v32 = vld [vmem:[#allocation5 + $0x750] sm:$0xff]  ;;  %v4637_v33 = vcombine.low %v187_v45, %v191_v18 }
 0x141   :  { %3711 = vmatpush1.bf16.msra.mxu1 %v4677_v54  ;;  %v311_v54 = vld [vmem:[#allocation5 + $0x770] sm:$0xff] }
 0x142   :  { %3712 = vmatprep.subr.bf16.mxu1 %v4670_v60  ;;  %v4630_v60 = vcombine.high %v179_v30, %v183_v31  ;;  %v4758_v36 = vcombine.high %v307_v32, %v311_v54  ;;  %v171_v38 = vld [vmem:[#allocation5 + $0x310] sm:$0xff] }
 0x143   :  { %3660 = vmatpush1.bf16.msra.mxu0 %v4541_v49  ;;  %v175_v39 = vld [vmem:[#allocation5 + $0x330] sm:$0xff]  ;;  %v4629_v49 = vcombine.low %v179_v30, %v183_v31 }
 0x144   :  { %3661 = vmatprep.subr.bf16.mxu0 %v4534_v52  ;;  %v299_v40 = vld [vmem:[#allocation5 + $0x710] sm:$0xff]  ;;  %v4622_v52 = vcombine.high %v171_v38, %v175_v39 }
 0x145   :  { %3713 = vmatpush1.bf16.msra.mxu1 %v4669_v50  ;;  %v303_v41 = vld [vmem:[#allocation5 + $0x730] sm:$0xff]  ;;  %v4757_v50 = vcombine.low %v307_v32, %v311_v54 }
 0x146   :  { %3714 = vmatprep.subr.bf16.mxu1 %v4662_v53  ;;  %v4750_v53 = vcombine.high %v299_v40, %v303_v41  ;;  %v163_v56 = vld [vmem:[#allocation5 + $0x2d0] sm:$0xff] }
 0x147   :  { %3662 = vmatpush1.bf16.msra.mxu0 %v4533_v4  ;;  %v167_v57 = vld [vmem:[#allocation5 + $0x2f0] sm:$0xff]  ;;  %v4621_v4 = vcombine.low %v171_v38, %v175_v39 }
 0x148   :  { %3663 = vmatprep.subr.bf16.mxu0 %v4526_v6  ;;  %v291_v0 = vld [vmem:[#allocation5 + $0x6d0] sm:$0xff]  ;;  %v4614_v6 = vcombine.high %v163_v56, %v167_v57 }
 0x149   :  { %3715 = vmatpush1.bf16.msra.mxu1 %v4661_v5  ;;  %v295_v2 = vld [vmem:[#allocation5 + $0x6f0] sm:$0xff]  ;;  %v4749_v5 = vcombine.low %v299_v40, %v303_v41 }
 0x14a   :  { %3716 = vmatprep.subr.bf16.mxu1 %v4654_v8  ;;  %v4742_v8 = vcombine.high %v291_v0, %v295_v2  ;;  %v155_v9 = vld [vmem:[#allocation5 + $0x290] sm:$0xff] }
 0x14b   :  { %3664 = vmatpush1.bf16.msra.mxu0 %v4525_v42  ;;  %v159_v10 = vld [vmem:[#allocation5 + $0x2b0] sm:$0xff]  ;;  %v4613_v42 = vcombine.low %v163_v56, %v167_v57 }
 0x14c   :  { %3665 = vmatprep.subr.bf16.mxu0 %v4646_v15  ;;  %v283_v12 = vld [vmem:[#allocation5 + $0x690] sm:$0xff]  ;;  %v4606_v15 = vcombine.high %v155_v9, %v159_v10 }
 0x14d   :  { %3717 = vmatpush1.bf16.msra.mxu1 %v4653_v44  ;;  %v287_v13 = vld [vmem:[#allocation5 + $0x6b0] sm:$0xff]  ;;  %v4741_v44 = vcombine.low %v291_v0, %v295_v2 }
 0x14e   :  { %3718 = vmatprep.subr.bf16.mxu1 %v4774_v16  ;;  %v4734_v16 = vcombine.high %v283_v12, %v287_v13  ;;  %v147_v45 = vld [vmem:[#allocation5 + $0x250] sm:$0xff] }
 0x14f   :  { %3666 = vmatpush2.bf16.msra.mxu0 %v4645_v22  ;;  %v151_v18 = vld [vmem:[#allocation5 + $0x270] sm:$0xff]  ;;  %v4605_v22 = vcombine.low %v155_v9, %v159_v10 }
 0x150   :  { %3667 = vmatprep.subr.bf16.mxu0 %v4638_v26  ;;  %v275_v19 = vld [vmem:[#allocation5 + $0x650] sm:$0xff]  ;;  %v4598_v26 = vcombine.high %v147_v45, %v151_v18 }
 0x151   :  { %3719 = vmatpush2.bf16.msra.mxu1 %v4773_v24  ;;  %v279_v20 = vld [vmem:[#allocation5 + $0x670] sm:$0xff]  ;;  %v4733_v24 = vcombine.low %v283_v12, %v287_v13 }
 0x152   :  { %3720 = vmatprep.subr.bf16.mxu1 %v4766_v27  ;;  %v4726_v27 = vcombine.high %v275_v19, %v279_v20  ;;  %v139_v30 = vld [vmem:[#allocation5 + $0x210] sm:$0xff] }
 0x153   :  { %3668 = vmatpush2.bf16.msra.mxu0 %v4637_v33  ;;  %v143_v31 = vld [vmem:[#allocation5 + $0x230] sm:$0xff]  ;;  %v4597_v33 = vcombine.low %v147_v45, %v151_v18 }
 0x154   :  { %3669 = vmatprep.subr.bf16.mxu0 %v4630_v60  ;;  %v267_v32 = vld [vmem:[#allocation5 + $0x610] sm:$0xff]  ;;  %v4590_v60 = vcombine.high %v139_v30, %v143_v31 }
 0x155   :  { %3721 = vmatpush2.bf16.msra.mxu1 %v4765_v59  ;;  %v271_v54 = vld [vmem:[#allocation5 + $0x630] sm:$0xff]  ;;  %v4725_v59 = vcombine.low %v275_v19, %v279_v20 }
 0x156   :  { %3722 = vmatprep.subr.bf16.mxu1 %v4758_v36  ;;  %v4718_v36 = vcombine.high %v267_v32, %v271_v54  ;;  %v387_v38 = vld [vmem:[#allocation5 + $0x9d0] sm:$0xff] }
 0x157   :  { %3670 = vmatpush2.bf16.msra.mxu0 %v4629_v49  ;;  %v391_v39 = vld [vmem:[#allocation5 + $0x9f0] sm:$0xff]  ;;  %v4589_v49 = vcombine.low %v139_v30, %v143_v31 }
 0x158   :  { %3671 = vmatprep.subr.bf16.mxu0 %v4622_v52  ;;  %v515_v40 = vld [vmem:[#allocation5 + $0xdd0] sm:$0xff]  ;;  %v4838_v52 = vcombine.high %v387_v38, %v391_v39 }
 0x159   :  { %3723 = vmatpush2.bf16.msra.mxu1 %v4757_v50  ;;  %v519_v41 = vld [vmem:[#allocation5 + $0xdf0] sm:$0xff]  ;;  %v4717_v50 = vcombine.low %v267_v32, %v271_v54 }
 0x15a   :  { %3724 = vmatprep.subr.bf16.mxu1 %v4750_v53  ;;  %v4966_v53 = vcombine.high %v515_v40, %v519_v41  ;;  %v379_v56 = vld [vmem:[#allocation5 + $0x990] sm:$0xff] }
 0x15b   :  { %3672 = vmatpush2.bf16.msra.mxu0 %v4621_v4  ;;  %v383_v57 = vld [vmem:[#allocation5 + $0x9b0] sm:$0xff]  ;;  %v4837_v4 = vcombine.low %v387_v38, %v391_v39 }
 0x15c   :  { %3673 = vmatprep.subr.bf16.mxu0 %v4614_v6  ;;  %v507_v0 = vld [vmem:[#allocation5 + $0xd90] sm:$0xff]  ;;  %v4830_v6 = vcombine.high %v379_v56, %v383_v57 }
 0x15d   :  { %3725 = vmatpush2.bf16.msra.mxu1 %v4749_v5  ;;  %v511_v2 = vld [vmem:[#allocation5 + $0xdb0] sm:$0xff]  ;;  %v4965_v5 = vcombine.low %v515_v40, %v519_v41 }
 0x15e   :  { %3726 = vmatprep.subr.bf16.mxu1 %v4742_v8  ;;  %v4958_v8 = vcombine.high %v507_v0, %v511_v2  ;;  %v371_v9 = vld [vmem:[#allocation5 + $0x950] sm:$0xff]  ;;  %v4957_v18 = vcombine.low %v507_v0, %v511_v2 }
 0x15f   :  { %3674 = vmatpush2.bf16.msra.mxu0 %v4613_v42  ;;  %v375_v10 = vld [vmem:[#allocation5 + $0x970] sm:$0xff] }
 0x160   :  { %3675 = vmatprep.subr.bf16.mxu0 %v4606_v15  ;;  %v499_v13 = vld [vmem:[#allocation5 + $0xd50] sm:$0xff]  ;;  %v4822_v19 = vcombine.high %v371_v9, %v375_v10 }
 0x161   :  { %3727 = vmatpush2.bf16.msra.mxu1 %v4741_v44  ;;  %v503_v42 = vld [vmem:[#allocation5 + $0xd70] sm:$0xff] }
 0x162   :  { %3728 = vmatprep.subr.bf16.mxu1 %v4734_v16  ;;  %v4829_v16 = vcombine.low %v379_v56, %v383_v57  ;;  %v367_v30 = vld [vmem:[#allocation5 + $0x930] sm:$0xff] }
 0x163   :  { %3676 = vmatpush2.bf16.msra.mxu0 %v4605_v22  ;;  %v491_v31 = vld [vmem:[#allocation5 + $0xd10] sm:$0xff] }
 0x164   :  { %3677 = vmatprep.subr.bf16.mxu0 %v4598_v26  ;;  %v4950_v26 = vcombine.high %v499_v13, %v503_v42  ;;  %v495_v32 = vld [vmem:[#allocation5 + $0xd30] sm:$0xff] }
 0x165   :  { %3729 = vmatpush2.bf16.msra.mxu1 %v4733_v24  ;;  %v483_v56 = vld [vmem:[#allocation5 + $0xcd0] sm:$0xff] }
 0x166   :  { %3730 = vmatprep.subr.bf16.mxu1 %v4726_v27  ;;  %v363_v27 = vld [vmem:[#allocation5 + $0x910] sm:$0xff] }
 0x167   :  { %3678 = vmatpush2.bf16.msra.mxu0 %v4597_v33  ;;  %v4814_v38 = vcombine.high %v363_v27, %v367_v30 }
 0x168   :  { %3679 = vmatprep.subr.bf16.mxu0 %v4590_v60  ;;  %v4821_v60 = vcombine.low %v371_v9, %v375_v10 }
 0x169   :  { %3731 = vmatpush2.bf16.msra.mxu1 %v4725_v59 }
 0x16a   :  { %3732 = vmatprep.subr.bf16.mxu1 %v4718_v36  ;;  %v4949_v36 = vcombine.low %v499_v13, %v503_v42  ;;  %v347_v13 = vld [vmem:[#allocation5 + $0x890] sm:$0xff] }
 0x16b   :  { %3680 = vmatpush2.bf16.msra.mxu0 %v4589_v49  ;;  %v4942_v49 = vcombine.high %v491_v31, %v495_v32  ;;  %v351_v42 = vld [vmem:[#allocation5 + $0x8b0] sm:$0xff] }
 0x16c   :  { %3755 = vmatprep.subr.bf16.mxu0 %v4838_v52  ;;  %v359_v52 = vld [vmem:[#allocation5 + $0x8f0] sm:$0xff] }
 0x16d   :  { %3733 = vmatpush2.bf16.msra.mxu1 %v4717_v50  ;;  %v355_v50 = vld [vmem:[#allocation5 + $0x8d0] sm:$0xff] }
 0x16e   :  { %3808 = vmatprep.subr.bf16.mxu1 %v4966_v53  ;;  %v3365_v12 = vpop.f32.mrf.mxu0  ;;  %3682 = vmatmul.mubr.bf16.vlgmr.msra.gmra.mxu0 %v5308_v21 }
 0x16f   :  { %v3366_v44 = vadd.f32 %v3365_v12, %v5380_v37  ;;  %3756 = vmatpush1.bf16.msra.mxu0 %v4837_v4  ;;  %3691 = vmatprep.mubr.bf16.mxu0 %v5314_v55  ;;  %v4813_v4 = vcombine.low %v363_v27, %v367_v30 }
 0x170   :  { %v3418_v15 = vpop.f32.mrf.mxu1  ;;  %3735 = vmatmul.mubr.bf16.vlgmr.msra.gmra.mxu1 %v5312_v25  ;;  %v3367_v45 = vpop.f32.mrf.mxu0  ;;  %3757 = vmatprep.subr.bf16.mxu0 %v4830_v6  ;;  %v4806_v6 = vcombine.high %v355_v50, %v359_v52 }
 0x171   :  { %3809 = vmatpush1.bf16.msra.mxu1 %v4965_v5  ;;  %v5405_v20 = vadd.f32 %v3418_v15, %v3366_v44  ;;  %v3368_v22 = vadd.f32 %v3367_v45, %v5383_v51  ;;  %3744 = vmatprep.mubr.bf16.mxu1 %v5317_v35  ;;  %v4941_v5 = vcombine.low %v491_v31, %v495_v32  ;;  %v475_v44 = vld [vmem:[#allocation5 + $0xc90] sm:$0xff] }
 0x172   :  { %v3420_v24 = vpop.f32.mrf.mxu1  ;;  %3810 = vmatprep.subr.bf16.mxu1 %v4958_v8  ;;  %v3369_v37 = vpop.f32.mrf.mxu0  ;;  %v479_v15 = vld [vmem:[#allocation5 + $0xcb0] sm:$0xff] }
 0x173   :  { %v5410_v54 = vadd.f32 %v3420_v24, %v3368_v22  ;;  %v3370_v33 = vadd.f32 %v3369_v37, %v5386_v1  ;;  %3758 = vmatpush1.bf16.msra.mxu0 %v4829_v16  ;;  %v487_v1 = vld [vmem:[#allocation5 + $0xcf0] sm:$0xff]  ;;  %v4798_v24 = vcombine.high %v347_v13, %v351_v42  ;;  %v4926_v37 = vcombine.high %v475_v44, %v479_v15 }
 0x174   :  { %v3422_v59 = vpop.f32.mrf.mxu1  ;;  %v3371_v51 = vpop.f32.mrf.mxu0  ;;  %3759 = vmatprep.subr.bf16.mxu0 %v4822_v19  ;;  %v4934_v12 = vcombine.high %v483_v56, %v487_v1  ;;  %v4933_v22 = vcombine.low %v483_v56, %v487_v1  ;;  %v339_v31 = vld [vmem:[#allocation5 + $0x850] sm:$0xff] }
 0x175   :  { %3811 = vmatpush1.bf16.msra.mxu1 %v4957_v18  ;;  %v5413_v39 = vadd.f32 %v3422_v59, %v3370_v33  ;;  %v3372_v40 = vadd.f32 %v3371_v51, %v5388_v11  ;;  %v4805_v18 = vcombine.low %v355_v50, %v359_v52  ;;  %v343_v32 = vld [vmem:[#allocation5 + $0x870] sm:$0xff]  ;;  %v4925_v51 = vcombine.low %v475_v44, %v479_v15 }
 0x176   :  { %v3424_v41 = vpop.f32.mrf.mxu1  ;;  %3812 = vmatprep.subr.bf16.mxu1 %v4950_v26  ;;  %v3375_v53 = vpop.f32.mrf.mxu0  ;;  %3692 = vmatmul.mubr.bf16.gmra.mxu0 %v5324_v43  ;;  %v471_v33 = vld [vmem:[#allocation5 + $0xc70] sm:$0xff]  ;;  %v4789_v50 = vcombine.low %v339_v31, %v343_v32 }
 0x177   :  { %v5417_v57 = vadd.f32 %v3424_v41, %v3372_v40  ;;  %v3376_v0 = vadd.f32 %v3375_v53, %v5392_v46  ;;  %3760 = vmatpush1.bf16.msra.mxu0 %v4821_v60  ;;  %3787 = vmatprep.mubr.bf16.mxu0 %v5336_v61  ;;  %v4797_v60 = vcombine.low %v347_v13, %v351_v42  ;;  %v335_v40 = vld [vmem:[#allocation5 + $0x830] sm:$0xff] }
 0x178   :  { %v3428_v2 = vpop.f32.mrf.mxu1  ;;  %3745 = vmatmul.mubr.bf16.gmra.mxu1 %v5332_v48  ;;  %v3377_v11 = vpop.f32.mrf.mxu0  ;;  %3761 = vmatprep.subr.bf16.mxu0 %v4814_v38  ;;  %v459_v41 = vld [vmem:[#allocation5 + $0xc10] sm:$0xff] }
 0x179   :  { %3813 = vmatpush1.bf16.msra.mxu1 %v4949_v36  ;;  %v3378_v8 = vadd.f32 %v3377_v11, %v5395_v29  ;;  %v5422_v9 = vadd.f32 %v3428_v2, %v3376_v0  ;;  %3840 = vmatprep.mubr.bf16.mxu1 %v5341_v62  ;;  %v4790_v36 = vcombine.high %v339_v31, %v343_v32  ;;  %v451_v1 = vld [vmem:[#allocation5 + $0xbd0] sm:$0xff] }
 0x17a   :  { %v3430_v10 = vpop.f32.mrf.mxu1  ;;  %3814 = vmatprep.subr.bf16.mxu1 %v4942_v49  ;;  %v3379_v46 = vpop.f32.mrf.mxu0  ;;  %v463_v49 = vld [vmem:[#allocation5 + $0xc30] sm:$0xff] }
 0x17b   :  { %v3380_v16 = vadd.f32 %v3379_v46, %v5398_v34  ;;  %v5427_v45 = vadd.f32 %v3430_v10, %v3378_v8  ;;  %3762 = vmatpush1.bf16.msra.mxu0 %v4813_v4  ;;  %v467_v34 = vld [vmem:[#allocation5 + $0xc50] sm:$0xff]  ;;  %v4910_v56 = vcombine.high %v459_v41, %v463_v49 }
 0x17c   :  { %v3432_v29 = vpop.f32.mrf.mxu1  ;;  %v3381_v19 = vpop.f32.mrf.mxu0  ;;  %3763 = vmatprep.subr.bf16.mxu0 %v4806_v6  ;;  %v4918_v38 = vcombine.high %v467_v34, %v471_v33  ;;  %v4917_v52 = vcombine.low %v467_v34, %v471_v33  ;;  %v455_v0 = vld [vmem:[#allocation5 + $0xbf0] sm:$0xff] }
 0x17d   :  { %3815 = vmatpush1.bf16.msra.mxu1 %v4941_v5  ;;  %v3382_v26 = vadd.f32 %v3381_v19, %v5400_v47  ;;  %v5430_v27 = vadd.f32 %v3432_v29, %v3380_v16  ;;  %v331_v47 = vld [vmem:[#allocation5 + $0x810] sm:$0xff]  ;;  %v4909_v5 = vcombine.low %v459_v41, %v463_v49  ;;  %v4902_v6 = vcombine.high %v451_v1, %v455_v0 }
 0x17e   :  { %v3434_v30 = vpop.f32.mrf.mxu1  ;;  %3816 = vmatprep.subr.bf16.mxu1 %v4934_v12  ;;  %v4782_v53 = vcombine.high %v331_v47, %v335_v40  ;;  %v579_v2 = vld [vmem:[#allocation5 + $0xfd0] sm:$0xff]  ;;  %v4781_v11 = vcombine.low %v331_v47, %v335_v40  ;;  %v4901_v46 = vcombine.low %v451_v1, %v455_v0 }
 0x17f   :  { %v5432_v59 = vadd.f32 %v3434_v30, %v3382_v26  ;;  %3764 = vmatpush1.bf16.msra.mxu0 %v4805_v18  ;;  %v583_v4 = vld [vmem:[#allocation5 + $0xff0] sm:$0xff] }
 0x180   :  { %3765 = vmatprep.subr.bf16.mxu0 %v4798_v24  ;;  %v5030_v8 = vcombine.high %v579_v2, %v583_v4  ;;  %v443_v10 = vld [vmem:[#allocation5 + $0xb90] sm:$0xff]  ;;  %v5029_v44 = vcombine.low %v579_v2, %v583_v4 }
 0x181   :  { %3817 = vmatpush1.bf16.msra.mxu1 %v4933_v22  ;;  %v447_v12 = vld [vmem:[#allocation5 + $0xbb0] sm:$0xff] }
 0x182   :  { %3818 = vmatprep.subr.bf16.mxu1 %v4926_v37  ;;  %v571_v13 = vld [vmem:[#allocation5 + $0xf90] sm:$0xff]  ;;  %v4894_v15 = vcombine.high %v443_v10, %v447_v12  ;;  %v4893_v24 = vcombine.low %v443_v10, %v447_v12 }
 0x183   :  { %3766 = vmatpush1.bf16.msra.mxu0 %v4797_v60  ;;  %v575_v42 = vld [vmem:[#allocation5 + $0xfb0] sm:$0xff] }
 0x184   :  { %3767 = vmatprep.subr.bf16.mxu0 %v4790_v36  ;;  %v5022_v16 = vcombine.high %v571_v13, %v575_v42  ;;  %v435_v29 = vld [vmem:[#allocation5 + $0xb50] sm:$0xff]  ;;  %v5021_v26 = vcombine.low %v571_v13, %v575_v42 }
 0x185   :  { %3819 = vmatpush1.bf16.msra.mxu1 %v4925_v51  ;;  %v439_v18 = vld [vmem:[#allocation5 + $0xb70] sm:$0xff] }
 0x186   :  { %3820 = vmatprep.subr.bf16.mxu1 %v4918_v38  ;;  %v563_v19 = vld [vmem:[#allocation5 + $0xf50] sm:$0xff]  ;;  %v4886_v30 = vcombine.high %v435_v29, %v439_v18  ;;  %v4885_v60 = vcombine.low %v435_v29, %v439_v18 }
 0x187   :  { %3768 = vmatpush1.bf16.msra.mxu0 %v4789_v50  ;;  %v567_v22 = vld [vmem:[#allocation5 + $0xf70] sm:$0xff] }
 0x188   :  { %3769 = vmatprep.subr.bf16.mxu0 %v4782_v53  ;;  %v5014_v37 = vcombine.high %v563_v19, %v567_v22  ;;  %v427_v31 = vld [vmem:[#allocation5 + $0xb10] sm:$0xff]  ;;  %v5013_v51 = vcombine.low %v563_v19, %v567_v22 }
 0x189   :  { %3821 = vmatpush1.bf16.msra.mxu1 %v4917_v52  ;;  %v431_v32 = vld [vmem:[#allocation5 + $0xb30] sm:$0xff] }
 0x18a   :  { %3822 = vmatprep.subr.bf16.mxu1 %v4910_v56  ;;  %v555_v34 = vld [vmem:[#allocation5 + $0xf10] sm:$0xff]  ;;  %v4878_v36 = vcombine.high %v427_v31, %v431_v32  ;;  %v4877_v50 = vcombine.low %v427_v31, %v431_v32  ;;  %v132_v31 = vld [vmem:[#allocation5 + $0x1d8] sm:$0xff] }
 0x18b   :  { %3770 = vmatpush1.bf16.msra.mxu0 %v4781_v11  ;;  %v559_v33 = vld [vmem:[#allocation5 + $0xf30] sm:$0xff]  ;;  %v136_v32 = vld [vmem:[#allocation5 + $0x1f8] sm:$0xff] }
 0x18c   :  { %3771 = vmatprep.subr.bf16.mxu0 %v4902_v6  ;;  %v5006_v38 = vcombine.high %v555_v34, %v559_v33  ;;  %v419_v47 = vld [vmem:[#allocation5 + $0xad0] sm:$0xff]  ;;  %v5005_v52 = vcombine.low %v555_v34, %v559_v33  ;;  %v260_v34 = vld [vmem:[#allocation5 + $0x5d8] sm:$0xff] }
 0x18d   :  { %3823 = vmatpush1.bf16.msra.mxu1 %v4909_v5  ;;  %v423_v40 = vld [vmem:[#allocation5 + $0xaf0] sm:$0xff]  ;;  %v264_v33 = vld [vmem:[#allocation5 + $0x5f8] sm:$0xff] }
 0x18e   :  { %3824 = vmatprep.subr.bf16.mxu1 %v5030_v8  ;;  %v547_v41 = vld [vmem:[#allocation5 + $0xed0] sm:$0xff]  ;;  %v4870_v53 = vcombine.high %v419_v47, %v423_v40  ;;  %v4869_v11 = vcombine.low %v419_v47, %v423_v40  ;;  %v124_v47 = vld [vmem:[#allocation5 + $0x198] sm:$0xff] }
 0x18f   :  { %3772 = vmatpush2.bf16.msra.mxu0 %v4901_v46  ;;  %v551_v49 = vld [vmem:[#allocation5 + $0xef0] sm:$0xff]  ;;  %v128_v40 = vld [vmem:[#allocation5 + $0x1b8] sm:$0xff] }
 0x190   :  { %3773 = vmatprep.subr.bf16.mxu0 %v4894_v15  ;;  %v4998_v56 = vcombine.high %v547_v41, %v551_v49  ;;  %v411_v1 = vld [vmem:[#allocation5 + $0xa90] sm:$0xff]  ;;  %v4997_v5 = vcombine.low %v547_v41, %v551_v49  ;;  %v252_v41 = vld [vmem:[#allocation5 + $0x598] sm:$0xff] }
 0x191   :  { %3825 = vmatpush2.bf16.msra.mxu1 %v5029_v44  ;;  %v415_v0 = vld [vmem:[#allocation5 + $0xab0] sm:$0xff]  ;;  %v256_v49 = vld [vmem:[#allocation5 + $0x5b8] sm:$0xff] }
 0x192   :  { %3826 = vmatprep.subr.bf16.mxu1 %v5022_v16  ;;  %v539_v2 = vld [vmem:[#allocation5 + $0xe90] sm:$0xff]  ;;  %v4862_v6 = vcombine.high %v411_v1, %v415_v0  ;;  %v4861_v46 = vcombine.low %v411_v1, %v415_v0  ;;  %v116_v1 = vld [vmem:[#allocation5 + $0x158] sm:$0xff] }
 0x193   :  { %3774 = vmatpush2.bf16.msra.mxu0 %v4893_v24  ;;  %v543_v4 = vld [vmem:[#allocation5 + $0xeb0] sm:$0xff]  ;;  %v120_v0 = vld [vmem:[#allocation5 + $0x178] sm:$0xff] }
 0x194   :  { %3775 = vmatprep.subr.bf16.mxu0 %v4886_v30  ;;  %v4990_v8 = vcombine.high %v539_v2, %v543_v4  ;;  %v403_v10 = vld [vmem:[#allocation5 + $0xa50] sm:$0xff]  ;;  %v4989_v44 = vcombine.low %v539_v2, %v543_v4  ;;  %v244_v4 = vld [vmem:[#allocation5 + $0x558] sm:$0xff] }
 0x195   :  { %3827 = vmatpush2.bf16.msra.mxu1 %v5021_v26  ;;  %v407_v12 = vld [vmem:[#allocation5 + $0xa70] sm:$0xff] }
 0x196   :  { %3828 = vmatprep.subr.bf16.mxu1 %v5014_v37  ;;  %v531_v13 = vld [vmem:[#allocation5 + $0xe50] sm:$0xff]  ;;  %v4854_v15 = vcombine.high %v403_v10, %v407_v12  ;;  %v4853_v24 = vcombine.low %v403_v10, %v407_v12  ;;  %v4703_v12 = vcombine.low %v252_v41, %v256_v49 }
 0x197   :  { %3776 = vmatpush2.bf16.msra.mxu0 %v4885_v60  ;;  %v535_v42 = vld [vmem:[#allocation5 + $0xe70] sm:$0xff] }
 0x198   :  { %3777 = vmatprep.subr.bf16.mxu0 %v4878_v36  ;;  %v4982_v16 = vcombine.high %v531_v13, %v535_v42  ;;  %v395_v29 = vld [vmem:[#allocation5 + $0xa10] sm:$0xff]  ;;  %v4981_v26 = vcombine.low %v531_v13, %v535_v42  ;;  %v4584_v36 = vcombine.high %v132_v31, %v136_v32  ;;  %v4568_v13 = vcombine.high %v116_v1, %v120_v0 }
 0x199   :  { %3829 = vmatpush2.bf16.msra.mxu1 %v5013_v51  ;;  %v399_v18 = vld [vmem:[#allocation5 + $0xa30] sm:$0xff] }
 0x19a   :  { %3830 = vmatprep.subr.bf16.mxu1 %v5006_v38  ;;  %v523_v19 = vld [vmem:[#allocation5 + $0xe10] sm:$0xff]  ;;  %v4846_v30 = vcombine.high %v395_v29, %v399_v18  ;;  %v4845_v60 = vcombine.low %v395_v29, %v399_v18  ;;  %v4712_v38 = vcombine.high %v260_v34, %v264_v33  ;;  %v236_v18 = vld [vmem:[#allocation5 + $0x518] sm:$0xff] }
 0x19b   :  { %3778 = vmatpush2.bf16.msra.mxu0 %v4877_v50  ;;  %v527_v22 = vld [vmem:[#allocation5 + $0xe30] sm:$0xff]  ;;  %v4583_v50 = vcombine.low %v132_v31, %v136_v32 }
 0x19c   :  { %3779 = vmatprep.subr.bf16.mxu0 %v4870_v53  ;;  %v4974_v37 = vcombine.high %v523_v19, %v527_v22  ;;  %v4973_v51 = vcombine.low %v523_v19, %v527_v22  ;;  %v4576_v53 = vcombine.high %v124_v47, %v128_v40  ;;  %v240_v19 = vld [vmem:[#allocation5 + $0x538] sm:$0xff] }
 0x19d   :  { %3831 = vmatpush2.bf16.msra.mxu1 %v5005_v52  ;;  %v4711_v52 = vcombine.low %v260_v34, %v264_v33  ;;  %v4688_v34 = vcombine.high %v236_v18, %v240_v19  ;;  %v100_v33 = vld [vmem:[#allocation5 + $0xd8] sm:$0xff] }
 0x19e   :  { %3832 = vmatprep.subr.bf16.mxu1 %v4998_v56  ;;  %v4704_v56 = vcombine.high %v252_v41, %v256_v49  ;;  %v4687_v49 = vcombine.low %v236_v18, %v240_v19  ;;  %v212_v19 = vld [vmem:[#allocation5 + $0x458] sm:$0xff] }
 0x19f   :  { %3780 = vmatpush2.bf16.msra.mxu0 %v4869_v11  ;;  %v248_v11 = vld [vmem:[#allocation5 + $0x578] sm:$0xff] }
 0x1a0   :  { %3781 = vmatprep.subr.bf16.mxu0 %v4862_v6  ;;  %v4575_v6 = vcombine.low %v124_v47, %v128_v40 }
 0x1a1   :  { %3833 = vmatpush2.bf16.msra.mxu1 %v4997_v5 }
 0x1a2   :  { %3834 = vmatprep.subr.bf16.mxu1 %v4990_v8 }
 0x1a3   :  { %3782 = vmatpush2.bf16.msra.mxu0 %v4861_v46  ;;  %v4696_v46 = vcombine.high %v244_v4, %v248_v11 }
 0x1a4   :  { %3783 = vmatprep.subr.bf16.mxu0 %v4854_v15  ;;  %v112_v15 = vld [vmem:[#allocation5 + $0x138] sm:$0xff] }
 0x1a5   :  { %3835 = vmatpush2.bf16.msra.mxu1 %v4989_v44  ;;  %v108_v44 = vld [vmem:[#allocation5 + $0x118] sm:$0xff] }
 0x1a6   :  { %3836 = vmatprep.subr.bf16.mxu1 %v4982_v16  ;;  %v4560_v31 = vcombine.high %v108_v44, %v112_v15  ;;  %v4559_v40 = vcombine.low %v108_v44, %v112_v15 }
 0x1a7   :  { %3784 = vmatpush2.bf16.msra.mxu0 %v4853_v24  ;;  %v4567_v24 = vcombine.low %v116_v1, %v120_v0  ;;  %v92_v1 = vld [vmem:[#allocation5 + $0x98] sm:$0xff] }
 0x1a8   :  { %3785 = vmatprep.subr.bf16.mxu0 %v4846_v30  ;;  %v96_v0 = vld [vmem:[#allocation5 + $0xb8] sm:$0xff] }
 0x1a9   :  { %3837 = vmatpush2.bf16.msra.mxu1 %v4981_v26 }
 0x1aa   :  { %3838 = vmatprep.subr.bf16.mxu1 %v4974_v37  ;;  %v4695_v37 = vcombine.low %v244_v4, %v248_v11  ;;  %v220_v4 = vld [vmem:[#allocation5 + $0x498] sm:$0xff] }
 0x1ab   :  { %3786 = vmatpush2.bf16.msra.mxu0 %v4845_v60  ;;  %v104_v60 = vld [vmem:[#allocation5 + $0xf8] sm:$0xff] }
 0x1ac   :  { %3861 = vmatprep.subr.bf16.mxu0 %v4584_v36  ;;  %v228_v36 = vld [vmem:[#allocation5 + $0x4d8] sm:$0xff] }
 0x1ad   :  { %3839 = vmatpush2.bf16.msra.mxu1 %v4973_v51  ;;  %v224_v11 = vld [vmem:[#allocation5 + $0x4b8] sm:$0xff] }
 0x1ae   :  { %3914 = vmatprep.subr.bf16.mxu1 %v4712_v38  ;;  %v3471_v2 = vpop.f32.mrf.mxu0  ;;  %3788 = vmatmul.mubr.bf16.vlgmr.msra.gmra.mxu0 %v5348_v3  ;;  %v232_v38 = vld [vmem:[#allocation5 + $0x4f8] sm:$0xff]  ;;  %v4672_v15 = vcombine.high %v220_v4, %v224_v11 }
 0x1af   :  { %3862 = vmatpush1.bf16.msra.mxu0 %v4583_v50  ;;  %3797 = vmatprep.mubr.bf16.mxu0 %v5354_v14  ;;  %v4552_v50 = vcombine.high %v100_v33, %v104_v60 }
 0x1b0   :  { %v3524_v5 = vpop.f32.mrf.mxu1  ;;  %3841 = vmatmul.mubr.bf16.vlgmr.msra.gmra.mxu1 %v5352_v7  ;;  %v3473_v10 = vpop.f32.mrf.mxu0  ;;  %3863 = vmatprep.subr.bf16.mxu0 %v4576_v53 }
 0x1b1   :  { %v5436_v8 = vadd.f32 %v3524_v5, %v3471_v2  ;;  %3915 = vmatpush1.bf16.msra.mxu1 %v4711_v52  ;;  %3850 = vmatprep.mubr.bf16.mxu1 %v5357_v17 }
 0x1b2   :  { %v3526_v42 = vpop.f32.mrf.mxu1  ;;  %3916 = vmatprep.subr.bf16.mxu1 %v4704_v56  ;;  %v3475_v29 = vpop.f32.mrf.mxu0  ;;  %v4680_v56 = vcombine.high %v228_v36, %v232_v38 }
 0x1b3   :  { %v5439_v16 = vadd.f32 %v3526_v42, %v3473_v10  ;;  %3864 = vmatpush1.bf16.msra.mxu0 %v4575_v6  ;;  %v4551_v10 = vcombine.low %v100_v33, %v104_v60  ;;  %v4544_v42 = vcombine.high %v92_v1, %v96_v0  ;;  %v204_v33 = vld [vmem:[#allocation5 + $0x418] sm:$0xff] }
 0x1b4   :  { %v3528_v22 = vpop.f32.mrf.mxu1  ;;  %v3477_v30 = vpop.f32.mrf.mxu0  ;;  %3865 = vmatprep.subr.bf16.mxu0 %v4568_v13  ;;  %v4679_v13 = vcombine.low %v228_v36, %v232_v38  ;;  %v208_v60 = vld [vmem:[#allocation5 + $0x438] sm:$0xff] }
 0x1b5   :  { %v5442_v26 = vadd.f32 %v3528_v22, %v3475_v29  ;;  %3917 = vmatpush1.bf16.msra.mxu1 %v4703_v12  ;;  %v88_v29 = vld [vmem:[#allocation5 + $0x78] sm:$0xff] }
 0x1b6   :  { %v3530_v32 = vpop.f32.mrf.mxu1  ;;  %3918 = vmatprep.subr.bf16.mxu1 %v4696_v46  ;;  %3798 = vmatmul.mubr.bf16.gmra.mxu0 %v5361_v23  ;;  %v3481_v47 = vpop.f32.mrf.mxu0  ;;  %v216_v22 = vld [vmem:[#allocation5 + $0x478] sm:$0xff] }
 0x1b7   :  { %v5444_v51 = vadd.f32 %v3530_v32, %v3477_v30  ;;  %3866 = vmatpush1.bf16.msra.mxu0 %v4567_v24  ;;  %3893 = vmatprep.mubr.bf16.mxu0 %v5294_v58  ;;  %v84_v58 = vld [vmem:[#allocation5 + $0x58] sm:$0xff]  ;;  %v4671_v30 = vcombine.low %v220_v4, %v224_v11  ;;  %v4663_v38 = vcombine.low %v212_v19, %v216_v22 }
 0x1b8   :  { %3851 = vmatmul.mubr.bf16.gmra.mxu1 %v5364_v28  ;;  %v3534_v41 = vpop.f32.mrf.mxu1  ;;  %3867 = vmatprep.subr.bf16.mxu0 %v4560_v31  ;;  %v3483_v53 = vpop.f32.mrf.mxu0  ;;  %v4664_v31 = vcombine.high %v212_v19, %v216_v22  ;;  %v76_v32 = vld [vmem:[#allocation5 + $0x18] sm:$0xff]  ;;  %v4535_v36 = vcombine.low %v84_v58, %v88_v29 }
 0x1b9   :  { %3919 = vmatpush1.bf16.msra.mxu1 %v4695_v37  ;;  %v5448_v52 = vadd.f32 %v3534_v41, %v3481_v47  ;;  %3946 = vmatprep.mubr.bf16.mxu1 %v5302_v63  ;;  %v4543_v63 = vcombine.low %v92_v1, %v96_v0  ;;  %v4536_v37 = vcombine.high %v84_v58, %v88_v29  ;;  %v196_v41 = vld [vmem:[#allocation5 + $0x3d8] sm:$0xff] }
 0x1ba   :  { %3920 = vmatprep.subr.bf16.mxu1 %v4688_v34  ;;  %v3536_v2 = vpop.f32.mrf.mxu1  ;;  %v3485_v6 = vpop.f32.mrf.mxu0  ;;  %v80_v34 = vld [vmem:[#allocation5 + $0x38] sm:$0xff]  ;;  %v4655_v1 = vcombine.low %v204_v33, %v208_v60 }
 0x1bb   :  { %v5451_v5 = vadd.f32 %v3536_v2, %v3483_v53  ;;  %3868 = vmatpush1.bf16.msra.mxu0 %v4559_v40  ;;  %v4528_v47 = vcombine.high %v76_v32, %v80_v34  ;;  %v4656_v40 = vcombine.high %v204_v33, %v208_v60  ;;  %v328_v53 = vld [vmem:[#allocation5 + $0x7f8] sm:$0xff] }
 0x1bc   :  { %v3538_v12 = vpop.f32.mrf.mxu1  ;;  %3869 = vmatprep.subr.bf16.mxu0 %v4552_v50  ;;  %v3487_v44 = vpop.f32.mrf.mxu0  ;;  %v324_v50 = vld [vmem:[#allocation5 + $0x7d8] sm:$0xff] }
 0x1bd   :  { %3921 = vmatpush1.bf16.msra.mxu1 %v4687_v49  ;;  %v5454_v46 = vadd.f32 %v3538_v12, %v3485_v6  ;;  %v200_v49 = vld [vmem:[#allocation5 + $0x3f8] sm:$0xff]  ;;  %v4776_v2 = vcombine.high %v324_v50, %v328_v53 }
 0x1be   :  { %3922 = vmatprep.subr.bf16.mxu1 %v4680_v56  ;;  %v3540_v18 = vpop.f32.mrf.mxu1  ;;  %v4527_v56 = vcombine.low %v76_v32, %v80_v34  ;;  %v4648_v0 = vcombine.high %v196_v41, %v200_v49  ;;  %v188_v4 = vld [vmem:[#allocation5 + $0x398] sm:$0xff]  ;;  %v4647_v12 = vcombine.low %v196_v41, %v200_v49 }
 0x1bf   :  { %v5456_v24 = vadd.f32 %v3540_v18, %v3487_v44  ;;  %3870 = vmatpush1.bf16.msra.mxu0 %v4551_v10  ;;  %v192_v11 = vld [vmem:[#allocation5 + $0x3b8] sm:$0xff] }
 0x1c0   :  { %3871 = vmatprep.subr.bf16.mxu0 %v4544_v42  ;;  %v316_v6 = vld [vmem:[#allocation5 + $0x798] sm:$0xff]  ;;  %v4640_v42 = vcombine.high %v188_v4, %v192_v11  ;;  %v4639_v19 = vcombine.low %v188_v4, %v192_v11 }
 0x1c1   :  { %3923 = vmatpush1.bf16.msra.mxu1 %v4679_v13  ;;  %v320_v10 = vld [vmem:[#allocation5 + $0x7b8] sm:$0xff]  ;;  %v4775_v13 = vcombine.low %v324_v50, %v328_v53 }
 0x1c2   :  { %3924 = vmatprep.subr.bf16.mxu1 %v4672_v15  ;;  %v4768_v44 = vcombine.high %v316_v6, %v320_v10  ;;  %v180_v15 = vld [vmem:[#allocation5 + $0x358] sm:$0xff]  ;;  %v4767_v22 = vcombine.low %v316_v6, %v320_v10 }
 0x1c3   :  { %3872 = vmatpush1.bf16.msra.mxu0 %v4543_v63  ;;  %v184_v58 = vld [vmem:[#allocation5 + $0x378] sm:$0xff] }
 0x1c4   :  { %3873 = vmatprep.subr.bf16.mxu0 %v4536_v37  ;;  %v308_v29 = vld [vmem:[#allocation5 + $0x758] sm:$0xff]  ;;  %v4632_v63 = vcombine.high %v180_v15, %v184_v58  ;;  %v4631_v33 = vcombine.low %v180_v15, %v184_v58 }
 0x1c5   :  { %3925 = vmatpush1.bf16.msra.mxu1 %v4671_v30  ;;  %v312_v18 = vld [vmem:[#allocation5 + $0x778] sm:$0xff] }
 0x1c6   :  { %3926 = vmatprep.subr.bf16.mxu1 %v4664_v31  ;;  %v4760_v30 = vcombine.high %v308_v29, %v312_v18  ;;  %v172_v37 = vld [vmem:[#allocation5 + $0x318] sm:$0xff]  ;;  %v4759_v60 = vcombine.low %v308_v29, %v312_v18 }
 0x1c7   :  { %3874 = vmatpush1.bf16.msra.mxu0 %v4535_v36  ;;  %v176_v31 = vld [vmem:[#allocation5 + $0x338] sm:$0xff] }
 0x1c8   :  { %3875 = vmatprep.subr.bf16.mxu0 %v4528_v47  ;;  %v300_v32 = vld [vmem:[#allocation5 + $0x718] sm:$0xff]  ;;  %v4624_v36 = vcombine.high %v172_v37, %v176_v31  ;;  %v4623_v50 = vcombine.low %v172_v37, %v176_v31 }
 0x1c9   :  { %3927 = vmatpush1.bf16.msra.mxu1 %v4663_v38  ;;  %v304_v34 = vld [vmem:[#allocation5 + $0x738] sm:$0xff] }
 0x1ca   :  { %3928 = vmatprep.subr.bf16.mxu1 %v4656_v40  ;;  %v4752_v38 = vcombine.high %v300_v32, %v304_v34  ;;  %v164_v47 = vld [vmem:[#allocation5 + $0x2d8] sm:$0xff]  ;;  %v4751_v53 = vcombine.low %v300_v32, %v304_v34 }
 0x1cb   :  { %3876 = vmatpush1.bf16.msra.mxu0 %v4527_v56  ;;  %v168_v40 = vld [vmem:[#allocation5 + $0x2f8] sm:$0xff] }
 0x1cc   :  { %3877 = vmatprep.subr.bf16.mxu0 %v4648_v0  ;;  %v292_v41 = vld [vmem:[#allocation5 + $0x6d8] sm:$0xff]  ;;  %v4616_v56 = vcombine.high %v164_v47, %v168_v40  ;;  %v4615_v6 = vcombine.low %v164_v47, %v168_v40 }
 0x1cd   :  { %3929 = vmatpush1.bf16.msra.mxu1 %v4655_v1  ;;  %v296_v49 = vld [vmem:[#allocation5 + $0x6f8] sm:$0xff] }
 0x1ce   :  { %3930 = vmatprep.subr.bf16.mxu1 %v4776_v2  ;;  %v4744_v1 = vcombine.high %v292_v41, %v296_v49  ;;  %v156_v0 = vld [vmem:[#allocation5 + $0x298] sm:$0xff]  ;;  %v4743_v10 = vcombine.low %v292_v41, %v296_v49 }
 0x1cf   :  { %3878 = vmatpush2.bf16.msra.mxu0 %v4647_v12  ;;  %v160_v2 = vld [vmem:[#allocation5 + $0x2b8] sm:$0xff] }
 0x1d0   :  { %3879 = vmatprep.subr.bf16.mxu0 %v4640_v42  ;;  %v284_v4 = vld [vmem:[#allocation5 + $0x698] sm:$0xff]  ;;  %v4608_v12 = vcombine.high %v156_v0, %v160_v2  ;;  %v4607_v29 = vcombine.low %v156_v0, %v160_v2 }
 0x1d1   :  { %3931 = vmatpush2.bf16.msra.mxu1 %v4775_v13  ;;  %v288_v11 = vld [vmem:[#allocation5 + $0x6b8] sm:$0xff] }
 0x1d2   :  { %3932 = vmatprep.subr.bf16.mxu1 %v4768_v44  ;;  %v4736_v13 = vcombine.high %v284_v4, %v288_v11  ;;  %v148_v42 = vld [vmem:[#allocation5 + $0x258] sm:$0xff]  ;;  %v4735_v18 = vcombine.low %v284_v4, %v288_v11 }
 0x1d3   :  { %3880 = vmatpush2.bf16.msra.mxu0 %v4639_v19  ;;  %v152_v44 = vld [vmem:[#allocation5 + $0x278] sm:$0xff] }
 0x1d4   :  { %3881 = vmatprep.subr.bf16.mxu0 %v4632_v63  ;;  %v276_v15 = vld [vmem:[#allocation5 + $0x658] sm:$0xff]  ;;  %v4600_v19 = vcombine.high %v148_v42, %v152_v44  ;;  %v4599_v32 = vcombine.low %v148_v42, %v152_v44 }
 0x1d5   :  { %3933 = vmatpush2.bf16.msra.mxu1 %v4767_v22  ;;  %v280_v58 = vld [vmem:[#allocation5 + $0x678] sm:$0xff] }
 0x1d6   :  { %3934 = vmatprep.subr.bf16.mxu1 %v4760_v30  ;;  %v4728_v22 = vcombine.high %v276_v15, %v280_v58  ;;  %v140_v63 = vld [vmem:[#allocation5 + $0x218] sm:$0xff]  ;;  %v4727_v34 = vcombine.low %v276_v15, %v280_v58 }
 0x1d7   :  { %3882 = vmatpush2.bf16.msra.mxu0 %v4631_v33  ;;  %v144_v30 = vld [vmem:[#allocation5 + $0x238] sm:$0xff] }
 0x1d8   :  { %3883 = vmatprep.subr.bf16.mxu0 %v4624_v36  ;;  %v268_v37 = vld [vmem:[#allocation5 + $0x618] sm:$0xff]  ;;  %v4592_v33 = vcombine.high %v140_v63, %v144_v30  ;;  %v4591_v41 = vcombine.low %v140_v63, %v144_v30 }
 0x1d9   :  { %3935 = vmatpush2.bf16.msra.mxu1 %v4759_v60  ;;  %v272_v31 = vld [vmem:[#allocation5 + $0x638] sm:$0xff] }
 0x1da   :  { %3936 = vmatprep.subr.bf16.mxu1 %v4752_v38  ;;  %v4720_v60 = vcombine.high %v268_v37, %v272_v31  ;;  %v388_v36 = vld [vmem:[#allocation5 + $0x9d8] sm:$0xff]  ;;  %v4719_v49 = vcombine.low %v268_v37, %v272_v31 }
 0x1db   :  { %3884 = vmatpush2.bf16.msra.mxu0 %v4623_v50  ;;  %v392_v38 = vld [vmem:[#allocation5 + $0x9f8] sm:$0xff] }
 0x1dc   :  { %3885 = vmatprep.subr.bf16.mxu0 %v4616_v56  ;;  %v516_v47 = vld [vmem:[#allocation5 + $0xdd8] sm:$0xff]  ;;  %v4840_v50 = vcombine.high %v388_v36, %v392_v38  ;;  %v4839_v4 = vcombine.low %v388_v36, %v392_v38 }
 0x1dd   :  { %3937 = vmatpush2.bf16.msra.mxu1 %v4751_v53  ;;  %v520_v40 = vld [vmem:[#allocation5 + $0xdf8] sm:$0xff] }
 0x1de   :  { %3938 = vmatprep.subr.bf16.mxu1 %v4744_v1  ;;  %v4968_v53 = vcombine.high %v516_v47, %v520_v40  ;;  %v380_v56 = vld [vmem:[#allocation5 + $0x998] sm:$0xff]  ;;  %v4967_v11 = vcombine.low %v516_v47, %v520_v40 }
 0x1df   :  { %3886 = vmatpush2.bf16.msra.mxu0 %v4615_v6  ;;  %v384_v1 = vld [vmem:[#allocation5 + $0x9b8] sm:$0xff] }
 0x1e0   :  { %3887 = vmatprep.subr.bf16.mxu0 %v4608_v12  ;;  %v508_v0 = vld [vmem:[#allocation5 + $0xd98] sm:$0xff]  ;;  %v4832_v6 = vcombine.high %v380_v56, %v384_v1 }
 0x1e1   :  { %3939 = vmatpush2.bf16.msra.mxu1 %v4743_v10  ;;  %v512_v2 = vld [vmem:[#allocation5 + $0xdb8] sm:$0xff] }
 0x1e2   :  { %3940 = vmatprep.subr.bf16.mxu1 %v4736_v13  ;;  %v4960_v10 = vcombine.high %v508_v0, %v512_v2  ;;  %v372_v12 = vld [vmem:[#allocation5 + $0x958] sm:$0xff] }
 0x1e3   :  { %3888 = vmatpush2.bf16.msra.mxu0 %v4607_v29  ;;  %v376_v13 = vld [vmem:[#allocation5 + $0x978] sm:$0xff] }
 0x1e4   :  { %3889 = vmatprep.subr.bf16.mxu0 %v4600_v19  ;;  %v500_v44 = vld [vmem:[#allocation5 + $0xd58] sm:$0xff]  ;;  %v4824_v63 = vcombine.high %v372_v12, %v376_v13  ;;  %v4823_v47 = vcombine.low %v372_v12, %v376_v13 }
 0x1e5   :  { %3941 = vmatpush2.bf16.msra.mxu1 %v4735_v18  ;;  %v504_v15 = vld [vmem:[#allocation5 + $0xd78] sm:$0xff]  ;;  %v4831_v18 = vcombine.low %v380_v56, %v384_v1 }
 0x1e6   :  { %3942 = vmatprep.subr.bf16.mxu1 %v4728_v22  ;;  %v4959_v22 = vcombine.low %v508_v0, %v512_v2  ;;  %v4951_v40 = vcombine.low %v500_v44, %v504_v15  ;;  %v360_v56 = vld [vmem:[#allocation5 + $0x8f8] sm:$0xff] }
 0x1e7   :  { %3890 = vmatpush2.bf16.msra.mxu0 %v4599_v32  ;;  %v364_v32 = vld [vmem:[#allocation5 + $0x918] sm:$0xff] }
 0x1e8   :  { %3891 = vmatprep.subr.bf16.mxu0 %v4592_v33  ;;  %v496_v33 = vld [vmem:[#allocation5 + $0xd38] sm:$0xff] }
 0x1e9   :  { %3943 = vmatpush2.bf16.msra.mxu1 %v4727_v34  ;;  %v368_v34 = vld [vmem:[#allocation5 + $0x938] sm:$0xff] }
 0x1ea   :  { %3944 = vmatprep.subr.bf16.mxu1 %v4720_v60  ;;  %v484_v0 = vld [vmem:[#allocation5 + $0xcd8] sm:$0xff] }
 0x1eb   :  { %3892 = vmatpush2.bf16.msra.mxu0 %v4591_v41  ;;  %v4816_v41 = vcombine.high %v364_v32, %v368_v34 }
 0x1ec   :  { %3967 = vmatprep.subr.bf16.mxu0 %v4840_v50 }
 0x1ed   :  { %3945 = vmatpush2.bf16.msra.mxu1 %v4719_v49 }
 0x1ee   :  { %4020 = vmatprep.subr.bf16.mxu1 %v4968_v53  ;;  %v3577_v42 = vpop.f32.mrf.mxu0  ;;  %3894 = vmatmul.mubr.bf16.vlgmr.msra.gmra.mxu0 %v5308_v21  ;;  %v4952_v21 = vcombine.high %v500_v44, %v504_v15  ;;  %v348_v15 = vld [vmem:[#allocation5 + $0x898] sm:$0xff] }
 0x1ef   :  { %v3578_v58 = vadd.f32 %v3577_v42, %v5436_v8  ;;  %3968 = vmatpush1.bf16.msra.mxu0 %v4839_v4  ;;  %3903 = vmatprep.mubr.bf16.mxu0 %v5314_v55 }
 0x1f0   :  { %v3630_v29 = vpop.f32.mrf.mxu1  ;;  %3947 = vmatmul.mubr.bf16.vlgmr.msra.gmra.mxu1 %v5312_v25  ;;  %v3579_v19 = vpop.f32.mrf.mxu0  ;;  %3969 = vmatprep.subr.bf16.mxu0 %v4832_v6  ;;  %v492_v25 = vld [vmem:[#allocation5 + $0xd18] sm:$0xff]  ;;  %v4815_v6 = vcombine.low %v364_v32, %v368_v34 }
 0x1f1   :  { %4021 = vmatpush1.bf16.msra.mxu1 %v4967_v11  ;;  %v5461_v30 = vadd.f32 %v3630_v29, %v3578_v58  ;;  %v3580_v37 = vadd.f32 %v3579_v19, %v5439_v16  ;;  %3956 = vmatprep.mubr.bf16.mxu1 %v5317_v35  ;;  %v4944_v53 = vcombine.high %v492_v25, %v496_v33  ;;  %v356_v35 = vld [vmem:[#allocation5 + $0x8d8] sm:$0xff] }
 0x1f2   :  { %v3632_v31 = vpop.f32.mrf.mxu1  ;;  %4022 = vmatprep.subr.bf16.mxu1 %v4960_v10  ;;  %v3581_v8 = vpop.f32.mrf.mxu0  ;;  %v4943_v10 = vcombine.low %v492_v25, %v496_v33  ;;  %v4808_v12 = vcombine.high %v356_v35, %v360_v56  ;;  %v352_v58 = vld [vmem:[#allocation5 + $0x8b8] sm:$0xff] }
 0x1f3   :  { %v5466_v60 = vadd.f32 %v3632_v31, %v3580_v37  ;;  %v3582_v36 = vadd.f32 %v3581_v8, %v5442_v26  ;;  %3970 = vmatpush1.bf16.msra.mxu0 %v4831_v18  ;;  %v488_v26 = vld [vmem:[#allocation5 + $0xcf8] sm:$0xff]  ;;  %v4800_v31 = vcombine.high %v348_v15, %v352_v58 }
 0x1f4   :  { %v3634_v38 = vpop.f32.mrf.mxu1  ;;  %v3583_v16 = vpop.f32.mrf.mxu0  ;;  %3971 = vmatprep.subr.bf16.mxu0 %v4824_v63  ;;  %v476_v29 = vld [vmem:[#allocation5 + $0xc98] sm:$0xff]  ;;  %v4935_v37 = vcombine.low %v484_v0, %v488_v26 }
 0x1f5   :  { %4023 = vmatpush1.bf16.msra.mxu1 %v4959_v22  ;;  %v5469_v49 = vadd.f32 %v3634_v38, %v3582_v36  ;;  %v3584_v55 = vadd.f32 %v3583_v16, %v5444_v51  ;;  %v480_v18 = vld [vmem:[#allocation5 + $0xcb8] sm:$0xff]  ;;  %v4807_v22 = vcombine.low %v356_v35, %v360_v56  ;;  %v4799_v36 = vcombine.low %v348_v15, %v352_v58 }
 0x1f6   :  { %v3636_v50 = vpop.f32.mrf.mxu1  ;;  %4024 = vmatprep.subr.bf16.mxu1 %v4952_v21  ;;  %v3587_v1 = vpop.f32.mrf.mxu0  ;;  %3904 = vmatmul.mubr.bf16.gmra.mxu0 %v5324_v43  ;;  %v4936_v43 = vcombine.high %v484_v0, %v488_v26  ;;  %v4928_v34 = vcombine.high %v476_v29, %v480_v18  ;;  %v344_v8 = vld [vmem:[#allocation5 + $0x878] sm:$0xff]  ;;  %v4927_v38 = vcombine.low %v476_v29, %v480_v18 }
 0x1f7   :  { %v5473_v2 = vadd.f32 %v3636_v50, %v3584_v55  ;;  %v3588_v4 = vadd.f32 %v3587_v1, %v5448_v52  ;;  %3972 = vmatpush1.bf16.msra.mxu0 %v4823_v47  ;;  %3999 = vmatprep.mubr.bf16.mxu0 %v5336_v61  ;;  %v472_v25 = vld [vmem:[#allocation5 + $0xc78] sm:$0xff] }
 0x1f8   :  { %v3640_v11 = vpop.f32.mrf.mxu1  ;;  %3957 = vmatmul.mubr.bf16.gmra.mxu1 %v5332_v48  ;;  %v3589_v51 = vpop.f32.mrf.mxu0  ;;  %3973 = vmatprep.subr.bf16.mxu0 %v4816_v41  ;;  %v460_v41 = vld [vmem:[#allocation5 + $0xc18] sm:$0xff] }
 0x1f9   :  { %4025 = vmatpush1.bf16.msra.mxu1 %v4951_v40  ;;  %v3590_v13 = vadd.f32 %v3589_v51, %v5451_v5  ;;  %v5478_v42 = vadd.f32 %v3640_v11, %v3588_v4  ;;  %4052 = vmatprep.mubr.bf16.mxu1 %v5341_v62  ;;  %v340_v62 = vld [vmem:[#allocation5 + $0x858] sm:$0xff] }
 0x1fa   :  { %v3642_v44 = vpop.f32.mrf.mxu1  ;;  %4026 = vmatprep.subr.bf16.mxu1 %v4944_v53  ;;  %v3591_v52 = vpop.f32.mrf.mxu0  ;;  %v4792_v47 = vcombine.high %v340_v62, %v344_v8  ;;  %v336_v40 = vld [vmem:[#allocation5 + $0x838] sm:$0xff]  ;;  %v4791_v50 = vcombine.low %v340_v62, %v344_v8 }
 0x1fb   :  { %v3592_v48 = vadd.f32 %v3591_v52, %v5454_v46  ;;  %v5483_v19 = vadd.f32 %v3642_v44, %v3590_v13  ;;  %3974 = vmatpush1.bf16.msra.mxu0 %v4815_v6  ;;  %v468_v46 = vld [vmem:[#allocation5 + $0xc58] sm:$0xff] }
 0x1fc   :  { %v3644_v5 = vpop.f32.mrf.mxu1  ;;  %v3593_v63 = vpop.f32.mrf.mxu0  ;;  %3975 = vmatprep.subr.bf16.mxu0 %v4808_v12  ;;  %v4920_v16 = vcombine.high %v468_v46, %v472_v25  ;;  %v464_v55 = vld [vmem:[#allocation5 + $0xc38] sm:$0xff]  ;;  %v4919_v53 = vcombine.low %v468_v46, %v472_v25 }
 0x1fd   :  { %4027 = vmatpush1.bf16.msra.mxu1 %v4943_v10  ;;  %v3594_v21 = vadd.f32 %v3593_v63, %v5456_v24  ;;  %v5486_v61 = vadd.f32 %v3644_v5, %v3592_v48  ;;  %v332_v24 = vld [vmem:[#allocation5 + $0x818] sm:$0xff]  ;;  %v4912_v56 = vcombine.high %v460_v41, %v464_v55  ;;  %v4911_v6 = vcombine.low %v460_v41, %v464_v55 }
 0x1fe   :  { %v3646_v32 = vpop.f32.mrf.mxu1  ;;  %4028 = vmatprep.subr.bf16.mxu1 %v4936_v43  ;;  %v4784_v35 = vcombine.high %v332_v24, %v336_v40  ;;  %v452_v1 = vld [vmem:[#allocation5 + $0xbd8] sm:$0xff]  ;;  %v4783_v11 = vcombine.low %v332_v24, %v336_v40 }
 0x1ff   :  { %v5488_v33 = vadd.f32 %v3646_v32, %v3594_v21  ;;  %3976 = vmatpush1.bf16.msra.mxu0 %v4807_v22  ;;  %v456_v0 = vld [vmem:[#allocation5 + $0xbf8] sm:$0xff] }
 0x200   :  { %3977 = vmatprep.subr.bf16.mxu0 %v4800_v31  ;;  %v580_v26 = vld [vmem:[#allocation5 + $0xfd8] sm:$0xff]  ;;  %v4904_v51 = vcombine.high %v452_v1, %v456_v0  ;;  %v4903_v15 = vcombine.low %v452_v1, %v456_v0 }
 0x201   :  { %4029 = vmatpush1.bf16.msra.mxu1 %v4935_v37  ;;  %v584_v4 = vld [vmem:[#allocation5 + $0xff8] sm:$0xff] }
 0x202   :  { %4030 = vmatprep.subr.bf16.mxu1 %v4928_v34  ;;  %v5032_v10 = vcombine.high %v580_v26, %v584_v4  ;;  %v444_v12 = vld [vmem:[#allocation5 + $0xb98] sm:$0xff]  ;;  %v5031_v58 = vcombine.low %v580_v26, %v584_v4 }
 0x203   :  { %3978 = vmatpush1.bf16.msra.mxu0 %v4799_v36  ;;  %v448_v13 = vld [vmem:[#allocation5 + $0xbb8] sm:$0xff] }
 0x204   :  { %3979 = vmatprep.subr.bf16.mxu0 %v4792_v47  ;;  %v572_v44 = vld [vmem:[#allocation5 + $0xf98] sm:$0xff]  ;;  %v4896_v52 = vcombine.high %v444_v12, %v448_v13  ;;  %v4895_v63 = vcombine.low %v444_v12, %v448_v13 }
 0x205   :  { %4031 = vmatpush1.bf16.msra.mxu1 %v4927_v38  ;;  %v576_v43 = vld [vmem:[#allocation5 + $0xfb8] sm:$0xff] }
 0x206   :  { %4032 = vmatprep.subr.bf16.mxu1 %v4920_v16  ;;  %v5024_v29 = vcombine.high %v572_v44, %v576_v43  ;;  %v436_v18 = vld [vmem:[#allocation5 + $0xb58] sm:$0xff]  ;;  %v5023_v37 = vcombine.low %v572_v44, %v576_v43 }
 0x207   :  { %3980 = vmatpush1.bf16.msra.mxu0 %v4791_v50  ;;  %v440_v48 = vld [vmem:[#allocation5 + $0xb78] sm:$0xff] }
 0x208   :  { %3981 = vmatprep.subr.bf16.mxu0 %v4784_v35  ;;  %v564_v5 = vld [vmem:[#allocation5 + $0xf58] sm:$0xff]  ;;  %v4888_v31 = vcombine.high %v436_v18, %v440_v48  ;;  %v4887_v46 = vcombine.low %v436_v18, %v440_v48 }
 0x209   :  { %4033 = vmatpush1.bf16.msra.mxu1 %v4919_v53  ;;  %v568_v22 = vld [vmem:[#allocation5 + $0xf78] sm:$0xff] }
 0x20a   :  { %4034 = vmatprep.subr.bf16.mxu1 %v4912_v56  ;;  %v5016_v21 = vcombine.high %v564_v5, %v568_v22  ;;  %v428_v32 = vld [vmem:[#allocation5 + $0xb18] sm:$0xff]  ;;  %v5015_v25 = vcombine.low %v564_v5, %v568_v22 }
 0x20b   :  { %3982 = vmatpush1.bf16.msra.mxu0 %v4783_v11  ;;  %v432_v34 = vld [vmem:[#allocation5 + $0xb38] sm:$0xff] }
 0x20c   :  { %3983 = vmatprep.subr.bf16.mxu0 %v4904_v51  ;;  %v556_v62 = vld [vmem:[#allocation5 + $0xf18] sm:$0xff]  ;;  %v4880_v36 = vcombine.high %v428_v32, %v432_v34  ;;  %v4879_v41 = vcombine.low %v428_v32, %v432_v34 }
 0x20d   :  { %4035 = vmatpush1.bf16.msra.mxu1 %v4911_v6  ;;  %v560_v8 = vld [vmem:[#allocation5 + $0xf38] sm:$0xff] }
 0x20e   :  { %4036 = vmatprep.subr.bf16.mxu1 %v5032_v10  ;;  %v5008_v38 = vcombine.high %v556_v62, %v560_v8  ;;  %v420_v47 = vld [vmem:[#allocation5 + $0xad8] sm:$0xff]  ;;  %v5007_v55 = vcombine.low %v556_v62, %v560_v8  ;;  %v5133_v62 = vld [vmem:[#allocation7 + $0x70] sm:$0xff]  }
 0x20f   :  { %3984 = vmatpush2.bf16.msra.mxu0 %v4903_v15  ;;  %v424_v16 = vld [vmem:[#allocation5 + $0xaf8] sm:$0xff]  ;;  %v5134_v8 = vld [vmem:[#allocation7 + $0x30] sm:$0xff]  }
 0x210   :  { %3985 = vmatprep.subr.bf16.mxu0 %v4896_v52  ;;  %v548_v24 = vld [vmem:[#allocation5 + $0xed8] sm:$0xff]  ;;  %v4872_v50 = vcombine.high %v420_v47, %v424_v16  ;;  %v4871_v26 = vcombine.low %v420_v47, %v424_v16  ;;  %v5149_v47 = vld [vmem:[#allocation7 + $0xf0] sm:$0xff]  }
 0x211   :  { %4037 = vmatpush2.bf16.msra.mxu1 %v5031_v58  ;;  %v552_v40 = vld [vmem:[#allocation5 + $0xef8] sm:$0xff]  ;;  %v5150_v16 = vld [vmem:[#allocation7 + $0xb0] sm:$0xff]  }
 0x212   :  { %4038 = vmatprep.subr.bf16.mxu1 %v5024_v29  ;;  %v5000_v53 = vcombine.high %v548_v24, %v552_v40  ;;  %v412_v35 = vld [vmem:[#allocation5 + $0xa98] sm:$0xff]  ;;  %v4999_v4 = vcombine.low %v548_v24, %v552_v40  ;;  %v5141_v24 = vld [vmem:[#allocation7 + $0x50] sm:$0xff]   ;;  %v5151_v40 = vld [vmem:[#allocation7 + $0xe8] sm:$0xff]  }
 0x213   :  { %3986 = vmatpush2.bf16.msra.mxu0 %v4895_v63  ;;  %v416_v56 = vld [vmem:[#allocation5 + $0xab8] sm:$0xff] }
 0x214   :  { %3987 = vmatprep.subr.bf16.mxu0 %v4888_v31  ;;  %v540_v1 = vld [vmem:[#allocation5 + $0xe98] sm:$0xff]  ;;  %v4864_v11 = vcombine.high %v412_v35, %v416_v56  ;;  %v4863_v44 = vcombine.low %v412_v35, %v416_v56  ;;  %v5145_v35 = vld [vmem:[#allocation7 + $0x40] sm:$0xff]  }
 0x215   :  { %4039 = vmatpush2.bf16.msra.mxu1 %v5023_v37  ;;  %v544_v0 = vld [vmem:[#allocation5 + $0xeb8] sm:$0xff]  ;;  %v5146_v56 = vld [vmem:[#allocation7] sm:$0xff]  }
 0x216   :  { %4040 = vmatprep.subr.bf16.mxu1 %v5016_v21  ;;  %v4992_v6 = vcombine.high %v540_v1, %v544_v0  ;;  %v404_v51 = vld [vmem:[#allocation5 + $0xa58] sm:$0xff]  ;;  %v4991_v43 = vcombine.low %v540_v1, %v544_v0 }
 0x217   :  { %3988 = vmatpush2.bf16.msra.mxu0 %v4887_v46  ;;  %v408_v10 = vld [vmem:[#allocation5 + $0xa78] sm:$0xff]  ;;  %v5135_v46 = vld [vmem:[#allocation7 + $0x68] sm:$0xff]  }
 0x218   :  { %3989 = vmatprep.subr.bf16.mxu0 %v4880_v36  ;;  %v532_v12 = vld [vmem:[#allocation5 + $0xe58] sm:$0xff]  ;;  %v4856_v15 = vcombine.high %v404_v51, %v408_v10  ;;  %v4855_v5 = vcombine.low %v404_v51, %v408_v10  ;;  %v5137_v36 = vld [vmem:[#allocation7 + $0x60] sm:$0xff]  }
 0x219   :  { %4041 = vmatpush2.bf16.msra.mxu1 %v5015_v25  ;;  %v536_v13 = vld [vmem:[#allocation5 + $0xe78] sm:$0xff]  ;;  %v5136_v25 = vld [vmem:[#allocation7 + $0x28] sm:$0xff]  }
 0x21a   :  { %4042 = vmatprep.subr.bf16.mxu1 %v5008_v38  ;;  %v4984_v58 = vcombine.high %v532_v12, %v536_v13  ;;  %v396_v52 = vld [vmem:[#allocation5 + $0xa18] sm:$0xff]  ;;  %v4983_v22 = vcombine.low %v532_v12, %v536_v13 }
 0x21b   :  { %3990 = vmatpush2.bf16.msra.mxu0 %v4879_v41  ;;  %v400_v29 = vld [vmem:[#allocation5 + $0xa38] sm:$0xff]  ;;  %v5153_v41 = vld [vmem:[#allocation7 + $0xe0] sm:$0xff]  }
 0x21c   :  { %3991 = vmatprep.subr.bf16.mxu0 %v4872_v50  ;;  %v524_v18 = vld [vmem:[#allocation5 + $0xe18] sm:$0xff]  ;;  %v4848_v63 = vcombine.high %v396_v52, %v400_v29  ;;  %v4847_v31 = vcombine.low %v396_v52, %v400_v29  ;;  %v5154_v50 = vld [vmem:[#allocation7 + $0xa0] sm:$0xff]  }
 0x21d   :  { %4043 = vmatpush2.bf16.msra.mxu1 %v5007_v55  ;;  %v528_v48 = vld [vmem:[#allocation5 + $0xe38] sm:$0xff]  ;;  %v5143_v55 = vld [vmem:[#allocation7 + $0x48] sm:$0xff]  }
 0x21e   :  { %4044 = vmatprep.subr.bf16.mxu1 %v5000_v53  ;;  %v4976_v37 = vcombine.high %v524_v18, %v528_v48  ;;  %v4975_v21 = vcombine.low %v524_v18, %v528_v48  ;;  %v5131_v32 = vld [vmem:[#allocation7 + $0x78] sm:$0xff]   ;;  %v5144_v53 = vld [vmem:[#allocation7 + $0x8] sm:$0xff]  }
 0x21f   :  { %3992 = vmatpush2.bf16.msra.mxu0 %v4871_v26  ;;  %v5132_v34 = vld [vmem:[#allocation7 + $0x38] sm:$0xff]  }
 0x220   :  { %3993 = vmatprep.subr.bf16.mxu0 %v4864_v11  ;;  %v5147_v38 = vld [vmem:[#allocation7 + $0xf8] sm:$0xff]  }
 0x221   :  { %4045 = vmatpush2.bf16.msra.mxu1 %v4999_v4 }
 0x222   :  { %4046 = vmatprep.subr.bf16.mxu1 %v4992_v6 }
 0x223   :  { %3994 = vmatpush2.bf16.msra.mxu0 %v4863_v44 }
 0x224   :  { %3995 = vmatprep.subr.bf16.mxu0 %v4856_v15 }
 0x225   :  { %4047 = vmatpush2.bf16.msra.mxu1 %v4991_v43 }
 0x226   :  { %4048 = vmatprep.subr.bf16.mxu1 %v4984_v58 }
 0x227   :  { %3996 = vmatpush2.bf16.msra.mxu0 %v4855_v5 }
 0x228   :  { %3997 = vmatprep.subr.bf16.mxu0 %v4848_v63 }
 0x229   :  { %4049 = vmatpush2.bf16.msra.mxu1 %v4983_v22 }
 0x22a   :  { %4050 = vmatprep.subr.bf16.mxu1 %v4976_v37  ;;  %v5155_v37 = vld [vmem:[#allocation7 + $0xd8] sm:$0xff]  }
 0x22b   :  { %3998 = vmatpush2.bf16.msra.mxu0 %v4847_v31 }
 0x22c   :  { %5065 = vmatprep.subr.bf16.mxu0 %v5131_v32 }
 0x22d   :  { %4051 = vmatpush2.bf16.msra.mxu1 %v4975_v21  ;;  %v5156_v21 = vld [vmem:[#allocation7 + $0x98] sm:$0xff]  }
 0x22e   :  { %4000 = vmatmul.mubr.bf16.vlgmr.msra.gmra.mxu0 %v5348_v3  ;;  %v5138_v3 = vld [vmem:[#allocation7 + $0x20] sm:$0xff]   ;;  %5093 = vmatprep.subr.bf16.mxu1 %v5147_v38  ;;  %v3683_v1 = vpop.f32.mrf.mxu0 }
 0x22f   :  { %4009 = vmatprep.mubr.bf16.mxu0 %v5354_v14  ;;  %5066 = vmatpush3.bf16.msra.mxu0 %v5132_v34  ;;  %v5139_v14 = vld [vmem:[#allocation7 + $0x58] sm:$0xff]  }
 0x230   :  { %4053 = vmatmul.mubr.bf16.vlgmr.msra.gmra.mxu1 %v5352_v7  ;;  %5067 = vmatprep.subr.bf16.mxu0 %v5133_v62  ;;  %v5148_v7 = vld [vmem:[#allocation7 + $0xb8] sm:$0xff]   ;;  %v3736_v0 = vpop.f32.mrf.mxu1  ;;  %v3685_v26 = vpop.f32.mrf.mxu0 }
 0x231   :  { %4062 = vmatprep.mubr.bf16.mxu1 %v5357_v17  ;;  %5094 = vmatpush3.bf16.msra.mxu1 %v5148_v7  ;;  %v5140_v17 = vld [vmem:[#allocation7 + $0x18] sm:$0xff]   ;;  %v3737_v29 = vadd.f32 %v3736_v0, %v3683_v1  ;;  %v5157_v7 = vld [vmem:[#allocation7 + $0xd0] sm:$0xff]  }
 0x232   :  { %5095 = vmatprep.subr.bf16.mxu1 %v5149_v47  ;;  %v3738_v4 = vpop.f32.mrf.mxu1  ;;  %v3687_v11 = vpop.f32.mrf.mxu0  ;;  %v5158_v47 = vld [vmem:[#allocation7 + $0x90] sm:$0xff]  }
 0x233   :  { %5068 = vmatpush3.bf16.msra.mxu0 %v5134_v8  ;;  %v3739_v5 = vadd.f32 %v3738_v4, %v3685_v26  ;;  %v5159_v26 = vld [vmem:[#allocation7 + $0xc8] sm:$0xff]   ;;  %v4074_v4 = vmul.f32 %v5410_v54, %v5410_v54 }
 0x234   :  { %5069 = vmatprep.subr.bf16.mxu0 %v5135_v46  ;;  %v3740_v6 = vpop.f32.mrf.mxu1  ;;  %v3689_v51 = vpop.f32.mrf.mxu0 }
 0x235   :  { %5096 = vmatpush3.bf16.msra.mxu1 %v5150_v16  ;;  %v3741_v32 = vadd.f32 %v3740_v6, %v3687_v11  ;;  %v4078_v11 = vmul.f32 %v5417_v57, %v5417_v57 }
 0x236   :  { %4010 = vmatmul.mubr.bf16.gmra.mxu0 %v5361_v23  ;;  %v5152_v23 = vld [vmem:[#allocation7 + $0xa8] sm:$0xff]   ;;  %5097 = vmatprep.subr.bf16.mxu1 %v5151_v40  ;;  %v3742_v10 = vpop.f32.mrf.mxu1  ;;  %v3693_v12 = vpop.f32.mrf.mxu0 }
 0x237   :  { %5070 = vmatpush3.bf16.msra.mxu0 %v5136_v25  ;;  %v3743_v25 = vadd.f32 %v3742_v10, %v3689_v51  ;;  %v5160_v10 = vld [vmem:[#allocation7 + $0x88] sm:$0xff]  }
 0x238   :  { %4063 = vmatmul.mubr.bf16.gmra.mxu1 %v5364_v28  ;;  %5071 = vmatprep.subr.bf16.mxu0 %v5137_v36  ;;  %v5142_v28 = vld [vmem:[#allocation7 + $0x10] sm:$0xff]   ;;  %v3746_v13 = vpop.f32.mrf.mxu1  ;;  %v3695_v44 = vpop.f32.mrf.mxu0 }
 0x239   :  { %5098 = vmatpush3.bf16.msra.mxu1 %v5152_v23  ;;  %v3747_v16 = vadd.f32 %v3746_v13, %v3693_v12 }
 0x23a   :  { %5099 = vmatprep.subr.bf16.mxu1 %v5153_v41  ;;  %v3748_v43 = vpop.f32.mrf.mxu1  ;;  %v3697_v15 = vpop.f32.mrf.mxu0  ;;  %v4077_v41 = vmul.f32 %v5413_v39, %v5413_v39 }
 0x23b   :  { %5072 = vmatpush3.bf16.msra.mxu0 %v5138_v3 }
 0x23c   :  { %5073 = vmatprep.subr.bf16.mxu0 %v5139_v14  ;;  %v3750_v58 = vpop.f32.mrf.mxu1  ;;  %v3699_v52 = vpop.f32.mrf.mxu0 }
 0x23d   :  { %5100 = vmatpush3.bf16.msra.mxu1 %v5154_v50  ;;  %v3751_v6 = vadd.f32 %v3750_v58, %v3697_v15  ;;  %v5162_v58 = vld [vmem:[#allocation7 + $0x80] sm:$0xff]  }
 0x23e   :  { %v3752_v18 = vpop.f32.mrf.mxu1  ;;  %5101 = vmatprep.subr.bf16.mxu1 %v5155_v37 }
 0x23f   :  { %5074 = vmatpush3.bf16.msra.mxu0 %v5140_v17 }
 0x240   :  { %5075 = vmatprep.subr.bf16.mxu0 %v5141_v24 }
 0x241   :  { %5102 = vmatpush3.bf16.msra.mxu1 %v5156_v21 }
 0x242   :  { %5103 = vmatprep.subr.bf16.mxu1 %v5157_v7 }
 0x243   :  { %5076 = vmatpush3.bf16.msra.mxu0 %v5142_v28  ;;  %v4073_v28 = vmul.f32 %v5405_v20, %v5405_v20 }
 0x244   :  { %5077 = vmatprep.subr.bf16.mxu0 %v5143_v55  ;;  %v3749_v55 = vadd.f32 %v3748_v43, %v3695_v44 }
 0x245   :  { %5104 = vmatpush3.bf16.msra.mxu1 %v5158_v47 }
 0x246   :  { %5105 = vmatprep.subr.bf16.mxu1 %v5159_v26 }
 0x247   :  { %5078 = vmatpush3.bf16.msra.mxu0 %v5144_v53 }
 0x248   :  { %5079 = vmatprep.subr.bf16.mxu0 %v5145_v35 }
 0x249   :  { %5106 = vmatpush3.bf16.msra.mxu1 %v5160_v10 }
 0x24b   :  { %5080 = vmatpush3.bf16.msra.mxu0 %v5146_v56 }
 0x26e   :  { %v3789_v48 = vpop.f32.mrf.mxu0 }
 0x26f   :  { %v3790_v22 = vadd.f32 %v3789_v48, %v3737_v29  ;;  %v3753_v29 = vadd.f32 %v3752_v18, %v3699_v52  ;;  %v4081_v52 = vmul.f32 %v5422_v9, %v5422_v9  ;;  %v4085_v18 = vmul.f32 %v5430_v27, %v5430_v27 }
 0x270   :  { %v3842_v63 = vpop.f32.mrf.mxu1  ;;  %v3791_v31 = vpop.f32.mrf.mxu0 }
 0x271   :  { %v3843_v34 = vadd.f32 %v3842_v63, %v3790_v22  ;;  %v3792_v62 = vadd.f32 %v3791_v31, %v3739_v5  ;;  %v5161_v31 = vld [vmem:[#allocation7 + $0xc0] sm:$0xff]  }
 0x272   :  { %v3844_v8 = vpop.f32.mrf.mxu1  ;;  %v3793_v46 = vpop.f32.mrf.mxu0  ;;  %5107 = vmatprep.subr.bf16.mxu1 %v5161_v31 }
 0x273   :  { %v3845_v36 = vadd.f32 %v3844_v8, %v3792_v62  ;;  %v3794_v3 = vadd.f32 %v3793_v46, %v3741_v32  ;;  %v4089_v14 = vmul.f32 %v3843_v34, %v3843_v34  ;;  %5108 = vmatpush3.bf16.msra.mxu1 %v5162_v58 }
 0x274   :  { %v3846_v38 = vpop.f32.mrf.mxu1  ;;  %v3795_v17 = vpop.f32.mrf.mxu0 }
 0x275   :  { %v3847_v24 = vadd.f32 %v3846_v38, %v3794_v3  ;;  %v3796_v40 = vadd.f32 %v3795_v17, %v3743_v25  ;;  %v4090_v53 = vmul.f32 %v3845_v36, %v3845_v36  ;;  %v4105_v20 = vadd.f32 %v4089_v14, %v4073_v28 }
 0x276   :  { %v3848_v23 = vpop.f32.mrf.mxu1  ;;  %v3799_v50 = vpop.f32.mrf.mxu0  ;;  %v4082_v3 = vmul.f32 %v5427_v45, %v5427_v45  ;;  %v4086_v38 = vmul.f32 %v5432_v59, %v5432_v59 }
 0x277   :  { %v4093_v35 = vmul.f32 %v3847_v24, %v3847_v24  ;;  %v3849_v56 = vadd.f32 %v3848_v23, %v3796_v40  ;;  %v3800_v1 = vadd.f32 %v3799_v50, %v3747_v16  ;;  %v4106_v5 = vadd.f32 %v4090_v53, %v4074_v4 }
 0x278   :  { %v3852_v0 = vpop.f32.mrf.mxu1  ;;  %v3801_v51 = vpop.f32.mrf.mxu0 }
 0x279   :  { %v4109_v39 = vadd.f32 %v4093_v35, %v4077_v41  ;;  %v4094_v12 = vmul.f32 %v3849_v56, %v3849_v56  ;;  %v3802_v13 = vadd.f32 %v3801_v51, %v3749_v55  ;;  %v3853_v44 = vadd.f32 %v3852_v0, %v3800_v1 }
 0x27a   :  { %v3854_v43 = vpop.f32.mrf.mxu1  ;;  %v3803_v48 = vpop.f32.mrf.mxu0 }
 0x27b   :  { %v4121_v22 = vpack.c.bf16 %v4109_v39, %v4105_v20  ;;  %v4110_v63 = vadd.f32 %v4094_v12, %v4078_v11  ;;  %v3804_v54 = vadd.f32 %v3803_v48, %v3751_v6  ;;  %v3855_v57 = vadd.f32 %v3854_v43, %v3802_v13 }
 0x27c   :  { %v3856_v37 = vpop.f32.mrf.mxu1  ;;  %v3805_v15 = vpop.f32.mrf.mxu0  ;;  %v4097_v21 = vmul.f32 %v3853_v44, %v3853_v44 }
 0x27d   :  { %v3806_v32 = vadd.f32 %v3805_v15, %v3753_v29  ;;  %v3857_v34 = vadd.f32 %v3856_v37, %v3804_v54  ;;  %v4122_v8 = vpack.c.bf16 %v4110_v63, %v4106_v5  ;;  %v4098_v46 = vmul.f32 %v3855_v57, %v3855_v57 }
 0x27e   :  { %v3858_v62 = vpop.f32.mrf.mxu1  ;;  %v4113_v7 = vadd.f32 %v4097_v21, %v4081_v52  ;;  %v4075_v21 = vmul.f32 %v5461_v30, %v5461_v30 }
 0x27f   :  { %v4101_v25 = vmul.f32 %v3857_v34, %v3857_v34  ;;  %v3859_v36 = vadd.f32 %v3858_v62, %v3806_v32  ;;  %4417 = vmatprep.mubr.bf16.mxu0 %v4122_v8  ;;  %v4114_v47 = vadd.f32 %v4098_v46, %v4082_v3  ;;  %v4079_v32 = vmul.f32 %v5469_v49, %v5469_v49 }
 0x280   :  { %4418 = vmatmul.mubr.bf16.vlgmr.msra.gmra.mxu0 %v4121_v22  ;;  %v4080_v3 = vmul.f32 %v5473_v2, %v5473_v2 }
 0x281   :  { %v4117_v14 = vadd.f32 %v4101_v25, %v4085_v18  ;;  %v4102_v17 = vmul.f32 %v3859_v36, %v3859_v36  ;;  %v4076_v36 = vmul.f32 %v5466_v60, %v5466_v60 }
 0x283   :  { %v4118_v9 = vadd.f32 %v4102_v17, %v4086_v38  ;;  %v4125_v16 = vpack.c.bf16 %v4117_v14, %v4113_v7 }
 0x285   :  { %v4126_v24 = vpack.c.bf16 %v4118_v9, %v4114_v47 }
 0x287   :  { %4425 = vmatprep.mubr.bf16.mxu0 %v4126_v24 }
 0x288   :  { %4426 = vmatmul.mubr.bf16.gmra.mxu0 %v4125_v16 }
 0x2ae   :  { %v3895_v27 = vpop.f32.mrf.mxu0 }
 0x2b0   :  { %v3948_v40 = vpop.f32.mrf.mxu1  ;;  %v3897_v23 = vpop.f32.mrf.mxu0 }
 0x2b1   :  { %v3949_v4 = vadd.f32 %v3948_v40, %v3895_v27 }
 0x2b2   :  { %v3950_v28 = vpop.f32.mrf.mxu1  ;;  %v3899_v41 = vpop.f32.mrf.mxu0 }
 0x2b3   :  { %v3951_v20 = vadd.f32 %v3950_v28, %v3897_v23 }
 0x2b4   :  { %v3952_v55 = vpop.f32.mrf.mxu1  ;;  %v3901_v45 = vpop.f32.mrf.mxu0 }
 0x2b5   :  { %v3953_v12 = vadd.f32 %v3952_v55, %v3899_v41 }
 0x2b6   :  { %v3954_v50 = vpop.f32.mrf.mxu1  ;;  %v3905_v53 = vpop.f32.mrf.mxu0 }
 0x2b7   :  { %v3955_v48 = vadd.f32 %v3954_v50, %v3901_v45 }
 0x2b8   :  { %v3958_v35 = vpop.f32.mrf.mxu1  ;;  %v3907_v59 = vpop.f32.mrf.mxu0 }
 0x2b9   :  { %v3959_v37 = vadd.f32 %v3958_v35, %v3905_v53 }
 0x2ba   :  { %v3960_v56 = vpop.f32.mrf.mxu1  ;;  %v3909_v1 = vpop.f32.mrf.mxu0 }
 0x2bb   :  { %v3961_v34 = vadd.f32 %v3960_v56, %v3907_v59 }
 0x2bc   :  { %v3962_v0 = vpop.f32.mrf.mxu1  ;;  %v3911_v26 = vpop.f32.mrf.mxu0 }
 0x2bd   :  { %v3963_v49 = vadd.f32 %v3962_v0, %v3909_v1  ;;  %v4083_v1 = vmul.f32 %v5478_v42, %v5478_v42  ;;  %v4087_v0 = vmul.f32 %v5486_v61, %v5486_v61 }
 0x2be   :  { %v3964_v11 = vpop.f32.mrf.mxu1 }
 0x2bf   :  { %v3965_v9 = vadd.f32 %v3964_v11, %v3911_v26  ;;  %v4088_v11 = vmul.f32 %v5488_v33, %v5488_v33 }
 0x2ee   :  { %v4001_v6 = vpop.f32.mrf.mxu0 }
 0x2ef   :  { %v4002_v51 = vadd.f32 %v4001_v6, %v3949_v4  ;;  %v4084_v4 = vmul.f32 %v5483_v19, %v5483_v19 }
 0x2f0   :  { %v4054_v10 = vpop.f32.mrf.mxu1  ;;  %v4003_v39 = vpop.f32.mrf.mxu0 }
 0x2f1   :  { %v4055_v13 = vadd.f32 %v4054_v10, %v4002_v51  ;;  %v4004_v44 = vadd.f32 %v4003_v39, %v3951_v20 }
 0x2f2   :  { %v4056_v43 = vpop.f32.mrf.mxu1  ;;  %v4005_v29 = vpop.f32.mrf.mxu0 }
 0x2f3   :  { %v4057_v5 = vadd.f32 %v4056_v43, %v4004_v44  ;;  %v4006_v22 = vadd.f32 %v4005_v29, %v3953_v12  ;;  %v4091_v31 = vmul.f32 %v4055_v13, %v4055_v13 }
 0x2f4   :  { %v4058_v63 = vpop.f32.mrf.mxu1  ;;  %v4007_v54 = vpop.f32.mrf.mxu0 }
 0x2f5   :  { %v4059_v57 = vadd.f32 %v4058_v63, %v4006_v22  ;;  %v4008_v15 = vadd.f32 %v4007_v54, %v3955_v48  ;;  %v4092_v8 = vmul.f32 %v4057_v5, %v4057_v5  ;;  %v4107_v7 = vadd.f32 %v4091_v31, %v4075_v21 }
 0x2f6   :  { %v4060_v58 = vpop.f32.mrf.mxu1  ;;  %v4011_v62 = vpop.f32.mrf.mxu0 }
 0x2f7   :  { %v4095_v52 = vmul.f32 %v4059_v57, %v4059_v57  ;;  %v4061_v18 = vadd.f32 %v4060_v58, %v4008_v15  ;;  %v4012_v46 = vadd.f32 %v4011_v62, %v3959_v37  ;;  %v4108_v27 = vadd.f32 %v4092_v8, %v4076_v36 }
 0x2f8   :  { %v4064_v25 = vpop.f32.mrf.mxu1  ;;  %v4013_v38 = vpop.f32.mrf.mxu0 }
 0x2f9   :  { %v4111_v14 = vadd.f32 %v4095_v52, %v4079_v32  ;;  %v4096_v30 = vmul.f32 %v4061_v18, %v4061_v18  ;;  %v4014_v17 = vadd.f32 %v4013_v38, %v3961_v34  ;;  %v4065_v16 = vadd.f32 %v4064_v25, %v4012_v46 }
 0x2fa   :  { %v4066_v47 = vpop.f32.mrf.mxu1  ;;  %v4015_v24 = vpop.f32.mrf.mxu0 }
 0x2fb   :  { %v4123_v40 = vpack.c.bf16 %v4111_v14, %v4107_v7  ;;  %v4112_v23 = vadd.f32 %v4096_v30, %v4080_v3  ;;  %v4067_v28 = vadd.f32 %v4066_v47, %v4014_v17  ;;  %v4016_v55 = vadd.f32 %v4015_v24, %v3963_v49 }
 0x2fc   :  { %v4068_v41 = vpop.f32.mrf.mxu1  ;;  %v4017_v60 = vpop.f32.mrf.mxu0  ;;  %v4099_v2 = vmul.f32 %v4065_v16, %v4065_v16 }
 0x2fd   :  { %v4018_v45 = vadd.f32 %v4017_v60, %v3965_v9  ;;  %v4124_v50 = vpack.c.bf16 %v4112_v23, %v4108_v27  ;;  %v4069_v53 = vadd.f32 %v4068_v41, %v4016_v55  ;;  %v4100_v59 = vmul.f32 %v4067_v28, %v4067_v28 }
 0x2fe   :  { %v4070_v35 = vpop.f32.mrf.mxu1  ;;  %v4115_v20 = vadd.f32 %v4099_v2, %v4083_v1 }
 0x2ff   :  { %v4071_v56 = vadd.f32 %v4070_v35, %v4018_v45  ;;  %4466 = vmatprep.mubr.bf16.mxu1 %v4124_v50  ;;  %v4103_v26 = vmul.f32 %v4069_v53, %v4069_v53  ;;  %v4116_v10 = vadd.f32 %v4100_v59, %v4084_v4 }
 0x300   :  { %4467 = vmatmul.mubr.bf16.vlgmr.msra.gmra.mxu1 %v4123_v40 }
 0x301   :  { %v4104_v6 = vmul.f32 %v4071_v56, %v4071_v56  ;;  %v4119_v51 = vadd.f32 %v4103_v26, %v4087_v0 }
 0x303   :  { %v4120_v39 = vadd.f32 %v4104_v6, %v4088_v11  ;;  %v4127_v12 = vpack.c.bf16 %v4119_v51, %v4115_v20 }
 0x305   :  { %v4128_v13 = vpack.c.bf16 %v4120_v39, %v4116_v10 }
 0x307   :  { %4474 = vmatprep.mubr.bf16.mxu1 %v4128_v13 }
 0x308   :  { %4475 = vmatmul.mubr.bf16.gmra.mxu1 %v4127_v12 }
 0x340   :  { %v5081_v42 = vpop.f32.mrf.mxu0 }
 0x342   :  { %v5082_v44 = vpop.f32.mrf.mxu0 }
 0x343   :  { %v5083_v19 = vadd.f32 %v5082_v44, %v5081_v42 }
 0x344   :  { %v5084_v61 = vpop.f32.mrf.mxu0 }
 0x346   :  { %v5085_v43 = vpop.f32.mrf.mxu0 }
 0x347   :  { %v5086_v31 = vadd.f32 %v5085_v43, %v5084_v61 }
 0x348   :  { %v5087_v29 = vpop.f32.mrf.mxu0 }
 0x34a   :  { %v5088_v63 = vpop.f32.mrf.mxu0 }
 0x34b   :  { %v5089_v34 = vadd.f32 %v5088_v63, %v5087_v29 }
 0x34c   :  { %v5090_v15 = vpop.f32.mrf.mxu0 }
 0x34e   :  { %v5091_v8 = vpop.f32.mrf.mxu0 }
 0x34f   :  { %v5092_v25 = vadd.f32 %v5091_v8, %v5090_v15 }
 0x3c0   :  { %v5109_v48 = vpop.f32.mrf.mxu1 }
 0x3c2   :  { %v5110_v5 = vpop.f32.mrf.mxu1 }
 0x3c3   :  { %v5111_v22 = vadd.f32 %v5110_v5, %v5109_v48 }
 0x3c4   :  { %v5112_v33 = vpop.f32.mrf.mxu1 }
 0x3c5   :  { %v4469_v54 = vadd.f32 %v5111_v22, %v5083_v19 }
 0x3c6   :  { %v5113_v37 = vpop.f32.mrf.mxu1 }
 0x3c7   :  { %4483 = vst [vmem:[#allocation8] sm:$0xff] %v4469_v54  ;;  %v5114_v57 = vadd.f32 %v5113_v37, %v5112_v33 }
 0x3c8   :  { %v5115_v58 = vpop.f32.mrf.mxu1 }
 0x3c9   :  { %v4472_v21 = vadd.f32 %v5114_v57, %v5086_v31 }
 0x3ca   :  { %v5116_v32 = vpop.f32.mrf.mxu1 }
 0x3cb   :  { %4484 = vst [vmem:[#allocation8 + $0x8] sm:$0xff] %v4472_v21  ;;  %v5117_v62 = vadd.f32 %v5116_v32, %v5115_v58 }
 0x3cc   :  { %v5118_v52 = vpop.f32.mrf.mxu1 }
 0x3cd   :  { %v4477_v18 = vadd.f32 %v5117_v62, %v5089_v34 }
 0x3ce   :  { %v5119_v46 = vpop.f32.mrf.mxu1 }
 0x3cf   :  { %4485 = vst [vmem:[#allocation8 + $0x10] sm:$0xff] %v4477_v18  ;;  %v5120_v36 = vadd.f32 %v5119_v46, %v5118_v52 }
 0x3d1   :  { %v4480_v3 = vadd.f32 %v5120_v36, %v5092_v25 }
 0x3d3   :  { %4486 = vst [vmem:[#allocation8 + $0x18] sm:$0xff] %v4480_v3 }
 0x3d4   :  { %5234 = shalt.err (!%p5231_p5)
}
 0x3d5   :  { %s5257_s4 = smov 128   ;;  %s5258_s5 = smov 8  }
 0x3d6   :  { %4498 = dma.vmem_to_hbm [thread:$0]  %s4493_s2, 512, %s5534_s3, [#allocation4], %s5257_s4, %s5257_s4, %s5258_s5  }
 0x3d7   :  { %5247 = dma.done.wait [#allocation4], 512  }
 0x3d8   :  { %5248 = vsyncadd [#allocation4], 4294966784 }
 0x3d9   :  { %4502 = vsyncpa [#allocation3], 1 }
 0x3da   :  { %4503 = vsyncpa [#allocation6], 1 }
 0x3db   :  { %4504 = vsyncpa [#allocation4], 1 }

</bundles_post_ra>
